<compile_context>
chip_gen: v7x
topology: tpu7x:2x2x1
jax: 0.10.0
libtpu: 0.0.40
codegen_flags: <defaults>
</compile_context>

<pallas_src>
import math

import jax
import jax.numpy as jnp
from jax.experimental import pallas as pl
from jax.experimental.pallas import tpu as pltpu


# ----------------------------------------------------------------------------
# Kernels
# ----------------------------------------------------------------------------
def _packed_kernel(t_ref, w_ref, o_ref):
    """Lane-packed, no bias.  t:(br,pack)  w:(pack,lanes) block-diag  o:(br,lanes)."""
    arg = jnp.dot(t_ref[...], w_ref[...],
                  preferred_element_type=jnp.float32,
                  precision=jax.lax.Precision.HIGHEST)   # exact f32 on MXU
    o_ref[...] = jnp.cos(arg).astype(o_ref.dtype)


def _packed_bias_kernel(t_ref, w_ref, b_ref, o_ref):
    """Lane-packed with bias.  b:(1,lanes) = bias tiled pack times."""
    arg = jnp.dot(t_ref[...], w_ref[...],
                  preferred_element_type=jnp.float32,
                  precision=jax.lax.Precision.HIGHEST) + b_ref[...]
    o_ref[...] = jnp.cos(arg).astype(o_ref.dtype)


def _rowwise_kernel(t_ref, w_ref, o_ref):
    """dim is a multiple of 128 (already lane-dense): plain VPU broadcast-mul."""
    o_ref[...] = jnp.cos(t_ref[...] * w_ref[...]).astype(o_ref.dtype)


def _rowwise_bias_kernel(t_ref, w_ref, b_ref, o_ref):
    o_ref[...] = jnp.cos(t_ref[...] * w_ref[...] + b_ref[...]).astype(o_ref.dtype)


# ----------------------------------------------------------------------------
# Module parameters (reproduces the frozen PyTorch init; bias is zero/frozen)
# ----------------------------------------------------------------------------
def time_encode_params(dim):
    freqs = 1.0 / (10.0 ** jnp.linspace(0.0, 9.0, dim, dtype=jnp.float32))
    return freqs.astype(jnp.float32)


def _round_up(x, m):
    return ((x + m - 1) // m) * m


# ----------------------------------------------------------------------------
# Wrapper
# ----------------------------------------------------------------------------
def time_encode(t, w_row, bias=None, *, block_rows=8192,
                out_dtype=jnp.float32, keep_padded=False):
    """TimeEncode.forward.  t: any shape -> (t.size, dim).

    bias=None means the reference module's frozen all-zero bias: the bias
    operand, its DMA and the add are skipped entirely.
    """
    dim = int(w_row.shape[0])
    t_flat = jnp.reshape(t, (-1,)).astype(jnp.float32)
    n = int(t_flat.shape[0])

    # Generalised lane packing: `pack` logical output rows per physical row so
    # the stored minor dim (lanes = pack*dim) is a multiple of 128 -> unmasked
    # lane-dense stores for any dim.
    pack = 128 // math.gcd(dim, 128)
    lanes = pack * dim

    pad = (-n) % pack                       # at most pack-1 scalars of t
    n_pad = n + pad
    if pad:
        t_flat = jnp.pad(t_flat, (0, pad))
    rows = n_pad // pack
    t2 = t_flat.reshape(rows, pack)

    w32 = w_row.astype(jnp.float32)
    has_bias = bias is not None

    if pack > 1:
        # Block-diagonal frequency operand: w_op[k, k*dim + d] = freq[d].
        # dot(t2, w_op)[r, k*dim+d] = t2[r, k] * freq[d]  (single nonzero term).
        eye = jnp.eye(pack, dtype=jnp.float32)
        w_op = (eye[:, :, None] * w32[None, None, :]).reshape(pack, lanes)
        kernel = _packed_bias_kernel if has_bias else _packed_kernel
    else:
        # dim is a multiple of 128 -> already lane-dense, elementwise path.
        w_op = w32.reshape(1, lanes)
        kernel = _rowwise_bias_kernel if has_bias else _rowwise_kernel

    out_itemsize = jnp.dtype(out_dtype).itemsize

    # --- Row-block sizing ----------------------------------------------------
    # Big tiles amortise the ~0.35us per-grid-step overhead; cap the output
    # tile at ~4 MiB so double-buffered I/O + spill temporaries stay well under
    # every generation's scoped VMEM (v5e 16 MiB default, v7x 64 MiB physical).
    # Keep >= 2 grid blocks when there is enough work so the "parallel" row
    # axis can actually land on both v7x TensorCores.
    max_tile_bytes = 4 * 1024 * 1024
    br = max(8, (max_tile_bytes // (lanes * out_itemsize)) // 8 * 8)
    br = min(br, block_rows)
    if rows >= 16:
        br = min(br, _round_up((rows + 1) // 2, 8))
    if br >= rows:
        br = rows                            # full-extent block (always legal)
    else:
        br = max(8, (br // 8) * 8)           # multiple of 8 sublanes
    grid = (pl.cdiv(rows, br),)

    operands = [t2, w_op]
    in_specs = [
        pl.BlockSpec((br, pack), lambda i: (i, 0)),
        pl.BlockSpec((w_op.shape[0], lanes), lambda i: (0, 0)),
    ]
    if has_bias:
        b_op = jnp.tile(bias.astype(jnp.float32), (pack,)).reshape(1, lanes)
        operands.append(b_op)
        in_specs.append(pl.BlockSpec((1, lanes), lambda i: (0, 0)))

    bytes_accessed = (4 * (rows * pack + int(w_op.size) + (lanes if has_bias else 0))
                      + out_itemsize * rows * lanes)

    out = pl.pallas_call(
        kernel,
        out_shape=jax.ShapeDtypeStruct((rows, lanes), out_dtype),
        grid_spec=pltpu.PrefetchScalarGridSpec(
            num_scalar_prefetch=0,
            grid=grid,
            in_specs=in_specs,
            out_specs=pl.BlockSpec((br, lanes), lambda i: (i, 0)),
        ),
        compiler_params=pltpu.CompilerParams(
            dimension_semantics=("parallel",),       # v7x: shard blocks across TCs
            vmem_limit_bytes=32 * 1024 * 1024,       # headroom over v5e's 16 MiB default
        ),
        cost_estimate=pl.CostEstimate(
            flops=2 * rows * pack * lanes,
            transcendentals=rows * lanes,
            bytes_accessed=bytes_accessed,
        ),
    )(*operands)

    out = out.reshape(n_pad, dim)            # metadata-only reshape (row-major)
    if pad and not keep_padded:
        # Only reached when n % pack != 0.  XLA slices are copies; callers that
        # tolerate <= pack-1 extra rows should pass keep_padded=True to skip it.
        out = out[:n]
    return out


# ----------------------------------------------------------------------------
# Demo
# ----------------------------------------------------------------------------
if __name__ == "__main__":
    key = jax.random.PRNGKey(0)
    k1, k2, k3 = jax.random.split(key, 3)

    # Case 1: dim=32 -> pack=4, lanes=128; 2048 timestamps, grid of 2 blocks.
    dim = 32
    w_row = time_encode_params(dim)
    t = jax.random.uniform(k1, (4, 512), jnp.float32, 0.0, 100.0)
    out = time_encode(t, w_row)
    jax.block_until_ready(out)
    ref = jnp.cos(t.reshape(-1, 1) * w_row[None, :])
    assert out.shape == (t.size, dim)
    assert bool(jnp.allclose(out, ref, atol=1e-3, rtol=0.0)), "packed path mismatch"

    # Case 2: dim=48 -> pack=8, lanes=384 (generalised packing, no masked stores).
    dim2 = 48
    w2 = time_encode_params(dim2)
    t2 = jax.random.uniform(k2, (200,), jnp.float32, 0.0, 100.0)
    out2 = time_encode(t2, w2)
    jax.block_until_ready(out2)
    ref2 = jnp.cos(t2.reshape(-1, 1) * w2[None, :])
    assert out2.shape == (200, dim2)
    assert bool(jnp.allclose(out2, ref2, atol=1e-3, rtol=0.0)), "dim=48 path mismatch"

    # Case 3: explicit (non-zero) bias path, dim=32, 64 timestamps.
    b3 = jnp.linspace(-1.0, 1.0, dim).astype(jnp.float32)
    t3 = jax.random.uniform(k3, (64,), jnp.float32, 0.0, 100.0)
    out3 = time_encode(t3, w_row, b3)
    jax.block_until_ready(out3)
    ref3 = jnp.cos(t3.reshape(-1, 1) * w_row[None, :] + b3[None, :])
    assert out3.shape == (64, dim)
    assert bool(jnp.allclose(out3, ref3, atol=1e-3, rtol=0.0)), "bias path mismatch"

    print("KERNEL_OK")
</pallas_src>

<mosaic_0001>
module attributes {stable_mosaic.version = 11 : i64} {
  func.func @_packed_kernel(%arg0: i32, %arg1: memref<256x4xf32, #tpu.memory_space<vmem>>, %arg2: memref<4x128xf32, #tpu.memory_space<vmem>>, %arg3: memref<256x128xf32, #tpu.memory_space<vmem>>) attributes {dimension_semantics = [#tpu.dimension_semantics<parallel>], iteration_bounds = array<i64: 2>, scalar_prefetch = 0 : i64, scratch_operands = 0 : i64, tpu.core_type = #tpu.core_type<tc>, window_params = [{transform_indices = @transform_0, window_bounds = array<i64: 256, 4>}, {pipeline_mode = #tpu.pipeline_mode<synchronous>, transform_indices = @transform_1, window_bounds = array<i64: 4, 128>}, {transform_indices = @transform_2, window_bounds = array<i64: 256, 128>}]} {
    %c0 = arith.constant 0 : index
    %c0_0 = arith.constant 0 : index
    %0 = vector.load %arg1[%c0, %c0_0] : memref<256x4xf32, #tpu.memory_space<vmem>>, vector<256x4xf32>
    %c0_1 = arith.constant 0 : index
    %c0_2 = arith.constant 0 : index
    %1 = vector.load %arg2[%c0_1, %c0_2] : memref<4x128xf32, #tpu.memory_space<vmem>>, vector<4x128xf32>
    %cst = arith.constant dense<0.000000e+00> : vector<256x128xf32>
    %2 = tpu.matmul %0, %1, %cst {dimension_numbers = #tpu.dot_dimension_numbers<[1], [0], [0], [1], [0, 0, 1, 1], [], []>, precision = #tpu.contract_precision<fp32>} : vector<256x4xf32>, vector<4x128xf32>, vector<256x128xf32> -> vector<256x128xf32>
    %3 = math.cos %2 : vector<256x128xf32>
    %c0_3 = arith.constant 0 : index
    %c0_4 = arith.constant 0 : index
    %4 = vector.load %arg3[%c0_3, %c0_4] : memref<256x128xf32, #tpu.memory_space<vmem>>, vector<256x128xf32>
    tpu.vector_store %arg3[%c0_3, %c0_4], %3 {strides = array<i32>} : memref<256x128xf32, #tpu.memory_space<vmem>>, vector<256x128xf32>,
    return
  }
  func.func @transform_0(%arg0: i32) -> (i32, i32) {
    %c0_i32 = arith.constant 0 : i32
    %c0_i32_0 = arith.constant 0 : i32
    return %arg0, %c0_i32 : i32, i32
  }
  func.func @transform_1(%arg0: i32) -> (i32, i32) {
    %c0_i32 = arith.constant 0 : i32
    %c0_i32_0 = arith.constant 0 : i32
    %c0_i32_1 = arith.constant 0 : i32
    return %c0_i32, %c0_i32_0 : i32, i32
  }
  func.func @transform_2(%arg0: i32) -> (i32, i32) {
    %c0_i32 = arith.constant 0 : i32
    %c0_i32_0 = arith.constant 0 : i32
    return %arg0, %c0_i32 : i32, i32
  }
}

</mosaic_0001>

<bundles_post_ra>
// kernel: tpu_custom_call.1
= control target key start
LH: loop header
LB: loop body
LE: loop exit
PB: predicated region body
PF: predicated region fallthrough
CT: control target
= control target key end

     0   :  { %7 = vsyncpa [#allocation3], 0  ;;  %s9855_s0 = inlined_call_operand.vmem [shape: f32[512,4], index: 0, kind: input, shape index: {}]   ;;  %s9856_s1 = inlined_call_operand.vmem [shape: f32[4,128], index: 1, kind: input, shape index: {}]   ;;  %s9857_s2 = inlined_call_operand.hbm [shape: f32[512,128], index: 2, kind: output, shape index: {}]  }
   0x1   :  { %9 = vsyncpa [#allocation3 + $0x1], 0  ;;  %s6652_s9 = smov 0   ;;  %s6654_s10 = smov 0  }
   0x2   :  { %s6656_s11 = smov 0   ;;  %s6658_s12 = smov 0  }
   0x3 LB: > { %s6673_s13 = sadd.s32 4294967295, %s6626_s12   ;;  %s5462_s14 = sadd.s32 4294967294, %s6626_s12   ;;  %s6626_s12 = sphi %s6658_s12, %s9979_s12   ;;  %s6622_s11 = sphi %s6656_s11, %s9978_s11   ;;  %s6618_s10 = sphi %s6654_s10, %s9977_s10   ;;  %s6614_s9 = sphi %s6652_s9, %s9976_s9  }
   0x4   : > { %s6677_s15 = sadd.s32 1, %s6626_s12   ;;  %s69_s16 = sadd.s32 1, %s6622_s11 }
   0x5   : > { %s66_s17 = ssub.s32 %s6626_s12, %s6677_s15  ;;  %p79_p0 = scmp.ne.s32.totalorder %s6622_s11, %s6618_s10 }
   0x6   : > { %p67_p1 = scmp.eq.s32.totalorder %s66_s17, 0  ;;  %p80_p2 = scmp.eq.s32.totalorder %s6673_s13, 1 }
   0x7   : > { %p85_p3 = scmp.ne.s32.totalorder %s6618_s10, %s6614_s9  ;;  %p86_p4 = scmp.eq.s32.totalorder %s5462_s14, 1 }
   0x8   : > { %s6688_s18 = scalar_select %p67_p1, %s6622_s11, %s69_s16  }
   0x9   : > { %p6690_p5 = por %p80_p2, %p79_p0  ;;  %p6694_p6 = por %p86_p4, %p85_p3 }
   0xa   : > { %p5465_p7 = scmp.ge.s32.totalorder %s6626_s12, 1  ;;  %p116_p8 = scmp.lt.s32.totalorder %s6626_s12, 3 }
   0xc   : > { %p117_p9 = pnand %p5465_p7, %p116_p8 }
   0xe   : > { %120 = sbr.rel (%p117_p9) target bundleno = 1217 (0x4c1), region = 28 }
  0x15   : > { %v177_v0 = vld [vmem:[%s9856_s1] sm:$0xf]  ;;  %vm275_vm0 = vcmask 1043456   ;;  %s5467_s23 = sshll.u32 %s6673_s13, 5  ;;  %vm178_vm1 = vcmask 31744   ;;  %s135_s28 = sand.u32 1, %s6618_s10  }
  0x16   : > { %v277_v1 = vsel %vm275_vm0, %v177_v0, 0  ;;  %p139_p10 = scmp.lt.s32.totalorder %s5467_s23, 63  ;;  %s5466_s29 = sshll.u32 %s135_s28, 8 }
  0x17   : > { %v6704_v2 = vand.u32 4294901760, %v277_v1  ;;  %s7475_s30 = scalar_lea.vmem [#allocation2], %s5466_s29  ;;  %s5602_s3 = sshll.u32 %s6673_s13, 12 }
  0x18   : > { %s9981_s23 = smov (!%p139_p10, %s5467_s23), 63  ;;  %s5400_s4 = sshll.u32 %s7475_s30, 4  ;;  %s9808_s4 = int_to_ptr.vmem [resolvable:$true] %s5400_s4 }
  0x19   : > { %5951 = vmatprep.subr.mxu0 %v6704_v2  ;;  %5801 = vmatprep.subr.mxu1 %v6704_v2  ;;  %v6709_v3 = vsub.f32 %v277_v1, %v6704_v2  ;;  %s5468_s24 = sshll.u32 %s9981_s23, 3  ;;  %s9806_s7 = scalar_lea.hbm %s9857_s2, %s5602_s3 }
  0x1a   : > { %5952 = vmatpush3.msra.mxu0 %v6704_v2  ;;  %5802 = vmatpush3.msra.mxu1 %v6704_v2  ;;  %s6716_s27 = scalar_lea.vmem %s9855_s0, %s5468_s24  ;;  %s9814_s8 = scalar_lea.sflag [#allocation3], %s135_s28 }
  0x1b   : > { %v668_v4 = vand.u32 4294901760, %v6709_v3  ;;  %v145_v5 = vld [vmem:[%s6716_s27] sm:$0xff]  ;;  %v146_v6 = vld [vmem:[%s6716_s27 + $0x8] sm:$0xff]  ;;  %v147_v7 = vld [vmem:[%s6716_s27 + $0x10] sm:$0xff]  ;;  %s6564_s13 = scalar_lea.vmem %s9808_s4, 4096  ;;  %s6634_s14 = smov [#allocation2]  }
  0x1c   : > { %v180_v8 = vsel %vm178_vm1, %v145_v5, 0  ;;  %v183_v9 = vsel %vm178_vm1, %v146_v6, 0  ;;  %v186_v11 = vsel %vm178_vm1, %v147_v7, 0  ;;  %v148_v12 = vld [vmem:[%s6716_s27 + $0x18] sm:$0xff]  ;;  %v149_v13 = vld [vmem:[%s6716_s27 + $0x20] sm:$0xff]  ;;  %v150_v14 = vld [vmem:[%s6716_s27 + $0x28] sm:$0xff]  ;;  %p6565_p11 = scmp.ne.s32.totalorder %s9808_s4, %s6564_s13 }
  0x1d   : > { %v669_v10 = vsub.f32 %v6709_v3, %v668_v4  ;;  %6001 = vmatprep.subr.mxu0 %v668_v4  ;;  %v6729_v15 = vand.u32 4294901760, %v180_v8  ;;  %v6731_v16 = vand.u32 4294901760, %v183_v9  ;;  %v6733_v17 = vand.u32 4294901760, %v186_v11  ;;  %v151_v19 = vld [vmem:[%s6716_s27 + $0x30] sm:$0xff]  ;;  %v152_v20 = vld [vmem:[%s6716_s27 + $0x38] sm:$0xff]  ;;  %v153_v49 = vld [vmem:[%s6716_s27 + $0x40] sm:$0xff] }
  0x1e   : > { %v189_v18 = vsel %vm178_vm1, %v148_v12, 0  ;;  %v192_v23 = vsel %vm178_vm1, %v149_v13, 0  ;;  %v195_v24 = vsel %vm178_vm1, %v150_v14, 0  ;;  %v198_v31 = vsel %vm178_vm1, %v151_v19, 0  ;;  %v154_v50 = vld [vmem:[%s6716_s27 + $0x48] sm:$0xff]  ;;  %v155_v51 = vld [vmem:[%s6716_s27 + $0x50] sm:$0xff]  ;;  %p6566_p12 = pnand %p6565_p11, %p6690_p5 }
  0x1f   : > { %v670_v21 = vand.u32 4294901760, %v669_v10  ;;  %v6738_v22 = vand.u32 4294901760, %v189_v18  ;;  %v6743_v25 = vsub.f32 %v180_v8, %v6729_v15  ;;  %v6746_v26 = vsub.f32 %v183_v9, %v6731_v16  ;;  %v156_v59 = vld [vmem:[%s6716_s27 + $0x58] sm:$0xff]  ;;  %v157_v60 = vld [vmem:[%s6716_s27 + $0x60] sm:$0xff]  ;;  %v158_v7 = vld [vmem:[%s6716_s27 + $0x68] sm:$0xff]  ;;  %s6568_s16 = sshll.u32 %s6634_s14, 4  ;;  %s6569_s16 = int_to_ptr.vmem [resolvable:$false] %s6568_s16 }
  0x20   : > { %v6749_v27 = vsub.f32 %v186_v11, %v6733_v17  ;;  %v6751_v28 = vand.u32 4294901760, %v192_v23  ;;  %v6756_v30 = vand.u32 4294901760, %v195_v24  ;;  %v201_v32 = vsel %vm178_vm1, %v152_v20, 0  ;;  %v159_v12 = vld [vmem:[%s6716_s27 + $0x70] sm:$0xff]  ;;  %p6567_p13 = pneg %p6566_p12  ;;  %s6570_s17 = scalar_lea.vmem %s6569_s16, 8192 }
  0x21   : > { %5851 = vmatprep.subr.mxu1 %v670_v21  ;;  %v6754_v29 = vsub.f32 %v189_v18, %v6738_v22  ;;  %v347_v33 = vand.u32 4294901760, %v6743_v25  ;;  %v357_v34 = vand.u32 4294901760, %v6746_v26  ;;  %v6770_v39 = vand.u32 4294901760, %v198_v31  ;;  %p6571_p0 = scmp.lt.s32.totalorder %s9808_s4, %s6569_s16  ;;  %p6572_p1 = scmp.lt.s32.totalorder %s6570_s17, %s6564_s13 }
  0x22   : > { %v367_v35 = vand.u32 4294901760, %v6749_v27  ;;  %v6764_v36 = vsub.f32 %v192_v23, %v6751_v28  ;;  %v6768_v38 = vsub.f32 %v195_v24, %v6756_v30  ;;  %v6772_v40 = vand.u32 4294901760, %v201_v32 }
  0x23   : > { %v377_v37 = vand.u32 4294901760, %v6754_v29  ;;  %5953 = vmatprep.mubr.f32.mxu0 %v347_v33  ;;  %v348_v41 = vsub.f32 %v6743_v25, %v347_v33  ;;  %v358_v42 = vsub.f32 %v6746_v26, %v357_v34  ;;  %v6781_v47 = vsub.f32 %v198_v31, %v6770_v39  ;;  %v160_v31 = vld [vmem:[%s6716_s27 + $0x78] sm:$0xff]  ;;  %p6573_p2 = por %p6572_p1, %p6571_p0 }
  0x24   : > { %v368_v43 = vsub.f32 %v6749_v27, %v367_v35  ;;  %v387_v44 = vand.u32 4294901760, %v6764_v36  ;;  %5954 = vmatmul.mubr.f32.vlgmr.msra.gmra.mrb[0].mxu0 %v357_v34  ;;  %v397_v46 = vand.u32 4294901760, %v6768_v38  ;;  %v6784_v48 = vsub.f32 %v201_v32, %v6772_v40 }
  0x25   : > { %v378_v45 = vsub.f32 %v6754_v29, %v377_v37  ;;  %v349_v52 = vand.u32 4294901760, %v348_v41  ;;  %5956 = vmatprep.mubr.f32.mxu0 %v367_v35  ;;  %v359_v53 = vand.u32 4294901760, %v358_v42  ;;  %6002 = vmatpush3.msra.mxu0 %v668_v4  ;;  %v407_v56 = vand.u32 4294901760, %v6781_v47  ;;  %p6574_p3 = pnand %p6573_p2, %p6567_p13 }
  0x26   : > { %9878 = vst [vmem:[#allocation5_spill] sm:$0xff] %v6784_v48  ;;  %v369_v54 = vand.u32 4294901760, %v368_v43  ;;  %v388_v55 = vsub.f32 %v6764_v36, %v387_v44  ;;  %v398_v57 = vsub.f32 %v6768_v38, %v397_v46  ;;  %v417_v58 = vand.u32 4294901760, %v6784_v48  ;;  %6051 = vmatprep.subr.mxu0 %v6704_v2 }
  0x27   : > { %5803 = vmatprep.mubr.f32.mxu1 %v349_v52  ;;  %v379_v61 = vand.u32 4294901760, %v378_v45  ;;  %v204_v62 = vsel %vm178_vm1, %v153_v49, 0  ;;  %v207_v63 = vsel %vm178_vm1, %v154_v50, 0  ;;  %v210_v0 = vsel %vm178_vm1, %v155_v51, 0  ;;  %v161_v52 = vld [vmem:[%s6716_s27 + $0x80] sm:$0xff] }
  0x28   : > { %5804 = vmatmul.mubr.f32.vlgmr.msra.gmra.mrb[0].mxu1 %v359_v53  ;;  %5957 = vmatmul.mubr.f32.gmra.mrb[2].mxu0 %v377_v37  ;;  %v389_v1 = vand.u32 4294901760, %v388_v55  ;;  %v399_v4 = vand.u32 4294901760, %v398_v57  ;;  %v408_v5 = vsub.f32 %v6781_v47, %v407_v56  ;;  %v6800_v6 = vand.u32 4294901760, %v204_v62 }
  0x29   : > { %5852 = vmatpush3.msra.mxu1 %v670_v21  ;;  %5806 = vmatprep.mubr.f32.mxu1 %v369_v54  ;;  %v6803_v8 = vand.u32 4294901760, %v207_v63  ;;  %v6805_v9 = vand.u32 4294901760, %v210_v0  ;;  %v213_v10 = vsel %vm178_vm1, %v156_v59, 0  ;;  %v216_v11 = vsel %vm178_vm1, %v157_v60, 0  ;;  %v163_v60 = vld [vmem:[%s6716_s27 + $0x90] sm:$0xff] }
  0x2a   : > { %5959 = vmatprep.mubr.f32.mxu0 %v387_v44  ;;  %v409_v13 = vand.u32 4294901760, %v408_v5  ;;  %v6811_v14 = vsub.f32 %v204_v62, %v6800_v6  ;;  %v418_v18 = vsub.f32 %v6784_v48, %v417_v58  ;;  %v6814_v19 = vand.u32 4294901760, %v213_v10  ;;  %5901 = vmatprep.subr.mxu1 %v6709_v3 }
  0x2b   : > { %v6818_v20 = vsub.f32 %v207_v63, %v6803_v8  ;;  %v6821_v21 = vsub.f32 %v210_v0, %v6805_v9  ;;  %v6823_v23 = vand.u32 4294901760, %v216_v11  ;;  %v219_v24 = vsel %vm178_vm1, %v158_v7, 0  ;;  %v165_v7 = vld [vmem:[%s6716_s27 + $0xa0] sm:$0xff] }
  0x2c   : > { %9879 = vst [vmem:[#allocation6_spill] sm:$0xff] %v6811_v14  ;;  %5807 = vmatmul.mubr.f32.gmra.mrb[2].mxu1 %v379_v61  ;;  %5960 = vmatmul.mubr.f32.gmra.mrb[4].mxu0 %v397_v46  ;;  %v427_v32 = vand.u32 4294901760, %v6811_v14  ;;  %v6829_v33 = vsub.f32 %v213_v10, %v6814_v19  ;;  %v6831_v34 = vand.u32 4294901760, %v219_v24  ;;  %v222_v35 = vsel %vm178_vm1, %v159_v12, 0 }
  0x2d   : > { %9880 = vst [vmem:[#allocation7_spill] sm:$0xff] %v6818_v20  ;;  %9881 = vst [vmem:[#allocation8_spill] sm:$0xff] %v6821_v21  ;;  %5809 = vmatprep.mubr.f32.mxu1 %v389_v1  ;;  %5962 = vmatprep.mubr.f32.mxu0 %v407_v56  ;;  %v437_v37 = vand.u32 4294901760, %v6818_v20  ;;  %v447_v41 = vand.u32 4294901760, %v6821_v21  ;;  %v6837_v42 = vsub.f32 %v216_v11, %v6823_v23  ;;  %v6839_v43 = vand.u32 4294901760, %v222_v35  ;;  %v162_v56 = vld [vmem:[%s6716_s27 + $0x88] sm:$0xff] }
  0x2e   : > { %9882 = vst [vmem:[#allocation9_spill] sm:$0xff] %v6829_v33  ;;  %v428_v44 = vsub.f32 %v6811_v14, %v427_v32  ;;  %v457_v45 = vand.u32 4294901760, %v6829_v33  ;;  %v6844_v46 = vsub.f32 %v219_v24, %v6831_v34  ;;  %v225_v49 = vsel %vm178_vm1, %v160_v31, 0  ;;  %v175_v14 = vld [vmem:[%s6716_s27 + $0xf0] sm:$0xff] }
  0x2f   : > { %9883 = vst [vmem:[#allocation10_spill] sm:$0xff] %v6837_v42  ;;  %v467_v50 = vand.u32 4294901760, %v6837_v42  ;;  %v6849_v51 = vsub.f32 %v222_v35, %v6839_v43  ;;  %v419_v53 = vand.u32 4294901760, %v418_v18  ;;  %v438_v54 = vsub.f32 %v6818_v20, %v437_v37  ;;  %v166_v35 = vld [vmem:[%s6716_s27 + $0xa8] sm:$0xff] }
  0x30   : > { %9884 = vst [vmem:[#allocation11_spill] sm:$0xff] %v6844_v46  ;;  %5810 = vmatmul.mubr.f32.gmra.mrb[4].mxu1 %v399_v4  ;;  %5963 = vmatmul.mubr.f32.gmra.mrb[6].mxu0 %v417_v58  ;;  %v6853_v55 = vand.u32 4294901760, %v225_v49  ;;  %v429_v57 = vand.u32 4294901760, %v428_v44  ;;  %v448_v59 = vsub.f32 %v6821_v21, %v447_v41  ;;  %v458_v61 = vsub.f32 %v6829_v33, %v457_v45  ;;  %v164_v58 = vld [vmem:[%s6716_s27 + $0x98] sm:$0xff]  ;;  %v167_v44 = vld [vmem:[%s6716_s27 + $0xb0] sm:$0xff] }
  0x31   : > { %9885 = vst [vmem:[#allocation12_spill] sm:$0xff] %v6849_v51  ;;  %5812 = vmatprep.mubr.f32.mxu1 %v409_v13  ;;  %5965 = vmatprep.mubr.f32.mxu0 %v427_v32  ;;  %v477_v62 = vand.u32 4294901760, %v6844_v46  ;;  %v228_v63 = vsel %vm178_vm1, %v161_v52, 0  ;;  %v468_v0 = vsub.f32 %v6837_v42, %v467_v50  ;;  %v487_v1 = vand.u32 4294901760, %v6849_v51 }
  0x32   : > { %v6864_v4 = vand.u32 4294901760, %v228_v63  ;;  %v231_v5 = vsel %vm178_vm1, %v162_v56, 0  ;;  %v439_v10 = vand.u32 4294901760, %v438_v54  ;;  %v6869_v11 = vsub.f32 %v225_v49, %v6853_v55 }
  0x33   : > { %v6871_v12 = vand.u32 4294901760, %v231_v5  ;;  %v234_v13 = vsel %vm178_vm1, %v163_v60, 0  ;;  %v449_v18 = vand.u32 4294901760, %v448_v59  ;;  %v237_v32 = vsel %vm178_vm1, %v164_v58, 0  ;;  %v168_v58 = vld [vmem:[%s6716_s27 + $0xb8] sm:$0xff] }
  0x34   : > { %5813 = vmatmul.mubr.f32.gmra.mrb[6].mxu1 %v419_v53  ;;  %5966 = vmatmul.mubr.f32.gmra.mrb[8].mxu0 %v437_v37  ;;  %9886 = vst [vmem:[#allocation13_spill] sm:$0xff] %v6869_v11  ;;  %v6875_v24 = vsub.f32 %v228_v63, %v6864_v4  ;;  %v6877_v31 = vand.u32 4294901760, %v234_v13  ;;  %v240_v37 = vsel %vm178_vm1, %v165_v7, 0  ;;  %v459_v49 = vand.u32 4294901760, %v458_v61 }
  0x35   : > { %5815 = vmatprep.mubr.f32.mxu1 %v429_v57  ;;  %5968 = vmatprep.mubr.f32.mxu0 %v447_v41  ;;  %v469_v52 = vand.u32 4294901760, %v468_v0  ;;  %v478_v53 = vsub.f32 %v6844_v46, %v477_v62  ;;  %v488_v41 = vsub.f32 %v6849_v51, %v487_v1  ;;  %v497_v54 = vand.u32 4294901760, %v6869_v11  ;;  %v169_v0 = vld [vmem:[%s6716_s27 + $0xc0] sm:$0xff] }
  0x36   : > { %9887 = vst [vmem:[#allocation14_spill] sm:$0xff] %v6875_v24  ;;  %v6887_v56 = vsub.f32 %v231_v5, %v6871_v12  ;;  %v6889_v57 = vand.u32 4294901760, %v237_v32  ;;  %v243_v59 = vsel %vm178_vm1, %v166_v35, 0  ;;  %v507_v60 = vand.u32 4294901760, %v6875_v24 }
  0x37   : > { %v6894_v61 = vsub.f32 %v234_v13, %v6877_v31  ;;  %v6896_v63 = vand.u32 4294901760, %v240_v37  ;;  %v479_v7 = vand.u32 4294901760, %v478_v53  ;;  %v489_v5 = vand.u32 4294901760, %v488_v41 }
  0x38   : > { %5816 = vmatmul.mubr.f32.gmra.mrb[8].mxu1 %v439_v10  ;;  %5969 = vmatmul.mubr.f32.gmra.mrb[10].mxu0 %v457_v45  ;;  %9888 = vst [vmem:[#allocation15_spill] sm:$0xff] %v6887_v56  ;;  %v246_v45 = vsel %vm178_vm1, %v167_v44, 0  ;;  %v6901_v10 = vand.u32 4294901760, %v243_v59  ;;  %v517_v13 = vand.u32 4294901760, %v6887_v56  ;;  %v249_v35 = vsel %vm178_vm1, %v168_v58, 0 }
  0x39   : > { %5818 = vmatprep.mubr.f32.mxu1 %v449_v18  ;;  %5971 = vmatprep.mubr.f32.mxu0 %v467_v50  ;;  %9889 = vst [vmem:[#allocation16_spill] sm:$0xff] %v6894_v61  ;;  %v6903_v51 = vand.u32 4294901760, %v246_v45  ;;  %v498_v50 = vsub.f32 %v6869_v11, %v497_v54  ;;  %v6908_v18 = vsub.f32 %v237_v32, %v6889_v57  ;;  %v527_v53 = vand.u32 4294901760, %v6894_v61 }
  0x3a   : > { %v508_v44 = vsub.f32 %v6875_v24, %v507_v60  ;;  %v6914_v41 = vsub.f32 %v240_v37, %v6896_v63  ;;  %v6919_v11 = vsub.f32 %v243_v59, %v6901_v10  ;;  %v6924_v58 = vand.u32 4294901760, %v249_v35 }
  0x3b   : > { %9890 = vst [vmem:[#allocation17_spill] sm:$0xff] %v6908_v18  ;;  %v6922_v32 = vsub.f32 %v246_v45, %v6903_v51  ;;  %v518_v37 = vsub.f32 %v6887_v56, %v517_v13  ;;  %v537_v24 = vand.u32 4294901760, %v6908_v18  ;;  %v528_v45 = vsub.f32 %v6894_v61, %v527_v53 }
  0x3c   : > { %5819 = vmatmul.mubr.f32.gmra.mrb[10].mxu1 %v459_v49  ;;  %5972 = vmatmul.mubr.f32.gmra.mrb[12].mxu0 %v477_v62  ;;  %9891 = vst [vmem:[#allocation18_spill] sm:$0xff] %v6914_v41  ;;  %v252_v62 = vsel %vm178_vm1, %v169_v0, 0  ;;  %v170_v49 = vld [vmem:[%s6716_s27 + $0xc8] sm:$0xff]  ;;  %9892 = vst [vmem:[#allocation19_spill] sm:$0xff] %v6919_v11  ;;  %v509_v59 = vand.u32 4294901760, %v508_v44  ;;  %v547_v46 = vand.u32 4294901760, %v6914_v41  ;;  %v6939_v33 = vsub.f32 %v249_v35, %v6924_v58 }
  0x3d   : > { %5821 = vmatprep.mubr.f32.mxu1 %v469_v52  ;;  %5974 = vmatprep.mubr.f32.mxu0 %v487_v1  ;;  %9893 = vst [vmem:[#allocation20_spill] sm:$0xff] %v6922_v32  ;;  %v171_v1 = vld [vmem:[%s6716_s27 + $0xd0] sm:$0xff]  ;;  %v499_v52 = vand.u32 4294901760, %v498_v50  ;;  %v6929_v0 = vand.u32 4294901760, %v252_v62  ;;  %v255_v42 = vsel %vm178_vm1, %v170_v49, 0  ;;  %v557_v50 = vand.u32 4294901760, %v6919_v11 }
  0x3e   : > { %v567_v56 = vand.u32 4294901760, %v6922_v32  ;;  %9894 = vst [vmem:[#allocation21_spill] sm:$0xff] %v6939_v33  ;;  %v538_v44 = vsub.f32 %v6908_v18, %v537_v24  ;;  %v529_v61 = vand.u32 4294901760, %v528_v45  ;;  %v548_v21 = vsub.f32 %v6914_v41, %v547_v46 }
  0x3f   : > { %v6944_v49 = vsub.f32 %v252_v62, %v6929_v0  ;;  %v577_v18 = vand.u32 4294901760, %v6939_v33 }
  0x40   : > { %5822 = vmatmul.mubr.f32.gmra.mrb[12].mxu1 %v479_v7  ;;  %5975 = vmatmul.mubr.f32.gmra.mrb[14].mxu0 %v497_v54  ;;  %v258_v7 = vsel %vm178_vm1, %v171_v1, 0  ;;  %v172_v54 = vld [vmem:[%s6716_s27 + $0xd8] sm:$0xff]  ;;  %v6946_v1 = vand.u32 4294901760, %v255_v42  ;;  %v568_v62 = vsub.f32 %v6922_v32, %v567_v56 }
  0x41   : > { %5824 = vmatprep.mubr.f32.mxu1 %v489_v5  ;;  %5977 = vmatprep.mubr.f32.mxu0 %v507_v60  ;;  %v173_v5 = vld [vmem:[%s6716_s27 + $0xe0] sm:$0xff]  ;;  %v519_v60 = vand.u32 4294901760, %v518_v37  ;;  %9895 = vst [vmem:[#allocation22_spill] sm:$0xff] %v6944_v49  ;;  %v6949_v20 = vand.u32 4294901760, %v258_v7  ;;  %v261_v35 = vsel %vm178_vm1, %v172_v54, 0  ;;  %v558_v37 = vsub.f32 %v6919_v11, %v557_v50 }
  0x42   : > { %v6960_v45 = vsub.f32 %v255_v42, %v6946_v1  ;;  %v6962_v54 = vand.u32 4294901760, %v261_v35  ;;  %v569_v48 = vand.u32 4294901760, %v568_v62  ;;  %v578_v42 = vsub.f32 %v6939_v33, %v577_v18 }
  0x43   : > { %v6965_v11 = vsub.f32 %v258_v7, %v6949_v20 }
  0x44   : > { %5825 = vmatmul.mubr.f32.gmra.mrb[14].mxu1 %v499_v52  ;;  %5978 = vmatmul.mubr.f32.gmra.mrb[16].mxu0 %v517_v13  ;;  %v264_v13 = vsel %vm178_vm1, %v173_v5, 0  ;;  %v174_v52 = vld [vmem:[%s6716_s27 + $0xe8] sm:$0xff]  ;;  %v549_v5 = vand.u32 4294901760, %v548_v21  ;;  %v579_v62 = vand.u32 4294901760, %v578_v42 }
  0x45   : > { %5827 = vmatprep.mubr.f32.mxu1 %v509_v59  ;;  %5980 = vmatprep.mubr.f32.mxu0 %v527_v53  ;;  %v539_v53 = vand.u32 4294901760, %v538_v44  ;;  %v587_v59 = vand.u32 4294901760, %v6944_v49  ;;  %v6967_v41 = vand.u32 4294901760, %v264_v13  ;;  %v267_v32 = vsel %vm178_vm1, %v174_v52, 0 }
  0x46   : > { %v559_v44 = vand.u32 4294901760, %v558_v37  ;;  %v6978_v7 = vand.u32 4294901760, %v267_v32 }
  0x47   : > { %v588_v21 = vsub.f32 %v6944_v49, %v587_v59  ;;  %v6982_v52 = vsub.f32 %v264_v13, %v6967_v41 }
  0x48   : > { %5828 = vmatmul.mubr.f32.gmra.mrb[16].mxu1 %v519_v60  ;;  %5981 = vmatmul.mubr.f32.gmra.mrb[18].mxu0 %v537_v24  ;;  %v270_v24 = vsel %vm178_vm1, %v175_v14, 0  ;;  %v176_v60 = vld [vmem:[%s6716_s27 + $0xf8] sm:$0xff]  ;;  %v607_v14 = vand.u32 4294901760, %v6965_v11  ;;  %v6990_v49 = vsub.f32 %v267_v32, %v6978_v7 }
  0x49   : > { %5830 = vmatprep.mubr.f32.mxu1 %v529_v61  ;;  %5983 = vmatprep.mubr.f32.mxu0 %v547_v46  ;;  %v597_v61 = vand.u32 4294901760, %v6960_v45  ;;  %v6976_v46 = vsub.f32 %v261_v35, %v6962_v54  ;;  %v6984_v37 = vand.u32 4294901760, %v270_v24  ;;  %v589_v13 = vand.u32 4294901760, %v588_v21 }
  0x4a   : > { %v627_v33 = vand.u32 4294901760, %v6982_v52  ;;  %v637_v32 = vand.u32 4294901760, %v6990_v49 }
  0x4b   : > { %v617_v35 = vand.u32 4294901760, %v6976_v46 }
  0x4c   : > { %5831 = vmatmul.mubr.f32.gmra.mrb[18].mxu1 %v539_v53  ;;  %5984 = vmatmul.mubr.f32.gmra.mrb[20].mxu0 %v557_v50  ;;  %v273_v50 = vsel %vm178_vm1, %v176_v60, 0  ;;  %v598_v53 = vsub.f32 %v6960_v45, %v597_v61  ;;  %v6997_v60 = vsub.f32 %v270_v24, %v6984_v37 }
  0x4d   : > { %5833 = vmatprep.mubr.f32.mxu1 %v549_v5  ;;  %5986 = vmatprep.mubr.f32.mxu0 %v567_v56  ;;  %v6992_v56 = vand.u32 4294901760, %v273_v50  ;;  %v608_v5 = vsub.f32 %v6965_v11, %v607_v14 }
  0x4e   : > { %v647_v21 = vand.u32 4294901760, %v6997_v60 }
  0x4f   : > { %v7002_v42 = vsub.f32 %v273_v50, %v6992_v56 }
  0x50   : > { %5834 = vmatmul.mubr.f32.gmra.mrb[20].mxu1 %v559_v44  ;;  %5987 = vmatmul.mubr.f32.gmra.mrb[22].mxu0 %v577_v18  ;;  %v599_v18 = vand.u32 4294901760, %v598_v53  ;;  %v618_v44 = vsub.f32 %v6976_v46, %v617_v35  ;;  %v648_v50 = vsub.f32 %v6997_v60, %v647_v21 }
  0x51   : > { %5836 = vmatprep.mubr.f32.mxu1 %v569_v48  ;;  %5989 = vmatprep.mubr.f32.mxu0 %v587_v59  ;;  %v609_v48 = vand.u32 4294901760, %v608_v5  ;;  %v628_v59 = vsub.f32 %v6982_v52, %v627_v33 }
  0x52   : > { %v619_v24 = vand.u32 4294901760, %v618_v44  ;;  %v649_v5 = vand.u32 4294901760, %v648_v50 }
  0x53   : > { %v629_v53 = vand.u32 4294901760, %v628_v59 }
  0x54   : > { %5837 = vmatmul.mubr.f32.gmra.mrb[22].mxu1 %v579_v62  ;;  %5990 = vmatmul.mubr.f32.gmra.mrb[24].mxu0 %v597_v61  ;;  %v638_v61 = vsub.f32 %v6990_v49, %v637_v32  ;;  %v657_v62 = vand.u32 4294901760, %v7002_v42 }
  0x55   : > { %5839 = vmatprep.mubr.f32.mxu1 %v589_v13  ;;  %5992 = vmatprep.mubr.f32.mxu0 %v607_v14 }
  0x56   : > { %v639_v14 = vand.u32 4294901760, %v638_v61  ;;  %v658_v13 = vsub.f32 %v7002_v42, %v657_v62 }
  0x58   : > { %5840 = vmatmul.mubr.f32.gmra.mrb[24].mxu1 %v599_v18  ;;  %5993 = vmatmul.mubr.f32.gmra.mrb[26].mxu0 %v617_v35  ;;  %v659_v35 = vand.u32 4294901760, %v658_v13 }
  0x59   : > { %5842 = vmatprep.mubr.f32.mxu1 %v609_v48  ;;  %5995 = vmatprep.mubr.f32.mxu0 %v627_v33 }
  0x5c   : > { %5843 = vmatmul.mubr.f32.gmra.mrb[26].mxu1 %v619_v24  ;;  %5996 = vmatmul.mubr.f32.gmra.mrb[28].mxu0 %v637_v32 }
  0x5d   : > { %5845 = vmatprep.mubr.f32.mxu1 %v629_v53  ;;  %5998 = vmatprep.mubr.f32.mxu0 %v647_v21 }
  0x60   : > { %5846 = vmatmul.mubr.f32.gmra.mrb[28].mxu1 %v639_v14  ;;  %5999 = vmatmul.mubr.f32.gmra.mrb[30].mxu0 %v657_v62 }
  0x61   : > { %5848 = vmatprep.mubr.f32.mxu1 %v649_v5  ;;  %6003 = vmatprep.mubr.f32.mxu0 %v6729_v15 }
  0x64   : > { %5849 = vmatmul.mubr.f32.gmra.mrb[30].mxu1 %v659_v35  ;;  %6004 = vmatmul.mubr.f32.vlgmr.msra.gmra.mrb[0].mxu0 %v6731_v16 }
  0x65   : > { %5853 = vmatprep.mubr.f32.mxu1 %v6729_v15  ;;  %6006 = vmatprep.mubr.f32.mxu0 %v6733_v17 }
  0x66   : > { %6052 = vmatpush3.msra.mxu0 %v6704_v2  ;;  %v9896_v2 = vld [vmem:[#allocation5_spill] sm:$0xff] }
  0x68   : > { %5854 = vmatmul.mubr.f32.vlgmr.msra.gmra.mrb[0].mxu1 %v6731_v16  ;;  %6007 = vmatmul.mubr.f32.gmra.mrb[2].mxu0 %v6738_v22 }
  0x69   : > { %5902 = vmatpush3.msra.mxu1 %v6709_v3  ;;  %5856 = vmatprep.mubr.f32.mxu1 %v6733_v17  ;;  %v9897_v3 = vld [vmem:[#allocation6_spill] sm:$0xff] }
  0x6a   : > { %6009 = vmatprep.mubr.f32.mxu0 %v6751_v28 }
  0x6c   : > { %5857 = vmatmul.mubr.f32.gmra.mrb[2].mxu1 %v6738_v22  ;;  %6010 = vmatmul.mubr.f32.gmra.mrb[4].mxu0 %v6756_v30 }
  0x6d   : > { %5859 = vmatprep.mubr.f32.mxu1 %v6751_v28  ;;  %6012 = vmatprep.mubr.f32.mxu0 %v6770_v39 }
  0x70   : > { %5860 = vmatmul.mubr.f32.gmra.mrb[4].mxu1 %v6756_v30  ;;  %6013 = vmatmul.mubr.f32.gmra.mrb[6].mxu0 %v6772_v40 }
  0x71   : > { %5862 = vmatprep.mubr.f32.mxu1 %v6770_v39  ;;  %6015 = vmatprep.mubr.f32.mxu0 %v6800_v6 }
  0x74   : > { %5863 = vmatmul.mubr.f32.gmra.mrb[6].mxu1 %v6772_v40  ;;  %6016 = vmatmul.mubr.f32.gmra.mrb[8].mxu0 %v6803_v8 }
  0x75   : > { %5865 = vmatprep.mubr.f32.mxu1 %v6800_v6  ;;  %6018 = vmatprep.mubr.f32.mxu0 %v6805_v9 }
  0x78   : > { %5866 = vmatmul.mubr.f32.gmra.mrb[8].mxu1 %v6803_v8  ;;  %6019 = vmatmul.mubr.f32.gmra.mrb[10].mxu0 %v6814_v19 }
  0x79   : > { %5868 = vmatprep.mubr.f32.mxu1 %v6805_v9  ;;  %6021 = vmatprep.mubr.f32.mxu0 %v6823_v23 }
  0x7c   : > { %5869 = vmatmul.mubr.f32.gmra.mrb[10].mxu1 %v6814_v19  ;;  %6022 = vmatmul.mubr.f32.gmra.mrb[12].mxu0 %v6831_v34 }
  0x7d   : > { %5871 = vmatprep.mubr.f32.mxu1 %v6823_v23  ;;  %6024 = vmatprep.mubr.f32.mxu0 %v6839_v43 }
  0x80   : > { %5872 = vmatmul.mubr.f32.gmra.mrb[12].mxu1 %v6831_v34  ;;  %6025 = vmatmul.mubr.f32.gmra.mrb[14].mxu0 %v6853_v55 }
  0x81   : > { %5874 = vmatprep.mubr.f32.mxu1 %v6839_v43  ;;  %6027 = vmatprep.mubr.f32.mxu0 %v6864_v4 }
  0x84   : > { %5875 = vmatmul.mubr.f32.gmra.mrb[14].mxu1 %v6853_v55  ;;  %6028 = vmatmul.mubr.f32.gmra.mrb[16].mxu0 %v6871_v12 }
  0x85   : > { %5877 = vmatprep.mubr.f32.mxu1 %v6864_v4  ;;  %6030 = vmatprep.mubr.f32.mxu0 %v6877_v31 }
  0x88   : > { %5878 = vmatmul.mubr.f32.gmra.mrb[16].mxu1 %v6871_v12  ;;  %6031 = vmatmul.mubr.f32.gmra.mrb[18].mxu0 %v6889_v57 }
  0x89   : > { %5880 = vmatprep.mubr.f32.mxu1 %v6877_v31  ;;  %6033 = vmatprep.mubr.f32.mxu0 %v6896_v63 }
  0x8c   : > { %5881 = vmatmul.mubr.f32.gmra.mrb[18].mxu1 %v6889_v57  ;;  %6034 = vmatmul.mubr.f32.gmra.mrb[20].mxu0 %v6901_v10 }
  0x8d   : > { %5883 = vmatprep.mubr.f32.mxu1 %v6896_v63  ;;  %6036 = vmatprep.mubr.f32.mxu0 %v6903_v51 }
  0x90   : > { %5884 = vmatmul.mubr.f32.gmra.mrb[20].mxu1 %v6901_v10  ;;  %6037 = vmatmul.mubr.f32.gmra.mrb[22].mxu0 %v6924_v58 }
  0x91   : > { %5886 = vmatprep.mubr.f32.mxu1 %v6903_v51  ;;  %6039 = vmatprep.mubr.f32.mxu0 %v6929_v0 }
  0x94   : > { %5887 = vmatmul.mubr.f32.gmra.mrb[22].mxu1 %v6924_v58  ;;  %6040 = vmatmul.mubr.f32.gmra.mrb[24].mxu0 %v6946_v1 }
  0x95   : > { %5889 = vmatprep.mubr.f32.mxu1 %v6929_v0  ;;  %6042 = vmatprep.mubr.f32.mxu0 %v6949_v20 }
  0x98   : > { %5890 = vmatmul.mubr.f32.gmra.mrb[24].mxu1 %v6946_v1  ;;  %6043 = vmatmul.mubr.f32.gmra.mrb[26].mxu0 %v6962_v54 }
  0x99   : > { %5892 = vmatprep.mubr.f32.mxu1 %v6949_v20  ;;  %6045 = vmatprep.mubr.f32.mxu0 %v6967_v41 }
  0x9c   : > { %5893 = vmatmul.mubr.f32.gmra.mrb[26].mxu1 %v6962_v54  ;;  %6046 = vmatmul.mubr.f32.gmra.mrb[28].mxu0 %v6978_v7 }
  0x9d   : > { %5895 = vmatprep.mubr.f32.mxu1 %v6967_v41  ;;  %6048 = vmatprep.mubr.f32.mxu0 %v6984_v37 }
  0xa0   : > { %5896 = vmatmul.mubr.f32.gmra.mrb[28].mxu1 %v6978_v7  ;;  %6049 = vmatmul.mubr.f32.gmra.mrb[30].mxu0 %v6992_v56 }
  0xa1   : > { %5898 = vmatprep.mubr.f32.mxu1 %v6984_v37  ;;  %6053 = vmatprep.mubr.f32.mxu0 %v6729_v15  ;;  %v9898_v15 = vld [vmem:[#allocation7_spill] sm:$0xff] }
  0xa4   : > { %5899 = vmatmul.mubr.f32.gmra.mrb[30].mxu1 %v6992_v56  ;;  %6054 = vmatmul.mubr.f32.vlgmr.msra.gmra.mrb[0].mxu0 %v6731_v16  ;;  %v9899_v16 = vld [vmem:[#allocation8_spill] sm:$0xff] }
  0xa5   : > { %5903 = vmatprep.mubr.f32.mxu1 %v6743_v25  ;;  %6056 = vmatprep.mubr.f32.mxu0 %v6733_v17  ;;  %v9900_v17 = vld [vmem:[#allocation9_spill] sm:$0xff]  ;;  %v9902_v25 = vld [vmem:[#allocation11_spill] sm:$0xff] }
  0xa8   : > { %5904 = vmatmul.mubr.f32.vlgmr.msra.gmra.mrb[0].mxu1 %v6746_v26  ;;  %6057 = vmatmul.mubr.f32.gmra.mrb[2].mxu0 %v6738_v22  ;;  %v9901_v22 = vld [vmem:[#allocation10_spill] sm:$0xff]  ;;  %v9903_v26 = vld [vmem:[#allocation12_spill] sm:$0xff] }
  0xa9   : > { %5906 = vmatprep.mubr.f32.mxu1 %v6749_v27  ;;  %6059 = vmatprep.mubr.f32.mxu0 %v6751_v28  ;;  %v9904_v27 = vld [vmem:[#allocation13_spill] sm:$0xff]  ;;  %v9905_v28 = vld [vmem:[#allocation14_spill] sm:$0xff] }
  0xac   : > { %5907 = vmatmul.mubr.f32.gmra.mrb[2].mxu1 %v6754_v29  ;;  %6060 = vmatmul.mubr.f32.gmra.mrb[4].mxu0 %v6756_v30  ;;  %v9906_v29 = vld [vmem:[#allocation15_spill] sm:$0xff]  ;;  %v9907_v30 = vld [vmem:[#allocation16_spill] sm:$0xff] }
  0xad   : > { %5909 = vmatprep.mubr.f32.mxu1 %v6764_v36  ;;  %6062 = vmatprep.mubr.f32.mxu0 %v6770_v39  ;;  %v9908_v36 = vld [vmem:[#allocation17_spill] sm:$0xff]  ;;  %v9910_v39 = vld [vmem:[#allocation19_spill] sm:$0xff] }
  0xb0   : > { %5910 = vmatmul.mubr.f32.gmra.mrb[4].mxu1 %v6768_v38  ;;  %6063 = vmatmul.mubr.f32.gmra.mrb[6].mxu0 %v6772_v40  ;;  %v9909_v38 = vld [vmem:[#allocation18_spill] sm:$0xff]  ;;  %v9911_v40 = vld [vmem:[#allocation20_spill] sm:$0xff] }
  0xb1   : > { %5912 = vmatprep.mubr.f32.mxu1 %v6781_v47  ;;  %6065 = vmatprep.mubr.f32.mxu0 %v6800_v6  ;;  %v9912_v47 = vld [vmem:[#allocation21_spill] sm:$0xff]  ;;  %v9913_v6 = vld [vmem:[#allocation22_spill] sm:$0xff] }
  0xb4   : > { %5913 = vmatmul.mubr.f32.gmra.mrb[6].mxu1 %v9896_v2  ;;  %6066 = vmatmul.mubr.f32.gmra.mrb[8].mxu0 %v6803_v8 }
  0xb5   : > { %5915 = vmatprep.mubr.f32.mxu1 %v9897_v3  ;;  %6068 = vmatprep.mubr.f32.mxu0 %v6805_v9  ;;  %v6628_v3 = vmov 683565275  }
  0xb8   : > { %5916 = vmatmul.mubr.f32.gmra.mrb[8].mxu1 %v9898_v15  ;;  %6069 = vmatmul.mubr.f32.gmra.mrb[10].mxu0 %v6814_v19 }
  0xb9   : > { %5918 = vmatprep.mubr.f32.mxu1 %v9899_v16  ;;  %6071 = vmatprep.mubr.f32.mxu0 %v6823_v23 }
  0xbc   : > { %5919 = vmatmul.mubr.f32.gmra.mrb[10].mxu1 %v9900_v17  ;;  %6072 = vmatmul.mubr.f32.gmra.mrb[12].mxu0 %v6831_v34 }
  0xbd   : > { %5921 = vmatprep.mubr.f32.mxu1 %v9901_v22  ;;  %6074 = vmatprep.mubr.f32.mxu0 %v6839_v43  ;;  %v6629_v22 = vmov 2475754826  }
  0xc0   : > { %5922 = vmatmul.mubr.f32.gmra.mrb[12].mxu1 %v9902_v25  ;;  %6075 = vmatmul.mubr.f32.gmra.mrb[14].mxu0 %v6853_v55 }
  0xc1   : > { %5924 = vmatprep.mubr.f32.mxu1 %v9903_v26  ;;  %6077 = vmatprep.mubr.f32.mxu0 %v6864_v4  ;;  %v6630_v26 = vmov 2131351028  }
  0xc4   : > { %5925 = vmatmul.mubr.f32.gmra.mrb[14].mxu1 %v9904_v27  ;;  %6078 = vmatmul.mubr.f32.gmra.mrb[16].mxu0 %v6871_v12 }
  0xc5   : > { %5927 = vmatprep.mubr.f32.mxu1 %v9905_v28  ;;  %6080 = vmatprep.mubr.f32.mxu0 %v6877_v31  ;;  %v6631_v28 = vmov 2102212464  }
  0xc8   : > { %5928 = vmatmul.mubr.f32.gmra.mrb[16].mxu1 %v9906_v29  ;;  %6081 = vmatmul.mubr.f32.gmra.mrb[18].mxu0 %v6889_v57 }
  0xc9   : > { %5930 = vmatprep.mubr.f32.mxu1 %v9907_v30  ;;  %6083 = vmatprep.mubr.f32.mxu0 %v6896_v63  ;;  %v6632_v30 = vmov 920167782  }
  0xcc   : > { %5931 = vmatmul.mubr.f32.gmra.mrb[18].mxu1 %v9908_v36  ;;  %6084 = vmatmul.mubr.f32.gmra.mrb[20].mxu0 %v6901_v10 }
  0xcd   : > { %5933 = vmatprep.mubr.f32.mxu1 %v9909_v38  ;;  %6086 = vmatprep.mubr.f32.mxu0 %v6903_v51 }
  0xd0   : > { %5934 = vmatmul.mubr.f32.gmra.mrb[20].mxu1 %v9910_v39  ;;  %6087 = vmatmul.mubr.f32.gmra.mrb[22].mxu0 %v6924_v58 }
  0xd1   : > { %5936 = vmatprep.mubr.f32.mxu1 %v9911_v40  ;;  %6089 = vmatprep.mubr.f32.mxu0 %v6929_v0 }
  0xd4   : > { %5937 = vmatmul.mubr.f32.gmra.mrb[22].mxu1 %v9912_v47  ;;  %6090 = vmatmul.mubr.f32.gmra.mrb[24].mxu0 %v6946_v1 }
  0xd5   : > { %5939 = vmatprep.mubr.f32.mxu1 %v9913_v6  ;;  %6092 = vmatprep.mubr.f32.mxu0 %v6949_v20 }
  0xd8   : > { %5940 = vmatmul.mubr.f32.gmra.mrb[24].mxu1 %v6960_v45  ;;  %6093 = vmatmul.mubr.f32.gmra.mrb[26].mxu0 %v6962_v54 }
  0xd9   : > { %5942 = vmatprep.mubr.f32.mxu1 %v6965_v11  ;;  %6095 = vmatprep.mubr.f32.mxu0 %v6967_v41 }
  0xdc   : > { %5943 = vmatmul.mubr.f32.gmra.mrb[26].mxu1 %v6976_v46  ;;  %6096 = vmatmul.mubr.f32.gmra.mrb[28].mxu0 %v6978_v7 }
  0xdd   : > { %5945 = vmatprep.mubr.f32.mxu1 %v6982_v52  ;;  %6098 = vmatprep.mubr.f32.mxu0 %v6984_v37 }
  0xe0   : > { %5946 = vmatmul.mubr.f32.gmra.mrb[28].mxu1 %v6990_v49  ;;  %6099 = vmatmul.mubr.f32.gmra.mrb[30].mxu0 %v6992_v56 }
  0xe1   : > { %5948 = vmatprep.mubr.f32.mxu1 %v6997_v60 }
  0xe4   : > { %5949 = vmatmul.mubr.f32.gmra.mrb[30].mxu1 %v7002_v42 }
 0x177   : > { %v6055_v8 = vpop.f32.mrb[0].mxu0 }
 0x178   : > { %v1868_v9 = vpop.f32.mrb[1].mxu0 }
 0x17b   : > { %v5905_v19 = vpop.f32.mrb[0].mxu1  ;;  %v6058_v20 = vpop.f32.mrb[2].mxu0 }
 0x17c   : > { %v7140_v23 = vadd.f32 %v6055_v8, %v5905_v19  ;;  %v997_v33 = vpop.f32.mrb[1].mxu1  ;;  %v1880_v34 = vpop.f32.mrb[3].mxu0  ;;  %v6633_v8 = vmov 1326507024  }
 0x17d   : > { %v7142_v43 = vadd.f32 %v1868_v9, %v997_v33 }
 0x17e   : > { %v2161_v51 = vand.u32 2147483647, %v7140_v23  ;;  %v2164_v55 = vand.u32 2139095040, %v7140_v23  ;;  %vm2163_vm15 = vcmp.lt.s32.totalorder %v7140_v23, 0 }
 0x17f   : > { %v2058_v4 = vand.u32 2147483647, %v7142_v43  ;;  %v2061_v11 = vand.u32 2139095040, %v7142_v43  ;;  %v5908_v12 = vpop.f32.mrb[2].mxu1  ;;  %v7148_v31 = vpop.f32.mrb[4].mxu0 }
 0x180   : > { %v2165_v57 = vshrl.u32 %v2164_v55, 23  ;;  %v7150_v63 = vadd.f32 %v6058_v20, %v5908_v12  ;;  %v1011_v10 = vpop.f32.mrb[3].mxu1  ;;  %v2168_v41 = vand.u32 8388607, %v2161_v51  ;;  %v7158_v1 = vpop.f32.mrb[5].mxu0 }
 0x181   : > { %v2062_v58 = vshrl.u32 %v2061_v11, 23  ;;  %v2065_v0 = vand.u32 8388607, %v2058_v4  ;;  %v7156_v49 = vadd.f32 %v1880_v34, %v1011_v10 }
 0x182   : > { %v5473_v45 = vadd.s32 4294967169, %v2165_v57  ;;  %v2370_v46 = vand.u32 2139095040, %v7150_v63  ;;  %v2169_v56 = vor.u32 8388608, %v2168_v41  ;;  %v2367_v35 = vand.u32 2147483647, %v7150_v63 }
 0x183   : > { %v5469_v54 = vadd.s32 4294967169, %v2062_v58  ;;  %v7161_v7 = vpop.f32.mrb[4].mxu1  ;;  %v7163_v52 = vpop.f32.mrb[6].mxu0  ;;  %v2066_v60 = vor.u32 8388608, %v2065_v0 }
 0x184   : > { %v2171_v37 = vadd.s32 1, %v5473_v45  ;;  %v2371_v44 = vshrl.u32 %v2370_v46, 23  ;;  %v7165_v32 = vpop.f32.mrb[5].mxu1  ;;  %v7167_v42 = vpop.f32.mrb[7].mxu0  ;;  %v7175_v14 = vshll.u32 %v2169_v56, 8 }
 0x185   : > { %v2068_v18 = vadd.s32 1, %v5469_v54  ;;  %v7179_v5 = vshll.u32 %v2066_v60, 8 }
 0x186   : > { %vm2172_vm2 = vcmp.gt.s32.totalorder %v2171_v37, 0  ;;  %v5481_v59 = vadd.s32 4294967169, %v2371_v44 }
 0x187   : > { %v2173_v48 = vsel %vm2172_vm2, %v2171_v37, 0  ;;  %vm2069_vm3 = vcmp.gt.s32.totalorder %v2068_v18, 0  ;;  %v7169_v21 = vpop.f32.mrb[6].mxu1  ;;  %v7171_v53 = vpop.f32.mrb[8].mxu0 }
 0x188   : > { %v2174_v24 = vshrl.u32 %v2173_v48, 5  ;;  %v2175_v61 = vand.u32 31, %v2173_v48  ;;  %v2070_v62 = vsel %vm2069_vm3, %v2068_v18, 0  ;;  %v7173_v50 = vpop.f32.mrb[7].mxu1  ;;  %v7183_v17 = vadd.s32 1, %v5481_v59 }
 0x189   : > { %v7177_v13 = vshrl.u32 %v2070_v62, 5  ;;  %v2072_v16 = vand.u32 31, %v2070_v62 }
 0x18a   : > { %v2176_v2 = vsub.s32 32, %v2175_v61  ;;  %v2178_v15 = vshll.u32 %v6628_v3, %v2175_v61  ;;  %v2181_v25 = vshll.u32 %v6629_v22, %v2175_v61  ;;  %v2184_v27 = vshll.u32 %v6630_v26, %v2175_v61 }
 0x18b   : > { %v2187_v29 = vshll.u32 %v6631_v28, %v2175_v61  ;;  %v2190_v36 = vshll.u32 %v6632_v30, %v2175_v61  ;;  %vm2193_vm4 = vcmp.lt.s32.totalorder %v2174_v24, 1  ;;  %vm2194_vm5 = vcmp.lt.s32.totalorder %v2174_v24, 2 }
 0x18c   : > { %v2179_v38 = vshrl.u32 %v6629_v22, %v2176_v2  ;;  %v2182_v39 = vshrl.u32 %v6630_v26, %v2176_v2  ;;  %v2185_v40 = vshrl.u32 %v6631_v28, %v2176_v2  ;;  %v2177_v47 = vshrl.u32 %v6628_v3, %v2176_v2 }
 0x18d   : > { %v2188_v6 = vshrl.u32 %v6632_v30, %v2176_v2  ;;  %v2191_v9 = vshrl.u32 %v6633_v8, %v2176_v2  ;;  %v2073_v34 = vsub.s32 32, %v2072_v16  ;;  %vm2195_vm6 = vcmp.lt.s32.totalorder %v2174_v24, 3 }
 0x18e   : > { %v2180_v19 = vor.u32 %v2179_v38, %v2178_v15  ;;  %v2183_v20 = vor.u32 %v2182_v39, %v2181_v25  ;;  %v2186_v33 = vor.u32 %v2185_v40, %v2184_v27  ;;  %vm2196_vm7 = vcmp.lt.s32.totalorder %v2174_v24, 4 }
 0x18f   : > { %v2189_v55 = vor.u32 %v2188_v6, %v2187_v29  ;;  %v2192_v11 = vor.u32 %v2191_v9, %v2190_v36  ;;  %v2075_v54 = vshll.u32 %v6628_v3, %v2072_v16  ;;  %v2076_v56 = vshrl.u32 %v6629_v22, %v2073_v34 }
 0x190   : > { %v2197_v12 = vsel %vm2193_vm4, %v2177_v47, %v2180_v19  ;;  %v2198_v57 = vsel %vm2196_vm7, %v2186_v33, 2102212464  ;;  %v2201_v10 = vsel %vm2193_vm4, %v2180_v19, %v2183_v20  ;;  %v2205_v41 = vsel %vm2193_vm4, %v2183_v20, %v2186_v33 }
 0x191   : > { %v2199_v58 = vsel %vm2195_vm6, %v2183_v20, %v2198_v57  ;;  %v2202_v0 = vsel %vm2196_vm7, %v2189_v55, 920167782  ;;  %v2206_v45 = vsel %vm2196_vm7, %v2192_v11, 1326507024  ;;  %v2078_v60 = vshll.u32 %v6629_v22, %v2072_v16 }
 0x192   : > { %v2203_v46 = vsel %vm2195_vm6, %v2186_v33, %v2202_v0  ;;  %v2207_v37 = vsel %vm2195_vm6, %v2189_v55, %v2206_v45  ;;  %v2200_v18 = vsel %vm2194_vm5, %v2197_v12, %v2199_v58  ;;  %v2079_v59 = vshrl.u32 %v6630_v26, %v2073_v34 }
 0x193   : > { %v2204_v44 = vsel %vm2194_vm5, %v2201_v10, %v2203_v46  ;;  %v2208_v48 = vsel %vm2194_vm5, %v2205_v41, %v2207_v37  ;;  %v2077_v25 = vor.u32 %v2076_v56, %v2075_v54  ;;  %v2081_v29 = vshll.u32 %v6630_v26, %v2072_v16  ;;  %v7235_v46 = vpop.f32.mrb[8].mxu1 }
 0x194   : > { %v7206_v61 = vmul.u32.u64.low %v7175_v14, %v2208_v48  ;;  %v7207_v62 = vmul.u32.u64.high %v7175_v14, %v2208_v48, %v7206_v61  ;;  %v7210_v2 = vmul.u32.u64.low %v7175_v14, %v2204_v44  ;;  %v7211_v15 = vmul.u32.u64.high %v7175_v14, %v2204_v44, %v7210_v2 }
 0x195   : > { %v2080_v27 = vor.u32 %v2079_v59, %v2078_v60  ;;  %v2082_v36 = vshrl.u32 %v6631_v28, %v2073_v34  ;;  %v2074_v24 = vshrl.u32 %v6628_v3, %v2073_v34  ;;  %v2084_v38 = vshll.u32 %v6631_v28, %v2072_v16 }
 0x196   : > { %v2085_v39 = vshrl.u32 %v6632_v30, %v2073_v34  ;;  %v2088_v40 = vshrl.u32 %v6633_v8, %v2073_v34  ;;  %v2216_v47 = vmul.u32 %v7175_v14, %v2200_v18  ;;  %v2087_v9 = vshll.u32 %v6632_v30, %v2072_v16  ;;  %v7229_v14 = vpop.f32.mrb[9].mxu0 }
 0x197   : > { %v2083_v6 = vor.u32 %v2082_v36, %v2081_v29  ;;  %vm2090_vm8 = vcmp.lt.s32.totalorder %v7177_v13, 1  ;;  %vm2218_vm9 = vc.u32 %v7207_v62, %v7210_v2  ;;  %v2219_v19 = vadd.s32 1, %v7211_v15 }
 0x198   : > { %v2086_v20 = vor.u32 %v2085_v39, %v2084_v38  ;;  %vm2091_vm10 = vcmp.lt.s32.totalorder %v7177_v13, 2  ;;  %v2089_v33 = vor.u32 %v2088_v40, %v2087_v9  ;;  %vm2092_vm11 = vcmp.lt.s32.totalorder %v7177_v13, 3 }
 0x199   : > { %vm2093_vm12 = vcmp.lt.s32.totalorder %v7177_v13, 4  ;;  %v2098_v34 = vsel %vm2090_vm8, %v2077_v25, %v2080_v27  ;;  %v2220_v16 = vsel %vm2218_vm9, %v2219_v19, %v7211_v15  ;;  %v2102_v12 = vsel %vm2090_vm8, %v2080_v27, %v2083_v6 }
 0x19a   : > { %v2095_v55 = vsel %vm2093_vm12, %v2083_v6, 2102212464  ;;  %v2099_v11 = vsel %vm2093_vm12, %v2086_v20, 920167782  ;;  %v2221_v57 = vadd.s32 %v2220_v16, %v2216_v47  ;;  %v2094_v10 = vsel %vm2090_vm8, %v2074_v24, %v2077_v25 }
 0x19b   : > { %v2100_v41 = vsel %vm2092_vm11, %v2083_v6, %v2099_v11  ;;  %v2103_v58 = vsel %vm2093_vm12, %v2089_v33, 1326507024  ;;  %v2096_v0 = vsel %vm2092_vm11, %v2080_v27, %v2095_v55  ;;  %vm2378_vm13 = vcmp.gt.s32.totalorder %v7183_v17, 0 }
 0x19c   : > { %v2101_v45 = vsel %vm2091_vm10, %v2098_v34, %v2100_v41  ;;  %v2104_v54 = vsel %vm2092_vm11, %v2086_v20, %v2103_v58  ;;  %v2222_v37 = vadd.s32 536870912, %v2221_v57  ;;  %v2374_v59 = vand.u32 8388607, %v2367_v35 }
 0x19d   : > { %v2105_v56 = vsel %vm2091_vm10, %v2102_v12, %v2104_v54  ;;  %v7240_v60 = vmul.u32.u64.low %v7179_v5, %v2101_v45  ;;  %v7241_v18 = vmul.u32.u64.high %v7179_v5, %v2101_v45, %v7240_v60  ;;  %v2379_v61 = vsel %vm2378_vm13, %v7183_v17, 0 }
 0x19e   : > { %v7245_v44 = vmul.u32.u64.low %v7179_v5, %v2105_v56  ;;  %v7246_v48 = vmul.u32.u64.high %v7179_v5, %v2105_v56, %v7245_v44  ;;  %v7251_v15 = vshrl.u32 %v2222_v37, 30  ;;  %v2097_v25 = vsel %vm2091_vm10, %v2094_v10, %v2096_v0 }
 0x19f   : > { %v2381_v27 = vand.u32 31, %v2379_v61  ;;  %v7257_v29 = vadd.f32 %v7148_v31, %v7161_v7  ;;  %v7261_v36 = vadd.f32 %v7158_v1, %v7165_v32  ;;  %v2116_v38 = vadd.s32 1, %v7241_v18 }
 0x1a0   : > { %v2224_v24 = vshll.u32 %v7251_v15, 30  ;;  %v2267_v17 = vand.u32 2139095040, %v7156_v49  ;;  %v2113_v40 = vmul.u32 %v7179_v5, %v2097_v25  ;;  %vm2115_vm14 = vc.u32 %v7246_v48, %v7240_v60 }
 0x1a1   : > { %v2382_v39 = vsub.s32 32, %v2381_v27  ;;  %v2375_v13 = vor.u32 8388608, %v2374_v59  ;;  %v2117_v31 = vsel %vm2115_vm14, %v2116_v38, %v7241_v18  ;;  %v2264_v32 = vand.u32 2147483647, %v7156_v49 }
 0x1a2   : > { %v2225_v47 = vsub.s32 %v2221_v57, %v2224_v24  ;;  %v2118_v7 = vadd.s32 %v2117_v31, %v2113_v40  ;;  %v2268_v9 = vshrl.u32 %v2267_v17, 23  ;;  %v2217_v19 = vadd.s32 %v7210_v2, %v7207_v62 }
 0x1a3   : > { %v2385_v1 = vshrl.u32 %v6629_v22, %v2382_v39  ;;  %v2388_v5 = vshrl.u32 %v6630_v26, %v2382_v39  ;;  %v7275_v33 = vshll.u32 %v2375_v13, 8  ;;  %v7277_v16 = vshrl.u32 %v2379_v61, 5 }
 0x1a4   : > { %v2227_v6 = vsub.s32 0, %v2225_v47  ;;  %v2119_v20 = vadd.s32 536870912, %v2118_v7  ;;  %v2384_v55 = vshll.u32 %v6628_v3, %v2381_v27  ;;  %v2391_v11 = vshrl.u32 %v6631_v28, %v2382_v39 }
 0x1a5   : > { %v2387_v57 = vshll.u32 %v6629_v22, %v2381_v27  ;;  %v2393_v10 = vshll.u32 %v6631_v28, %v2381_v27  ;;  %v2394_v62 = vshrl.u32 %v6632_v30, %v2382_v39  ;;  %v2390_v58 = vshll.u32 %v6630_v26, %v2381_v27 }
 0x1a6   : > { %v5474_v34 = vmin.u32 %v2227_v6, %v2225_v47  ;;  %v7281_v12 = vshrl.u32 %v2119_v20, 30  ;;  %v2386_v41 = vor.u32 %v2385_v1, %v2384_v55  ;;  %v5477_v0 = vadd.s32 4294967169, %v2268_v9 }
 0x1a7   : > { %v2389_v54 = vor.u32 %v2388_v5, %v2387_v57  ;;  %v2395_v37 = vor.u32 %v2394_v62, %v2393_v10  ;;  %v2397_v56 = vshrl.u32 %v6633_v8, %v2382_v39  ;;  %v2247_v44 = vsub.s32 4, %v7251_v15 }
 0x1a8   : > { %v2229_v2 = vclz %v5474_v34  ;;  %v2121_v45 = vshll.u32 %v7281_v12, 30  ;;  %v2392_v59 = vor.u32 %v2391_v11, %v2390_v58  ;;  %v7292_v61 = vand.u32 8388607, %v2264_v32 }
 0x1a9   : > { %v2383_v24 = vshrl.u32 %v6628_v3, %v2382_v39  ;;  %v2396_v38 = vshll.u32 %v6632_v30, %v2381_v27  ;;  %vm2402_vm0 = vcmp.lt.s32.totalorder %v7277_v16, 4  ;;  %vm2399_vm2 = vcmp.lt.s32.totalorder %v7277_v16, 1 }
 0x1aa   : > { %v5475_v18 = vadd.s32 4294967294, %v2229_v2  ;;  %v7295_v25 = vsub.s32 %v2118_v7, %v2121_v45  ;;  %vm2401_vm3 = vcmp.lt.s32.totalorder %v7277_v16, 3  ;;  %v2408_v17 = vsel %vm2402_vm0, %v2395_v37, 920167782 }
 0x1ab   : > { %v2398_v31 = vor.u32 %v2397_v56, %v2396_v38  ;;  %v2407_v7 = vsel %vm2399_vm2, %v2386_v41, %v2389_v54  ;;  %vm7309_vm4 = vcmp.le.f32.partialorder %v2161_v51, 0.7853982  ;;  %vm2400_vm5 = vcmp.lt.s32.totalorder %v7277_v16, 2  ;;  %v7337_v56 = vpop.f32.mrb[10].mxu0 }
 0x1ac   : > { %vm5476_vm1 = vcmp.lt.s32.totalorder %v5475_v18, 0  ;;  %v2124_v13 = vsub.s32 0, %v7295_v25  ;;  %v2409_v1 = vsel %vm2401_vm3, %v2392_v59, %v2408_v17  ;;  %v2403_v5 = vsel %vm2399_vm2, %v2383_v24, %v2386_v41  ;;  %v7343_v17 = vpop.f32.mrb[9].mxu1 }
 0x1ad   : > { %v2232_v40 = vsel %vm5476_vm1, 0, %v5475_v18  ;;  %v2404_v34 = vsel %vm2402_vm0, %v2392_v59, 2102212464  ;;  %v2410_v11 = vsel %vm2400_vm5, %v2407_v7, %v2409_v1  ;;  %v2411_v57 = vsel %vm2399_vm2, %v2389_v54, %v2392_v59 }
 0x1ae   : > { %v2233_v39 = vsub.s32 32, %v2232_v40  ;;  %v2237_v6 = vsub.s32 4294967266, %v2232_v40  ;;  %v2234_v9 = vshll.u32 %v2225_v47, %v2232_v40  ;;  %v5470_v20 = vmin.u32 %v2124_v13, %v7295_v25 }
 0x1af   : > { %v2412_v47 = vsel %vm2402_vm0, %v2398_v31, 1326507024  ;;  %v7328_v62 = vmul.u32.u64.low %v7275_v33, %v2410_v11  ;;  %v7329_v2 = vmul.u32.u64.high %v7275_v33, %v2410_v11, %v7328_v62  ;;  %vm2060_vm6 = vcmp.lt.s32.totalorder %v7142_v43, 0 }
 0x1b0   : > { %v2235_v51 = vshrl.u32 %v2217_v19, %v2233_v39  ;;  %v2238_v55 = vadd.s32 127, %v2237_v6  ;;  %v2126_v10 = vclz %v5470_v20  ;;  %v2405_v19 = vsel %vm2401_vm3, %v2389_v54, %v2404_v34 }
 0x1b1   : > { %v2413_v45 = vsel %vm2401_vm3, %v2395_v37, %v2412_v47  ;;  %v2114_v18 = vadd.s32 %v7240_v60, %v7246_v48  ;;  %v2274_v38 = vadd.s32 1, %v5477_v0  ;;  %v2248_v54 = vsel %vm2163_vm15, %v2247_v44, %v7251_v15 }
 0x1b2   : > { %v2236_v41 = vor.u32 %v2235_v51, %v2234_v9  ;;  %v2239_v58 = vshll.u32 %v2238_v55, 23  ;;  %v5471_v59 = vadd.s32 4294967294, %v2126_v10  ;;  %v2414_v24 = vsel %vm2400_vm5, %v2411_v57, %v2413_v45 }
 0x1b3   : > { %v7349_v13 = vmul.u32.u64.low %v7275_v33, %v2414_v24  ;;  %v7350_v37 = vmul.u32.u64.high %v7275_v33, %v2414_v24, %v7349_v13  ;;  %v2406_v60 = vsel %vm2400_vm5, %v2403_v5, %v2405_v19  ;;  %v2425_v48 = vadd.s32 1, %v7329_v2 }
 0x1b4   : > { %v2240_v40 = vor.u32 4788187, %v2239_v58  ;;  %vm5472_vm7 = vcmp.lt.s32.totalorder %v5471_v59, 0  ;;  %vm2275_vm8 = vcmp.gt.s32.totalorder %v2274_v38, 0  ;;  %v2243_v0 = vcvt.s32.f32 %v2236_v41 }
 0x1b5   : > { %v2129_v7 = vsel %vm5472_vm7, 0, %v5471_v59  ;;  %v2276_v39 = vsel %vm2275_vm8, %v2274_v38, 0  ;;  %v2250_v6 = vsel %vm7309_vm4, 0, %v2248_v54  ;;  %v2144_v44 = vsub.s32 4, %v7281_v12 }
 0x1b6   : > { %v2241_v31 = vand.u32 2147483647, %v2240_v40  ;;  %v2130_v1 = vsub.s32 32, %v2129_v7  ;;  %v2134_v15 = vsub.s32 4294967266, %v2129_v7  ;;  %v2422_v20 = vmul.u32 %v7275_v33, %v2406_v60 }
 0x1b7   : > { %vm2424_vm9 = vc.u32 %v7350_v37, %v7328_v62  ;;  %v2278_v16 = vand.u32 31, %v2276_v39  ;;  %vm7363_vm10 = vcmp.le.f32.partialorder %v2058_v4, 0.7853982  ;;  %v2131_v34 = vshll.u32 %v7295_v25, %v2129_v7 }
 0x1b8   : > { %v2244_v9 = vmul.f32 %v2243_v0, %v2241_v31  ;;  %v2132_v51 = vshrl.u32 %v2114_v18, %v2130_v1  ;;  %v2135_v55 = vadd.s32 127, %v2134_v15  ;;  %v2426_v11 = vsel %vm2424_vm9, %v2425_v48, %v7329_v2 }
 0x1b9   : > { %v7369_v10 = vand.u32 3, %v2250_v6  ;;  %v2427_v33 = vadd.s32 %v2426_v11, %v2422_v20  ;;  %v2279_v47 = vsub.s32 32, %v2278_v16  ;;  %v7374_v4 = vsel %vm2060_vm6, %v2144_v44, %v7281_v12 }
 0x1ba   : > { %v2245_v57 = vxor.u32 2147483648, %v2244_v9  ;;  %v2133_v41 = vor.u32 %v2132_v51, %v2131_v34  ;;  %v2136_v58 = vshll.u32 %v2135_v55, 23  ;;  %v2272_v19 = vor.u32 8388608, %v7292_v61 }
 0x1bb   : > { %v2428_v45 = vadd.s32 536870912, %v2427_v33  ;;  %v7379_v18 = vshrl.u32 %v2276_v39, 5  ;;  %v2281_v2 = vshll.u32 %v6628_v3, %v2278_v16  ;;  %v2282_v38 = vshrl.u32 %v6629_v22, %v2279_v47 }
 0x1bc   : > { %v2246_v25 = vsel %vm2163_vm15, %v2245_v57, %v2244_v9  ;;  %v2137_v24 = vor.u32 4788187, %v2136_v58  ;;  %v2285_v12 = vshrl.u32 %v6630_v26, %v2279_v47  ;;  %v2287_v61 = vshll.u32 %v6630_v26, %v2278_v16 }
 0x1bd   : > { %v2249_v59 = vsel %vm7309_vm4, %v7140_v23, %v2246_v25  ;;  %v7387_v40 = vshrl.u32 %v2428_v45, 30  ;;  %v2288_v54 = vshrl.u32 %v6631_v28, %v2279_v47  ;;  %v2140_v60 = vcvt.s32.f32 %v2133_v41 }
 0x1be   : > { %6436 = vcosq.f32 %v2249_v59  ;;  %v2138_v13 = vand.u32 2147483647, %v2137_v24  ;;  %v2284_v48 = vshll.u32 %v6629_v22, %v2278_v16  ;;  %v2290_v0 = vshll.u32 %v6631_v28, %v2278_v16 }
 0x1bf   : > { %6438 = vsinq.f32 %v2249_v59  ;;  %v2430_v27 = vshll.u32 %v7387_v40, 30  ;;  %v2289_v31 = vor.u32 %v2288_v54, %v2287_v61  ;;  %v2291_v7 = vshrl.u32 %v6632_v30, %v2279_v47 }
 0x1c0   : > { %v2141_v39 = vmul.f32 %v2140_v60, %v2138_v13  ;;  %v2283_v6 = vor.u32 %v2282_v38, %v2281_v2  ;;  %v2286_v1 = vor.u32 %v2285_v12, %v2284_v48  ;;  %v2294_v15 = vshrl.u32 %v6633_v8, %v2279_v47 }
 0x1c1   : > { %vm2259_vm11 = vcmp.eq.s32.totalorder %v7369_v10, 2  ;;  %v2147_v44 = vsel %vm7363_vm10, 0, %v7374_v4  ;;  %v7400_v9 = vsub.s32 %v2427_v33, %v2430_v27  ;;  %v2292_v20 = vor.u32 %v2291_v7, %v2290_v0 }
 0x1c2   : > { %vm2256_vm12 = vcmp.eq.s32.totalorder %v7369_v10, 0  ;;  %v2142_v34 = vxor.u32 2147483648, %v2141_v39  ;;  %v2293_v51 = vshll.u32 %v6632_v30, %v2278_v16  ;;  %vm2299_vm13 = vcmp.lt.s32.totalorder %v7379_v18, 4 }
 0x1c3   : > { %v7405_v55 = vshll.u32 %v2272_v19, 8  ;;  %vm2255_vm14 = vcmp.lt.s32.totalorder %v7369_v10, 2  ;;  %v2433_v11 = vsub.s32 0, %v7400_v9  ;;  %v2280_v57 = vshrl.u32 %v6628_v3, %v2279_v47 }
 0x1c4   : > { %vm2296_vm15 = vcmp.lt.s32.totalorder %v7379_v18, 1  ;;  %v2301_v33 = vsel %vm2299_vm13, %v2289_v31, 2102212464  ;;  %vm2253_vm0 = vweird.f32 %v7140_v23  ;;  %v2143_v16 = vsel %vm2060_vm6, %v2142_v34, %v2141_v39  ;;  %v7449_v39 = vpop.f32.mrb[11].mxu0 }
 0x1c5   : > { %v2295_v41 = vor.u32 %v2294_v15, %v2293_v51  ;;  %v2304_v58 = vsel %vm2296_vm15, %v2283_v6, %v2286_v1  ;;  %v2305_v4 = vsel %vm2299_vm13, %v2292_v20, 920167782  ;;  %v2146_v47 = vsel %vm7363_vm10, %v7142_v43, %v2143_v16  ;;  %v7468_v16 = vpop.f32.mrb[10].mxu1 }
 0x1c6   : > { %v5482_v19 = vmin.u32 %v2433_v11, %v7400_v9  ;;  %vm2297_vm1 = vcmp.lt.s32.totalorder %v7379_v18, 2  ;;  %vm2298_vm2 = vcmp.lt.s32.totalorder %v7379_v18, 3  ;;  %6440 = vcosq.f32 %v2146_v47 }
 0x1c7   : > { %v2300_v25 = vsel %vm2296_vm15, %v2280_v57, %v2283_v6  ;;  %v2302_v45 = vsel %vm2298_vm2, %v2286_v1, %v2301_v33  ;;  %v2306_v2 = vsel %vm2298_vm2, %v2289_v31, %v2305_v4  ;;  %6442 = vsinq.f32 %v2146_v47 }
 0x1c8   : > { %v6437_v59 = vpop.eup %6436  ;;  %vm2369_vm3 = vcmp.lt.s32.totalorder %v7150_v63, 0  ;;  %v2435_v5 = vclz %v5482_v19  ;;  %v2307_v24 = vsel %vm2297_vm1, %v2304_v58, %v2306_v2  ;;  %v2308_v38 = vsel %vm2296_vm15, %v2286_v1, %v2289_v31 }
 0x1c9   : > { %v6439_v12 = vpop.eup %6438  ;;  %v2260_v61 = vxor.u32 2147483648, %v6437_v59  ;;  %v2309_v54 = vsel %vm2299_vm13, %v2295_v41, 1326507024  ;;  %v7443_v13 = vmul.u32.u64.low %v7405_v55, %v2307_v24  ;;  %v7444_v60 = vmul.u32.u64.high %v7405_v55, %v2307_v24, %v7443_v13 }
 0x1ca   : > { %v2257_v48 = vxor.u32 2147483648, %v6439_v12  ;;  %v2151_v27 = vand.u32 3, %v2147_v44  ;;  %v5483_v0 = vadd.s32 4294967294, %v2435_v5  ;;  %v2310_v7 = vsel %vm2298_vm2, %v2292_v20, %v2309_v54 }
 0x1cb   : > { %v2261_v31 = vsel %vm2259_vm11, %v2260_v61, %v6439_v12  ;;  %v2453_v6 = vsub.s32 4, %v7387_v40  ;;  %v2303_v1 = vsel %vm2297_vm1, %v2300_v25, %v2302_v45  ;;  %v2311_v15 = vsel %vm2297_vm1, %v2308_v38, %v2310_v7 }
 0x1cc   : > { %v2258_v44 = vsel %vm2256_vm12, %v6437_v59, %v2257_v48  ;;  %vm5484_vm4 = vcmp.lt.s32.totalorder %v5483_v0, 0  ;;  %v7461_v34 = vmul.u32.u64.low %v7405_v55, %v2311_v15  ;;  %v7462_v20 = vmul.u32.u64.high %v7405_v55, %v2311_v15, %v7461_v34 }
 0x1cd   : > { %v2262_v51 = vsel %vm2255_vm14, %v2258_v44, %v2261_v31  ;;  %v2438_v11 = vsel %vm5484_vm4, 0, %v5483_v0  ;;  %v2322_v57 = vadd.s32 1, %v7444_v60  ;;  %v2576_v33 = vand.u32 2139095040, %v7257_v29 }
 0x1ce   : > { %v2263_v18 = vsel %vm2253_vm0, nan, %v2262_v51  ;;  %vm2150_vm5 = vweird.f32 %v7142_v43  ;;  %v2423_v41 = vadd.s32 %v7328_v62, %v7350_v37  ;;  %v2439_v58 = vsub.s32 32, %v2438_v11 }
 0x1cf   : > { %v2443_v4 = vsub.s32 4294967266, %v2438_v11  ;;  %5355 = vst [vmem:[%s7475_s30 + $0x8] sm:$0xff] %v2263_v18  ;;  %vm2152_vm6 = vcmp.lt.s32.totalorder %v2151_v27, 2  ;;  %vm7480_vm7 = vcmp.le.f32.partialorder %v2367_v35, 0.7853982  ;;  %v2319_v23 = vmul.u32 %v7405_v55, %v2303_v1 }
 0x1d0   : > { %v2577_v47 = vshrl.u32 %v2576_v33, 23  ;;  %v2440_v19 = vshll.u32 %v7400_v9, %v2438_v11  ;;  %v2441_v25 = vshrl.u32 %v2423_v41, %v2439_v58  ;;  %vm2321_vm8 = vc.u32 %v7462_v20, %v7443_v13  ;;  %v6441_v37 = vpop.eup %6440 }
 0x1d1   : > { %v2444_v62 = vadd.s32 127, %v2443_v4  ;;  %v2454_v45 = vsel %vm2369_vm3, %v2453_v6, %v7387_v40  ;;  %v2323_v35 = vsel %vm2321_vm8, %v2322_v57, %v7444_v60  ;;  %v2573_v2 = vand.u32 2147483647, %v7257_v29  ;;  %v6443_v5 = vpop.eup %6442 }
 0x1d2   : > { %v5489_v59 = vadd.s32 4294967169, %v2577_v47  ;;  %v2157_v55 = vxor.u32 2147483648, %v6441_v37  ;;  %v2442_v24 = vor.u32 %v2441_v25, %v2440_v19  ;;  %v2324_v9 = vadd.s32 %v2323_v35, %v2319_v23 }
 0x1d3   : > { %v2445_v38 = vshll.u32 %v2444_v62, 23  ;;  %vm2153_vm9 = vcmp.eq.s32.totalorder %v2151_v27, 0  ;;  %v2154_v12 = vxor.u32 2147483648, %v6443_v5  ;;  %vm2156_vm10 = vcmp.eq.s32.totalorder %v2151_v27, 2 }
 0x1d4   : > { %v2583_v61 = vadd.s32 1, %v5489_v59  ;;  %v2158_v54 = vsel %vm2156_vm10, %v2157_v55, %v6443_v5  ;;  %v2456_v40 = vsel %vm7480_vm7, 0, %v2454_v45  ;;  %v2325_v0 = vadd.s32 536870912, %v2324_v9 }
 0x1d5   : > { %v2446_v48 = vor.u32 4788187, %v2445_v38  ;;  %v2155_v60 = vsel %vm2153_vm9, %v6441_v37, %v2154_v12  ;;  %v2449_v7 = vcvt.s32.f32 %v2442_v24  ;;  %v2580_v31 = vand.u32 8388607, %v2573_v2 }
 0x1d6   : > { %vm2584_vm11 = vcmp.gt.s32.totalorder %v2583_v61, 0  ;;  %v2159_v6 = vsel %vm2152_vm6, %v2155_v60, %v2158_v54  ;;  %v7498_v15 = vshrl.u32 %v2325_v0, 30  ;;  %v7504_v33 = vand.u32 3, %v2456_v40 }
 0x1d7   : > { %v2447_v1 = vand.u32 2147483647, %v2446_v48  ;;  %v2585_v44 = vsel %vm2584_vm11, %v2583_v61, 0  ;;  %v2160_v34 = vsel %vm2150_vm5, nan, %v2159_v6  ;;  %v7508_v18 = vadd.s32 %v7443_v13, %v7462_v20 }
 0x1d8   : > { %v2587_v51 = vand.u32 31, %v2585_v44  ;;  %5354 = vst [vmem:[%s7475_s30] sm:$0xff] %v2160_v34  ;;  %v2327_v57 = vshll.u32 %v7498_v15, 30  ;;  %v2581_v4 = vor.u32 8388608, %v2580_v31  ;;  %v2473_v23 = vand.u32 2139095040, %v7261_v36 }
 0x1d9   : > { %v2450_v11 = vmul.f32 %v2449_v7, %v2447_v1  ;;  %v7513_v43 = vshrl.u32 %v2585_v44, 5  ;;  %v2350_v0 = vsub.s32 4, %v7498_v15  ;;  %vm2465_vm14 = vcmp.eq.s32.totalorder %v7504_v33, 2 }
 0x1da   : > { %v2588_v27 = vsub.s32 32, %v2587_v51  ;;  %v7510_v58 = vsub.s32 %v2324_v9, %v2327_v57  ;;  %v2590_v47 = vshll.u32 %v6628_v3, %v2587_v51  ;;  %v2593_v20 = vshll.u32 %v6629_v22, %v2587_v51 }
 0x1db   : > { %v2451_v41 = vxor.u32 2147483648, %v2450_v11  ;;  %v2596_v35 = vshll.u32 %v6630_v26, %v2587_v51  ;;  %v2599_v59 = vshll.u32 %v6631_v28, %v2587_v51  ;;  %v7530_v61 = vshll.u32 %v2581_v4, 8 }
 0x1dc   : > { %v2591_v19 = vshrl.u32 %v6629_v22, %v2588_v27  ;;  %v2594_v25 = vshrl.u32 %v6630_v26, %v2588_v27  ;;  %v2330_v13 = vsub.s32 0, %v7510_v58  ;;  %v2597_v37 = vshrl.u32 %v6631_v28, %v2588_v27 }
 0x1dd   : > { %v2452_v62 = vsel %vm2369_vm3, %v2451_v41, %v2450_v11  ;;  %v2600_v5 = vshrl.u32 %v6632_v30, %v2588_v27  ;;  %v2602_v10 = vshll.u32 %v6632_v30, %v2587_v51  ;;  %v2603_v48 = vshrl.u32 %v6633_v8, %v2588_v27 }
 0x1de   : > { %v2455_v45 = vsel %vm7480_vm7, %v7150_v63, %v2452_v62  ;;  %v5478_v55 = vmin.u32 %v2330_v13, %v7510_v58  ;;  %v2592_v24 = vor.u32 %v2591_v19, %v2590_v47  ;;  %v2595_v38 = vor.u32 %v2594_v25, %v2593_v20  ;;  %v7557_v47 = vpop.f32.mrb[12].mxu0  ;;  %v7563_v20 = vpop.f32.mrb[11].mxu1 }
 0x1df   : > { %6444 = vcosq.f32 %v2455_v45  ;;  %v2598_v9 = vor.u32 %v2597_v37, %v2596_v35  ;;  %v2601_v12 = vor.u32 %v2600_v5, %v2599_v59  ;;  %v2474_v40 = vshrl.u32 %v2473_v23, 23 }
 0x1e0   : > { %6446 = vsinq.f32 %v2455_v45  ;;  %v2332_v54 = vclz %v5478_v55  ;;  %v2589_v60 = vshrl.u32 %v6628_v3, %v2588_v27  ;;  %vm2605_vm12 = vcmp.lt.s32.totalorder %v7513_v43, 1 }
 0x1e1   : > { %vm2606_vm13 = vcmp.lt.s32.totalorder %v7513_v43, 2  ;;  %v2604_v31 = vor.u32 %v2603_v48, %v2602_v10  ;;  %vm2608_vm15 = vcmp.lt.s32.totalorder %v7513_v43, 4  ;;  %v2613_v6 = vsel %vm2605_vm12, %v2592_v24, %v2595_v38 }
 0x1e2   : > { %v5479_v7 = vadd.s32 4294967294, %v2332_v54  ;;  %vm2462_vm0 = vcmp.eq.s32.totalorder %v7504_v33, 0  ;;  %vm2607_vm1 = vcmp.lt.s32.totalorder %v7513_v43, 3  ;;  %v2610_v1 = vsel %vm2608_vm15, %v2598_v9, 2102212464 }
 0x1e3   : > { %v2614_v44 = vsel %vm2608_vm15, %v2601_v12, 920167782  ;;  %v2617_v34 = vsel %vm2605_vm12, %v2595_v38, %v2598_v9  ;;  %vm2461_vm2 = vcmp.lt.s32.totalorder %v7504_v33, 2  ;;  %vm2266_vm3 = vcmp.lt.s32.totalorder %v7156_v49, 0 }
 0x1e4   : > { %vm5480_vm4 = vcmp.lt.s32.totalorder %v5479_v7, 0  ;;  %v2615_v51 = vsel %vm2607_vm1, %v2598_v9, %v2614_v44  ;;  %v2618_v11 = vsel %vm2608_vm15, %v2604_v31, 1326507024  ;;  %v5485_v57 = vadd.s32 4294967169, %v2474_v40 }
 0x1e5   : > { %vm2459_vm5 = vweird.f32 %v7150_v63  ;;  %v2335_v27 = vsel %vm5480_vm4, 0, %v5479_v7  ;;  %v2609_v41 = vsel %vm2605_vm12, %v2589_v60, %v2592_v24  ;;  %v2616_v4 = vsel %vm2606_vm13, %v2613_v6, %v2615_v51 }
 0x1e6   : > { %v2619_v23 = vsel %vm2607_vm1, %v2601_v12, %v2618_v11  ;;  %v2336_v19 = vsub.s32 32, %v2335_v27  ;;  %v2340_v25 = vsub.s32 4294967266, %v2335_v27  ;;  %v2611_v62 = vsel %vm2607_vm1, %v2595_v38, %v2610_v1 }
 0x1e7   : > { %v2620_v13 = vsel %vm2606_vm13, %v2617_v34, %v2619_v23  ;;  %v7570_v35 = vmul.u32.u64.low %v7530_v61, %v2616_v4  ;;  %v7571_v59 = vmul.u32.u64.high %v7530_v61, %v2616_v4, %v7570_v35  ;;  %v2337_v55 = vshll.u32 %v7510_v58, %v2335_v27 }
 0x1e8   : > { %v7566_v37 = vmul.u32.u64.low %v7530_v61, %v2620_v13  ;;  %v7567_v45 = vmul.u32.u64.high %v7530_v61, %v2620_v13, %v7566_v37  ;;  %v2338_v24 = vshrl.u32 %v7508_v18, %v2336_v19  ;;  %v2341_v38 = vadd.s32 127, %v2340_v25 }
 0x1e9   : > { %v6445_v5 = vpop.eup %6444  ;;  %v2480_v9 = vadd.s32 1, %v5485_v57  ;;  %v2612_v10 = vsel %vm2606_vm13, %v2609_v41, %v2611_v62  ;;  %v7580_v48 = vadd.f32 %v7163_v52, %v7169_v21  ;;  %v7584_v40 = vadd.f32 %v7167_v42, %v7173_v50 }
 0x1ea   : > { %v6447_v12 = vpop.eup %6446  ;;  %v2466_v54 = vxor.u32 2147483648, %v6445_v5  ;;  %v2339_v7 = vor.u32 %v2338_v24, %v2337_v55  ;;  %v2342_v58 = vshll.u32 %v2341_v38, 23  ;;  %vm2630_vm7 = vc.u32 %v7567_v45, %v7570_v35 }
 0x1eb   : > { %v2463_v60 = vxor.u32 2147483648, %v6447_v12  ;;  %vm2481_vm6 = vcmp.gt.s32.totalorder %v2480_v9, 0  ;;  %v2631_v43 = vadd.s32 1, %v7571_v59  ;;  %v2470_v52 = vand.u32 2147483647, %v7261_v36 }
 0x1ec   : > { %v2467_v18 = vsel %vm2465_vm14, %v2466_v54, %v6447_v12  ;;  %v2343_v42 = vor.u32 4788187, %v2342_v58  ;;  %v2628_v50 = vmul.u32 %v7530_v61, %v2612_v10  ;;  %v2482_v31 = vsel %vm2481_vm6, %v2480_v9, 0 }
 0x1ed   : > { %v2464_v21 = vsel %vm2462_vm0, %v6445_v5, %v2463_v60  ;;  %v2351_v1 = vsel %vm2266_vm3, %v2350_v0, %v7498_v15  ;;  %v2632_v44 = vsel %vm2630_vm7, %v2631_v43, %v7571_v59  ;;  %v2484_v34 = vand.u32 31, %v2482_v31 }
 0x1ee   : > { %v2468_v6 = vsel %vm2461_vm2, %v2464_v21, %v2467_v18  ;;  %v2344_v11 = vand.u32 2147483647, %v2343_v42  ;;  %v2346_v57 = vcvt.s32.f32 %v2339_v7  ;;  %v2633_v27 = vadd.s32 %v2632_v44, %v2628_v50 }
 0x1ef   : > { %v2469_v51 = vsel %vm2459_vm5, nan, %v2468_v6  ;;  %vm7606_vm8 = vcmp.le.f32.partialorder %v2264_v32, 0.7853982  ;;  %v2477_v33 = vand.u32 8388607, %v2470_v52  ;;  %v2485_v15 = vsub.s32 32, %v2484_v34 }
 0x1f0   : > { %5357 = vst [vmem:[%s7475_s30 + $0x18] sm:$0xff] %v2469_v51  ;;  %v2347_v0 = vmul.f32 %v2346_v57, %v2344_v11  ;;  %v2353_v41 = vsel %vm7606_vm8, 0, %v2351_v1  ;;  %v2634_v63 = vadd.s32 536870912, %v2633_v27  ;;  %v2487_v4 = vshll.u32 %v6628_v3, %v2484_v34 }
 0x1f1   : > { %v2488_v23 = vshrl.u32 %v6629_v22, %v2485_v15  ;;  %v2491_v19 = vshrl.u32 %v6630_v26, %v2485_v15  ;;  %v2493_v32 = vshll.u32 %v6630_v26, %v2484_v34  ;;  %v2494_v25 = vshrl.u32 %v6631_v28, %v2485_v15 }
 0x1f2   : > { %v2348_v62 = vxor.u32 2147483648, %v2347_v0  ;;  %v7619_v13 = vshrl.u32 %v2634_v63, 30  ;;  %v2497_v37 = vshrl.u32 %v6632_v30, %v2485_v15  ;;  %v2500_v59 = vshrl.u32 %v6633_v8, %v2485_v15 }
 0x1f3   : > { %v2483_v5 = vshrl.u32 %v2482_v31, 5  ;;  %v2490_v55 = vshll.u32 %v6629_v22, %v2484_v34  ;;  %v2496_v24 = vshll.u32 %v6631_v28, %v2484_v34  ;;  %v2499_v38 = vshll.u32 %v6632_v30, %v2484_v34 }
 0x1f4   : > { %v2349_v9 = vsel %vm2266_vm3, %v2348_v62, %v2347_v0  ;;  %v2636_v12 = vshll.u32 %v7619_v13, 30  ;;  %v2489_v54 = vor.u32 %v2488_v23, %v2487_v4  ;;  %v2495_v10 = vor.u32 %v2494_v25, %v2493_v32 }
 0x1f5   : > { %v2352_v60 = vsel %vm7606_vm8, %v7156_v49, %v2349_v9  ;;  %v2492_v7 = vor.u32 %v2491_v19, %v2490_v55  ;;  %v2498_v58 = vor.u32 %v2497_v37, %v2496_v24  ;;  %v2501_v18 = vor.u32 %v2500_v59, %v2499_v38  ;;  %v7650_v37 = vpop.f32.mrb[12].mxu1 }
 0x1f6   : > { %6448 = vcosq.f32 %v2352_v60  ;;  %v7632_v43 = vsub.s32 %v2633_v27, %v2636_v12  ;;  %v2478_v21 = vor.u32 8388608, %v2477_v33  ;;  %v2357_v42 = vand.u32 3, %v2353_v41  ;;  %v7637_v27 = vpop.f32.mrb[13].mxu0 }
 0x1f7   : > { %6450 = vsinq.f32 %v2352_v60  ;;  %vm2505_vm9 = vcmp.lt.s32.totalorder %v2483_v5, 4  ;;  %v2486_v31 = vshrl.u32 %v6628_v3, %v2485_v15  ;;  %vm2502_vm10 = vcmp.lt.s32.totalorder %v2483_v5, 1 }
 0x1f8   : > { %v2639_v50 = vsub.s32 0, %v7632_v43  ;;  %v2507_v6 = vsel %vm2505_vm9, %v2495_v10, 2102212464  ;;  %v2510_v1 = vsel %vm2502_vm10, %v2489_v54, %v2492_v7  ;;  %v2511_v44 = vsel %vm2505_vm9, %v2498_v58, 920167782 }
 0x1f9   : > { %v2514_v34 = vsel %vm2502_vm10, %v2492_v7, %v2495_v10  ;;  %v2515_v51 = vsel %vm2505_vm9, %v2501_v18, 1326507024  ;;  %vm2503_vm11 = vcmp.lt.s32.totalorder %v2483_v5, 2  ;;  %vm2504_vm12 = vcmp.lt.s32.totalorder %v2483_v5, 3 }
 0x1fa   : > { %v5490_v11 = vmin.u32 %v2639_v50, %v7632_v43  ;;  %v2518_v57 = vshll.u32 %v2478_v21, 8  ;;  %v2506_v61 = vsel %vm2502_vm10, %v2486_v31, %v2489_v54  ;;  %v2508_v33 = vsel %vm2504_vm12, %v2492_v7, %v2507_v6 }
 0x1fb   : > { %v2512_v0 = vsel %vm2504_vm12, %v2495_v10, %v2511_v44  ;;  %v2516_v41 = vsel %vm2504_vm12, %v2498_v58, %v2515_v51  ;;  %v2659_v15 = vsub.s32 4, %v7619_v13  ;;  %vm2356_vm13 = vweird.f32 %v7156_v49 }
 0x1fc   : > { %v2641_v63 = vclz %v5490_v11  ;;  %v2513_v4 = vsel %vm2503_vm11, %v2510_v1, %v2512_v0  ;;  %v2517_v23 = vsel %vm2503_vm11, %v2514_v34, %v2516_v41  ;;  %vm2575_vm14 = vcmp.lt.s32.totalorder %v7257_v29, 0 }
 0x1fd   : > { %v7643_v19 = vmul.u32.u64.low %v2518_v57, %v2517_v23  ;;  %v7644_v32 = vmul.u32.u64.high %v2518_v57, %v2517_v23, %v7643_v19  ;;  %v7646_v25 = vmul.u32.u64.low %v2518_v57, %v2513_v4  ;;  %v7647_v62 = vmul.u32.u64.high %v2518_v57, %v2513_v4, %v7646_v25 }
 0x1fe   : > { %v5491_v59 = vadd.s32 4294967294, %v2641_v63  ;;  %v2509_v55 = vsel %vm2503_vm11, %v2506_v61, %v2508_v33  ;;  %v2782_v24 = vand.u32 2139095040, %v7580_v48  ;;  %vm2358_vm15 = vcmp.lt.s32.totalorder %v2357_v42, 2 }
 0x1ff   : > { %vm2359_vm0 = vcmp.eq.s32.totalorder %v2357_v42, 0  ;;  %vm2362_vm1 = vcmp.eq.s32.totalorder %v2357_v42, 2  ;;  %v2629_v38 = vadd.s32 %v7570_v35, %v7567_v45  ;;  %v2779_v12 = vand.u32 2147483647, %v7580_v48 }
 0x200   : > { %v6449_v9 = vpop.eup %6448  ;;  %vm5492_vm2 = vcmp.lt.s32.totalorder %v5491_v59, 0  ;;  %v2783_v54 = vshrl.u32 %v2782_v24, 23  ;;  %v7660_v10 = vadd.f32 %v7171_v53, %v7235_v46  ;;  %v2660_v58 = vsel %vm2575_vm14, %v2659_v15, %v7619_v13 }
 0x201   : > { %v6451_v60 = vpop.eup %6450  ;;  %v2363_v5 = vxor.u32 2147483648, %v6449_v9  ;;  %v2644_v7 = vsel %vm5492_vm2, 0, %v5491_v59  ;;  %v2525_v18 = vmul.u32 %v2518_v57, %v2509_v55  ;;  %vm2527_vm3 = vc.u32 %v7644_v32, %v7646_v25 }
 0x202   : > { %v2360_v21 = vxor.u32 2147483648, %v6451_v60  ;;  %v2645_v50 = vsub.s32 32, %v2644_v7  ;;  %v2649_v45 = vsub.s32 4294967266, %v2644_v7  ;;  %v2528_v53 = vadd.s32 1, %v7647_v62 }
 0x203   : > { %v2364_v35 = vsel %vm2362_vm1, %v2363_v5, %v6451_v60  ;;  %v5497_v46 = vadd.s32 4294967169, %v2783_v54  ;;  %v2679_v31 = vand.u32 2139095040, %v7584_v40  ;;  %v2646_v1 = vshll.u32 %v7632_v43, %v2644_v7 }
 0x204   : > { %v2361_v6 = vsel %vm2359_vm0, %v6449_v9, %v2360_v21  ;;  %v2647_v13 = vshrl.u32 %v2629_v38, %v2645_v50  ;;  %v2650_v44 = vadd.s32 127, %v2649_v45  ;;  %vm7675_vm4 = vcmp.le.f32.partialorder %v2573_v2, 0.7853982 }
 0x205   : > { %v2365_v34 = vsel %vm2358_vm15, %v2361_v6, %v2364_v35  ;;  %v2529_v11 = vsel %vm2527_vm3, %v2528_v53, %v7647_v62  ;;  %v2789_v57 = vadd.s32 1, %v5497_v46  ;;  %v2662_v43 = vsel %vm7675_vm4, 0, %v2660_v58 }
 0x206   : > { %v2366_v61 = vsel %vm2356_vm13, nan, %v2365_v34  ;;  %v2648_v33 = vor.u32 %v2647_v13, %v2646_v1  ;;  %v2651_v0 = vshll.u32 %v2650_v44, 23  ;;  %v2530_v41 = vadd.s32 %v2529_v11, %v2525_v18 }
 0x207   : > { %5356 = vst [vmem:[%s7475_s30 + $0x10] sm:$0xff] %v2366_v61  ;;  %v2786_v42 = vand.u32 8388607, %v2779_v12  ;;  %vm2790_vm5 = vcmp.gt.s32.totalorder %v2789_v57, 0  ;;  %v2680_v4 = vshrl.u32 %v2679_v31, 23  ;;  %v7689_v59 = vand.u32 3, %v2662_v43 }
 0x208   : > { %v2652_v2 = vor.u32 4788187, %v2651_v0  ;;  %v2531_v63 = vadd.s32 536870912, %v2530_v41  ;;  %v2791_v15 = vsel %vm2790_vm5, %v2789_v57, 0  ;;  %v2655_v62 = vcvt.s32.f32 %v2648_v33 }
 0x209   : > { %v2793_v23 = vand.u32 31, %v2791_v15  ;;  %v2787_v55 = vor.u32 8388608, %v2786_v42  ;;  %v2676_v38 = vand.u32 2147483647, %v7584_v40  ;;  %v5493_v5 = vadd.s32 4294967169, %v2680_v4 }
 0x20a   : > { %v2653_v19 = vand.u32 2147483647, %v2652_v2  ;;  %v7687_v49 = vshrl.u32 %v2531_v63, 30  ;;  %v2792_v46 = vshrl.u32 %v2791_v15, 5  ;;  %vm2472_vm6 = vcmp.lt.s32.totalorder %v7261_v36, 0  ;;  %v7717_v15 = vpop.f32.mrb[14].mxu0 }
 0x20b   : > { %v2794_v24 = vsub.s32 32, %v2793_v23  ;;  %v2796_v60 = vshll.u32 %v6628_v3, %v2793_v23  ;;  %v2799_v58 = vshll.u32 %v6629_v22, %v2793_v23  ;;  %v2802_v35 = vshll.u32 %v6630_v26, %v2793_v23 }
 0x20c   : > { %v2656_v9 = vmul.f32 %v2655_v62, %v2653_v19  ;;  %v2533_v54 = vshll.u32 %v7687_v49, 30  ;;  %v2805_v6 = vshll.u32 %v6631_v28, %v2793_v23  ;;  %v7703_v1 = vshll.u32 %v2787_v55, 8  ;;  %v7719_v55 = vpop.f32.mrb[13].mxu1 }
 0x20d   : > { %v2797_v7 = vshrl.u32 %v6629_v22, %v2794_v24  ;;  %v2800_v18 = vshrl.u32 %v6630_v26, %v2794_v24  ;;  %v2803_v21 = vshrl.u32 %v6631_v28, %v2794_v24  ;;  %v2806_v53 = vshrl.u32 %v6632_v30, %v2794_v24 }
 0x20e   : > { %v2657_v50 = vxor.u32 2147483648, %v2656_v9  ;;  %v7698_v45 = vsub.s32 %v2530_v41, %v2533_v54  ;;  %v2808_v33 = vshll.u32 %v6632_v30, %v2793_v23  ;;  %v2809_v0 = vshrl.u32 %v6633_v8, %v2794_v24 }
 0x20f   : > { %v2798_v31 = vor.u32 %v2797_v7, %v2796_v60  ;;  %v2801_v34 = vor.u32 %v2800_v18, %v2799_v58  ;;  %v2804_v11 = vor.u32 %v2803_v21, %v2802_v35  ;;  %v2807_v61 = vor.u32 %v2806_v53, %v2805_v6 }
 0x210   : > { %v2658_v13 = vsel %vm2575_vm14, %v2657_v50, %v2656_v9  ;;  %v2536_v44 = vsub.s32 0, %v7698_v45  ;;  %v2556_v43 = vsub.s32 4, %v7687_v49  ;;  %v2686_v42 = vadd.s32 1, %v5493_v5 }
 0x211   : > { %v2661_v57 = vsel %vm7675_vm4, %v7257_v29, %v2658_v13  ;;  %v2795_v2 = vshrl.u32 %v6628_v3, %v2794_v24  ;;  %v2810_v63 = vor.u32 %v2809_v0, %v2808_v33  ;;  %vm2811_vm7 = vcmp.lt.s32.totalorder %v2792_v46, 1 }
 0x212   : > { %6452 = vcosq.f32 %v2661_v57  ;;  %v5486_v41 = vmin.u32 %v2536_v44, %v7698_v45  ;;  %vm2812_vm8 = vcmp.lt.s32.totalorder %v2792_v46, 2  ;;  %vm2813_vm9 = vcmp.lt.s32.totalorder %v2792_v46, 3 }
 0x213   : > { %6454 = vsinq.f32 %v2661_v57  ;;  %vm2814_vm10 = vcmp.lt.s32.totalorder %v2792_v46, 4  ;;  %v2819_v23 = vsel %vm2811_vm7, %v2798_v31, %v2801_v34  ;;  %v2823_v62 = vsel %vm2811_vm7, %v2801_v34, %v2804_v11 }
 0x214   : > { %v2538_v51 = vclz %v5486_v41  ;;  %v2816_v4 = vsel %vm2814_vm10, %v2804_v11, 2102212464  ;;  %v2820_v19 = vsel %vm2814_vm10, %v2807_v61, 920167782  ;;  %v2815_v54 = vsel %vm2811_vm7, %v2795_v2, %v2798_v31 }
 0x215   : > { %v2821_v60 = vsel %vm2813_vm9, %v2804_v11, %v2820_v19  ;;  %v2824_v5 = vsel %vm2814_vm10, %v2810_v63, 1326507024  ;;  %vm7723_vm11 = vcmp.le.f32.partialorder %v2470_v52, 0.7853982  ;;  %v2817_v7 = vsel %vm2813_vm9, %v2801_v34, %v2816_v4 }
 0x216   : > { %v5487_v9 = vadd.s32 4294967294, %v2538_v51  ;;  %v2822_v58 = vsel %vm2812_vm8, %v2819_v23, %v2821_v60  ;;  %v2825_v18 = vsel %vm2813_vm9, %v2807_v61, %v2824_v5  ;;  %vm2687_vm12 = vcmp.gt.s32.totalorder %v2686_v42, 0 }
 0x217   : > { %v2826_v21 = vsel %vm2812_vm8, %v2823_v62, %v2825_v18  ;;  %v7730_v50 = vmul.u32.u64.low %v7703_v1, %v2822_v58  ;;  %v7731_v35 = vmul.u32.u64.high %v7703_v1, %v2822_v58, %v7730_v50  ;;  %vm2665_vm14 = vweird.f32 %v7257_v29 }
 0x218   : > { %vm5488_vm13 = vcmp.lt.s32.totalorder %v5487_v9, 0  ;;  %v2526_v52 = vadd.s32 %v7646_v25, %v7644_v32  ;;  %v7738_v31 = vmul.u32.u64.low %v7703_v1, %v2826_v21  ;;  %v7739_v6 = vmul.u32.u64.high %v7703_v1, %v2826_v21, %v7738_v31 }
 0x219   : > { %v2541_v53 = vsel %vm5488_vm13, 0, %v5487_v9  ;;  %v2818_v34 = vsel %vm2812_vm8, %v2815_v54, %v2817_v7  ;;  %v2688_v11 = vsel %vm2687_vm12, %v2686_v42, 0  ;;  %vm2671_vm15 = vcmp.eq.s32.totalorder %v7689_v59, 2 }
 0x21a   : > { %v2542_v13 = vsub.s32 32, %v2541_v53  ;;  %v2546_v44 = vsub.s32 4294967266, %v2541_v53  ;;  %v2557_v57 = vsel %vm2472_vm6, %v2556_v43, %v7687_v49  ;;  %v2683_v61 = vand.u32 8388607, %v2676_v38 }
 0x21b   : > { %v2690_v32 = vand.u32 31, %v2688_v11  ;;  %v2543_v33 = vshll.u32 %v7698_v45, %v2541_v53  ;;  %v2837_v2 = vadd.s32 1, %v7731_v35  ;;  %v2834_v42 = vmul.u32 %v7703_v1, %v2818_v34 }
 0x21c   : > { %v6453_v25 = vpop.eup %6452  ;;  %v2544_v0 = vshrl.u32 %v2526_v52, %v2542_v13  ;;  %v2547_v41 = vadd.s32 127, %v2546_v44  ;;  %vm2836_vm0 = vc.u32 %v7739_v6, %v7730_v50  ;;  %vm2667_vm1 = vcmp.lt.s32.totalorder %v7689_v59, 2 }
 0x21d   : > { %v6455_v46 = vpop.eup %6454  ;;  %v2672_v63 = vxor.u32 2147483648, %v6453_v25  ;;  %v2691_v51 = vsub.s32 32, %v2690_v32  ;;  %v2838_v23 = vsel %vm2836_vm0, %v2837_v2, %v7731_v35  ;;  %vm2668_vm2 = vcmp.eq.s32.totalorder %v7689_v59, 0 }
 0x21e   : > { %v2669_v49 = vxor.u32 2147483648, %v6455_v46  ;;  %v2545_v43 = vor.u32 %v2544_v0, %v2543_v33  ;;  %v2548_v4 = vshll.u32 %v2547_v41, 23  ;;  %v2839_v19 = vadd.s32 %v2838_v23, %v2834_v42 }
 0x21f   : > { %v2673_v45 = vsel %vm2671_vm15, %v2672_v63, %v6455_v46  ;;  %v2559_v9 = vsel %vm7723_vm11, 0, %v2557_v57  ;;  %v2684_v54 = vor.u32 8388608, %v2683_v61  ;;  %v2694_v7 = vshrl.u32 %v6629_v22, %v2691_v51 }
 0x220   : > { %v2670_v62 = vsel %vm2668_vm2, %v6453_v25, %v2669_v49  ;;  %v2549_v1 = vor.u32 4788187, %v2548_v4  ;;  %v2840_v5 = vadd.s32 536870912, %v2839_v19  ;;  %v2697_v58 = vshrl.u32 %v6630_v26, %v2691_v51 }
 0x221   : > { %v2674_v60 = vsel %vm2667_vm1, %v2670_v62, %v2673_v45  ;;  %v2552_v35 = vcvt.s32.f32 %v2545_v43  ;;  %v2693_v59 = vshll.u32 %v6628_v3, %v2690_v32  ;;  %v2696_v53 = vshll.u32 %v6629_v22, %v2690_v32 }
 0x222   : > { %v2675_v18 = vsel %vm2665_vm14, nan, %v2674_v60  ;;  %v2550_v21 = vand.u32 2147483647, %v2549_v1  ;;  %v7766_v52 = vshrl.u32 %v2840_v5, 30  ;;  %v2699_v31 = vshll.u32 %v6630_v26, %v2690_v32 }
 0x223   : > { %5359 = vst [vmem:[%s7475_s30 + $0x28] sm:$0xff] %v2675_v18  ;;  %v2700_v13 = vshrl.u32 %v6631_v28, %v2691_v51  ;;  %v2702_v34 = vshll.u32 %v6631_v28, %v2690_v32  ;;  %v2703_v57 = vshrl.u32 %v6632_v30, %v2691_v51  ;;  %v2706_v29 = vshrl.u32 %v6633_v8, %v2691_v51 }
 0x224   : > { %v2553_v44 = vmul.f32 %v2552_v35, %v2550_v21  ;;  %v2842_v61 = vshll.u32 %v7766_v52, 30  ;;  %v2689_v25 = vshrl.u32 %v2688_v11, 5  ;;  %v2695_v33 = vor.u32 %v2694_v7, %v2693_v59 }
 0x225   : > { %v2698_v0 = vor.u32 %v2697_v58, %v2696_v53  ;;  %v2701_v2 = vor.u32 %v2700_v13, %v2699_v31  ;;  %v2704_v46 = vor.u32 %v2703_v57, %v2702_v34  ;;  %v2705_v63 = vshll.u32 %v6632_v30, %v2690_v32  ;;  %v7793_v58 = vpop.f32.mrb[15].mxu0 }
 0x226   : > { %v2554_v41 = vxor.u32 2147483648, %v2553_v44  ;;  %v7776_v42 = vand.u32 3, %v2559_v9  ;;  %v7778_v49 = vsub.s32 %v2839_v19, %v2842_v61  ;;  %v7780_v43 = vshll.u32 %v2684_v54, 8 }
 0x227   : > { %v2985_v4 = vand.u32 2147483647, %v7660_v10  ;;  %v2692_v11 = vshrl.u32 %v6628_v3, %v2691_v51  ;;  %v2707_v45 = vor.u32 %v2706_v29, %v2705_v63  ;;  %v2988_v62 = vand.u32 2139095040, %v7660_v10 }
 0x228   : > { %v2555_v23 = vsel %vm2472_vm6, %v2554_v41, %v2553_v44  ;;  %v2845_v1 = vsub.s32 0, %v7778_v49  ;;  %vm2708_vm3 = vcmp.lt.s32.totalorder %v2689_v25, 1  ;;  %vm2711_vm4 = vcmp.lt.s32.totalorder %v2689_v25, 4 }
 0x229   : > { %v2558_v32 = vsel %vm7723_vm11, %v7261_v36, %v2555_v23  ;;  %vm2781_vm5 = vcmp.lt.s32.totalorder %v7580_v48, 0  ;;  %v2713_v19 = vsel %vm2711_vm4, %v2701_v2, 2102212464  ;;  %v2716_v9 = vsel %vm2708_vm3, %v2695_v33, %v2698_v0 }
 0x22a   : > { %6456 = vcosq.f32 %v2558_v32  ;;  %v2717_v54 = vsel %vm2711_vm4, %v2704_v46, 920167782  ;;  %v5498_v51 = vmin.u32 %v2845_v1, %v7778_v49  ;;  %vm2709_vm6 = vcmp.lt.s32.totalorder %v2689_v25, 2 }
 0x22b   : > { %6458 = vsinq.f32 %v2558_v32  ;;  %vm2710_vm7 = vcmp.lt.s32.totalorder %v2689_v25, 3  ;;  %v2712_v60 = vsel %vm2708_vm3, %v2692_v11, %v2695_v33  ;;  %v2720_v7 = vsel %vm2708_vm3, %v2698_v0, %v2701_v2 }
 0x22c   : > { %v2718_v5 = vsel %vm2710_vm7, %v2701_v2, %v2717_v54  ;;  %v2721_v24 = vsel %vm2711_vm4, %v2707_v45, 1326507024  ;;  %v2847_v18 = vclz %v5498_v51  ;;  %v2714_v21 = vsel %vm2710_vm7, %v2698_v0, %v2713_v19  ;;  %v7813_v0 = vpop.f32.mrb[14].mxu1 }
 0x22d   : > { %v2719_v35 = vsel %vm2709_vm6, %v2716_v9, %v2718_v5  ;;  %v2722_v59 = vsel %vm2710_vm7, %v2704_v46, %v2721_v24  ;;  %vm7798_vm8 = vcmp.le.f32.partialorder %v2779_v12, 0.7853982  ;;  %v2989_v34 = vshrl.u32 %v2988_v62, 23 }
 0x22e   : > { %v2723_v31 = vsel %vm2709_vm6, %v2720_v7, %v2722_v59  ;;  %v7804_v13 = vmul.u32.u64.low %v7780_v43, %v2719_v35  ;;  %v7805_v44 = vmul.u32.u64.high %v7780_v43, %v2719_v35, %v7804_v13  ;;  %v5499_v57 = vadd.s32 4294967294, %v2847_v18 }
 0x22f   : > { %v2865_v29 = vsub.s32 4, %v7766_v52  ;;  %v7810_v61 = vmul.u32.u64.low %v7780_v43, %v2723_v31  ;;  %v7811_v33 = vmul.u32.u64.high %v7780_v43, %v2723_v31, %v7810_v61  ;;  %vm2564_vm9 = vcmp.lt.s32.totalorder %v7776_v42, 2 }
 0x230   : > { %vm2565_vm10 = vcmp.eq.s32.totalorder %v7776_v42, 0  ;;  %v5505_v12 = vadd.s32 4294967169, %v2989_v34  ;;  %v7819_v41 = vadd.f32 %v7229_v14, %v7343_v17  ;;  %v7823_v2 = vadd.f32 %v7337_v56, %v7468_v16 }
 0x231   : > { %vm5500_vm11 = vcmp.lt.s32.totalorder %v5499_v57, 0  ;;  %v2715_v46 = vsel %vm2709_vm6, %v2712_v60, %v2714_v21  ;;  %v7828_v63 = vadd.f32 %v7449_v39, %v7563_v20  ;;  %v7832_v23 = vadd.f32 %v7557_v47, %v7650_v37 }
 0x232   : > { %v2850_v11 = vsel %vm5500_vm11, 0, %v5499_v57  ;;  %v2734_v45 = vadd.s32 1, %v7805_v44  ;;  %v2992_v14 = vand.u32 8388607, %v2985_v4  ;;  %v2995_v17 = vadd.s32 1, %v5505_v12 }
 0x233   : > { %v2835_v56 = vadd.s32 %v7730_v50, %v7739_v6  ;;  %v2851_v16 = vsub.s32 32, %v2850_v11  ;;  %v2855_v25 = vsub.s32 4294967266, %v2850_v11  ;;  %v2866_v39 = vsel %vm2781_vm5, %v2865_v29, %v7766_v52 }
 0x234   : > { %v6457_v20 = vpop.eup %6456  ;;  %v2852_v47 = vshll.u32 %v7778_v49, %v2850_v11  ;;  %v2731_v37 = vmul.u32 %v7780_v43, %v2715_v46  ;;  %vm2733_vm12 = vc.u32 %v7811_v33, %v7804_v13  ;;  %vm2996_vm13 = vcmp.gt.s32.totalorder %v2995_v17, 0 }
 0x235   : > { %v6459_v62 = vpop.eup %6458  ;;  %v2569_v32 = vxor.u32 2147483648, %v6457_v20  ;;  %v2853_v1 = vshrl.u32 %v2835_v56, %v2851_v16  ;;  %v2856_v19 = vadd.s32 127, %v2855_v25  ;;  %v2735_v50 = vsel %vm2733_vm12, %v2734_v45, %v7805_v44 }
 0x236   : > { %v2566_v6 = vxor.u32 2147483648, %v6459_v62  ;;  %vm2568_vm14 = vcmp.eq.s32.totalorder %v7776_v42, 2  ;;  %v2736_v9 = vadd.s32 %v2735_v50, %v2731_v37  ;;  %v2997_v52 = vsel %vm2996_vm13, %v2995_v17, 0 }
 0x237   : > { %v2570_v54 = vsel %vm2568_vm14, %v2569_v32, %v6459_v62  ;;  %v2854_v49 = vor.u32 %v2853_v1, %v2852_v47  ;;  %v2857_v51 = vshll.u32 %v2856_v19, 23  ;;  %v2868_v43 = vsel %vm7798_vm8, 0, %v2866_v39 }
 0x238   : > { %v2567_v60 = vsel %vm2565_vm10, %v6457_v20, %v2566_v6  ;;  %v2737_v5 = vadd.s32 536870912, %v2736_v9  ;;  %v2993_v7 = vor.u32 8388608, %v2992_v14  ;;  %v2999_v24 = vand.u32 31, %v2997_v52 }
 0x239   : > { %vm2562_vm15 = vweird.f32 %v7261_v36  ;;  %v2571_v18 = vsel %vm2564_vm9, %v2567_v60, %v2570_v54  ;;  %v2858_v21 = vor.u32 4788187, %v2857_v51  ;;  %v2861_v34 = vcvt.s32.f32 %v2854_v49 }
 0x23a   : > { %v2572_v35 = vsel %vm2562_vm15, nan, %v2571_v18  ;;  %v7855_v59 = vshrl.u32 %v2737_v5, 30  ;;  %v3000_v31 = vsub.s32 32, %v2999_v24  ;;  %v7858_v57 = vand.u32 3, %v2868_v43 }
 0x23b   : > { %5358 = vst [vmem:[%s7475_s30 + $0x20] sm:$0xff] %v2572_v35  ;;  %v2859_v44 = vand.u32 2147483647, %v2858_v21  ;;  %v2885_v29 = vand.u32 2139095040, %v7819_v41  ;;  %v7863_v36 = vshll.u32 %v2993_v7, 8  ;;  %v2998_v56 = vshrl.u32 %v2997_v52, 5 }
 0x23c   : > { %v2739_v61 = vshll.u32 %v7855_v59, 30  ;;  %v3003_v12 = vshrl.u32 %v6629_v22, %v3000_v31  ;;  %v2882_v42 = vand.u32 2147483647, %v7819_v41  ;;  %v3006_v11 = vshrl.u32 %v6630_v26, %v3000_v31 }
 0x23d   : > { %v2862_v46 = vmul.f32 %v2861_v34, %v2859_v44  ;;  %v3009_v45 = vshrl.u32 %v6631_v28, %v3000_v31  ;;  %v3012_v14 = vshrl.u32 %v6632_v30, %v3000_v31  ;;  %v3002_v16 = vshll.u32 %v6628_v3, %v2999_v24 }
 0x23e   : > { %v7869_v17 = vsub.s32 %v2736_v9, %v2739_v61  ;;  %v3005_v25 = vshll.u32 %v6629_v22, %v2999_v24  ;;  %v3008_v20 = vshll.u32 %v6630_v26, %v2999_v24  ;;  %v3011_v47 = vshll.u32 %v6631_v28, %v2999_v24 }
 0x23f   : > { %v2863_v39 = vxor.u32 2147483648, %v2862_v46  ;;  %v2886_v37 = vshrl.u32 %v2885_v29, 23  ;;  %v3004_v32 = vor.u32 %v3003_v12, %v3002_v16  ;;  %v3015_v19 = vshrl.u32 %v6633_v8, %v3000_v31  ;;  %v7900_v16 = vpop.f32.mrb[15].mxu1 }
 0x240   : > { %v2742_v62 = vsub.s32 0, %v7869_v17  ;;  %v3007_v1 = vor.u32 %v3006_v11, %v3005_v25  ;;  %v3010_v6 = vor.u32 %v3009_v45, %v3008_v20  ;;  %v3013_v9 = vor.u32 %v3012_v14, %v3011_v47 }
 0x241   : > { %v2864_v50 = vsel %vm2781_vm5, %v2863_v39, %v2862_v46  ;;  %v3014_v52 = vshll.u32 %v6632_v30, %v2999_v24  ;;  %v2762_v51 = vsub.s32 4, %v7855_v59  ;;  %vm3017_vm0 = vcmp.lt.s32.totalorder %v2998_v56, 1  ;;  %v7893_v46 = vpop.f32.mrb[16].mxu0 }
 0x242   : > { %v2867_v54 = vsel %vm7798_vm8, %v7580_v48, %v2864_v50  ;;  %v5494_v49 = vmin.u32 %v2742_v62, %v7869_v17  ;;  %v3001_v43 = vshrl.u32 %v6628_v3, %v3000_v31  ;;  %vm3019_vm1 = vcmp.lt.s32.totalorder %v2998_v56, 3 }
 0x243   : > { %6460 = vcosq.f32 %v2867_v54  ;;  %v3016_v60 = vor.u32 %v3015_v19, %v3014_v52  ;;  %vm3020_vm2 = vcmp.lt.s32.totalorder %v2998_v56, 4  ;;  %v3025_v7 = vsel %vm3017_vm0, %v3004_v32, %v3007_v1 }
 0x244   : > { %6462 = vsinq.f32 %v2867_v54  ;;  %v2744_v5 = vclz %v5494_v49  ;;  %v3022_v24 = vsel %vm3020_vm2, %v3010_v6, 2102212464  ;;  %v3026_v18 = vsel %vm3020_vm2, %v3013_v9, 920167782 }
 0x245   : > { %v3029_v53 = vsel %vm3017_vm0, %v3007_v1, %v3010_v6  ;;  %v3030_v21 = vsel %vm3020_vm2, %v3016_v60, 1326507024  ;;  %vm3018_vm3 = vcmp.lt.s32.totalorder %v2998_v56, 2  ;;  %v3027_v44 = vsel %vm3019_vm1, %v3010_v6, %v3026_v18 }
 0x246   : > { %v5495_v35 = vadd.s32 4294967294, %v2744_v5  ;;  %v3031_v34 = vsel %vm3019_vm1, %v3013_v9, %v3030_v21  ;;  %v3021_v31 = vsel %vm3017_vm0, %v3001_v43, %v3004_v32  ;;  %v3028_v29 = vsel %vm3018_vm3, %v3025_v7, %v3027_v44 }
 0x247   : > { %v3032_v61 = vsel %vm3018_vm3, %v3029_v53, %v3031_v34  ;;  %v5501_v12 = vadd.s32 4294967169, %v2886_v37  ;;  %v3023_v11 = vsel %vm3019_vm1, %v3007_v1, %v3022_v24  ;;  %vm2871_vm5 = vweird.f32 %v7580_v48 }
 0x248   : > { %vm5496_vm4 = vcmp.lt.s32.totalorder %v5495_v35, 0  ;;  %v7897_v45 = vmul.u32.u64.low %v7863_v36, %v3032_v61  ;;  %v7898_v14 = vmul.u32.u64.high %v7863_v36, %v3032_v61, %v7897_v45  ;;  %vm2678_vm6 = vcmp.lt.s32.totalorder %v7584_v40, 0 }
 0x249   : > { %v2747_v25 = vsel %vm5496_vm4, 0, %v5495_v35  ;;  %v7903_v39 = vmul.u32.u64.low %v7863_v36, %v3028_v29  ;;  %v7904_v20 = vmul.u32.u64.high %v7863_v36, %v3028_v29, %v7903_v39  ;;  %v2892_v47 = vadd.s32 1, %v5501_v12 }
 0x24a   : > { %v2732_v37 = vadd.s32 %v7804_v13, %v7811_v33  ;;  %v2748_v62 = vsub.s32 32, %v2747_v25  ;;  %v2752_v32 = vsub.s32 4294967266, %v2747_v25  ;;  %vm2873_vm7 = vcmp.lt.s32.totalorder %v7858_v57, 2 }
 0x24b   : > { %vm7914_vm8 = vcmp.le.f32.partialorder %v2676_v38, 0.7853982  ;;  %v3024_v19 = vsel %vm3018_vm3, %v3021_v31, %v3023_v11  ;;  %vm2893_vm9 = vcmp.gt.s32.totalorder %v2892_v47, 0  ;;  %v2749_v50 = vshll.u32 %v7869_v17, %v2747_v25 }
 0x24c   : > { %v2750_v6 = vshrl.u32 %v2732_v37, %v2748_v62  ;;  %v2753_v9 = vadd.s32 127, %v2752_v32  ;;  %vm3042_vm10 = vc.u32 %v7898_v14, %v7903_v39  ;;  %v2763_v33 = vsel %vm2678_vm6, %v2762_v51, %v7855_v59 }
 0x24d   : > { %v6461_v13 = vpop.eup %6460  ;;  %v3043_v38 = vadd.s32 1, %v7904_v20  ;;  %v2889_v52 = vand.u32 8388607, %v2882_v42  ;;  %v2894_v56 = vsel %vm2893_vm9, %v2892_v47, 0  ;;  %v3040_v60 = vmul.u32 %v7863_v36, %v3024_v19 }
 0x24e   : > { %v6463_v54 = vpop.eup %6462  ;;  %v2878_v49 = vxor.u32 2147483648, %v6461_v13  ;;  %v2751_v43 = vor.u32 %v2750_v6, %v2749_v50  ;;  %v2754_v17 = vshll.u32 %v2753_v9, 23  ;;  %vm2877_vm11 = vcmp.eq.s32.totalorder %v7858_v57, 2 }
 0x24f   : > { %v2875_v5 = vxor.u32 2147483648, %v6463_v54  ;;  %v3044_v7 = vsel %vm3042_vm10, %v3043_v38, %v7904_v20  ;;  %v2896_v24 = vand.u32 31, %v2894_v56  ;;  %vm2874_vm12 = vcmp.eq.s32.totalorder %v7858_v57, 0 }
 0x250   : > { %v2879_v59 = vsel %vm2877_vm11, %v2878_v49, %v6463_v54  ;;  %v2755_v51 = vor.u32 4788187, %v2754_v17  ;;  %v3045_v18 = vadd.s32 %v3044_v7, %v3040_v60  ;;  %v2765_v21 = vsel %vm7914_vm8, 0, %v2763_v33 }
 0x251   : > { %v2876_v53 = vsel %vm2874_vm12, %v6461_v13, %v2875_v5  ;;  %v2890_v35 = vor.u32 8388608, %v2889_v52  ;;  %v2897_v44 = vsub.s32 32, %v2896_v24  ;;  %v2758_v31 = vcvt.s32.f32 %v2751_v43 }
 0x252   : > { %v2880_v36 = vsel %vm2873_vm7, %v2876_v53, %v2879_v59  ;;  %v2756_v34 = vand.u32 2147483647, %v2755_v51  ;;  %v3046_v29 = vadd.s32 536870912, %v3045_v18  ;;  %v2899_v12 = vshll.u32 %v6628_v3, %v2896_v24  ;;  %v7965_v53 = vpop.f32.mrb[17].mxu0 }
 0x253   : > { %v2881_v61 = vsel %vm2871_vm5, nan, %v2880_v36  ;;  %v2900_v11 = vshrl.u32 %v6629_v22, %v2897_v44  ;;  %v2903_v45 = vshrl.u32 %v6630_v26, %v2897_v44  ;;  %v2902_v47 = vshll.u32 %v6629_v22, %v2896_v24 }
 0x254   : > { %5361 = vst [vmem:[%s7475_s30 + $0x38] sm:$0xff] %v2881_v61  ;;  %v2759_v25 = vmul.f32 %v2758_v31, %v2756_v34  ;;  %v7942_v20 = vshrl.u32 %v3046_v29, 30  ;;  %v2906_v57 = vshrl.u32 %v6631_v28, %v2897_v44  ;;  %v2895_v37 = vshrl.u32 %v2894_v56, 5 }
 0x255   : > { %v2905_v62 = vshll.u32 %v6630_v26, %v2896_v24  ;;  %v2908_v48 = vshll.u32 %v6631_v28, %v2896_v24  ;;  %v2909_v32 = vshrl.u32 %v6632_v30, %v2897_v44  ;;  %v2901_v6 = vor.u32 %v2900_v11, %v2899_v12 }
 0x256   : > { %v2760_v19 = vxor.u32 2147483648, %v2759_v25  ;;  %v3048_v50 = vshll.u32 %v7942_v20, 30  ;;  %v2904_v9 = vor.u32 %v2903_v45, %v2902_v47  ;;  %v2911_v38 = vshll.u32 %v6632_v30, %v2896_v24  ;;  %v7974_v47 = vpop.f32.mrb[16].mxu1 }
 0x257   : > { %v2907_v13 = vor.u32 %v2906_v57, %v2905_v62  ;;  %v2910_v33 = vor.u32 %v2909_v32, %v2908_v48  ;;  %v2912_v52 = vshrl.u32 %v6633_v8, %v2897_v44  ;;  %v7954_v54 = vand.u32 3, %v2765_v21 }
 0x258   : > { %v2761_v56 = vsel %vm2678_vm6, %v2760_v19, %v2759_v25  ;;  %v7956_v49 = vsub.s32 %v3045_v18, %v3048_v50  ;;  %v2898_v17 = vshrl.u32 %v6628_v3, %v2897_v44  ;;  %v2930_v5 = vshll.u32 %v2890_v35, 8 }
 0x259   : > { %v2764_v43 = vsel %vm7914_vm8, %v7584_v40, %v2761_v56  ;;  %v2913_v60 = vor.u32 %v2912_v52, %v2911_v38  ;;  %vm2914_vm13 = vcmp.lt.s32.totalorder %v2895_v37, 1  ;;  %vm2917_vm14 = vcmp.lt.s32.totalorder %v2895_v37, 4 }
 0x25a   : > { %6464 = vcosq.f32 %v2764_v43  ;;  %v3051_v7 = vsub.s32 0, %v7956_v49  ;;  %v2919_v24 = vsel %vm2917_vm14, %v2907_v13, 2102212464  ;;  %v2922_v59 = vsel %vm2914_vm13, %v2901_v6, %v2904_v9 }
 0x25b   : > { %6466 = vsinq.f32 %v2764_v43  ;;  %v2923_v51 = vsel %vm2917_vm14, %v2910_v33, 920167782  ;;  %vm2915_vm15 = vcmp.lt.s32.totalorder %v2895_v37, 2  ;;  %vm2916_vm0 = vcmp.lt.s32.totalorder %v2895_v37, 3 }
 0x25c   : > { %v5506_v18 = vmin.u32 %v3051_v7, %v7956_v49  ;;  %v3194_v1 = vand.u32 2139095040, %v7823_v2  ;;  %v2918_v21 = vsel %vm2914_vm13, %v2898_v17, %v2901_v6  ;;  %v2924_v44 = vsel %vm2916_vm0, %v2907_v13, %v2923_v51 }
 0x25d   : > { %v2926_v35 = vsel %vm2914_vm13, %v2904_v9, %v2907_v13  ;;  %v2927_v36 = vsel %vm2917_vm14, %v2913_v60, 1326507024  ;;  %v2920_v31 = vsel %vm2916_vm0, %v2904_v9, %v2919_v24  ;;  %v2925_v29 = vsel %vm2915_vm15, %v2922_v59, %v2924_v44 }
 0x25e   : > { %v3053_v34 = vclz %v5506_v18  ;;  %v2928_v61 = vsel %vm2916_vm0, %v2910_v33, %v2927_v36  ;;  %v3071_v12 = vsub.s32 4, %v7942_v20  ;;  %v3195_v32 = vshrl.u32 %v3194_v1, 23 }
 0x25f   : > { %v2929_v11 = vsel %vm2915_vm15, %v2926_v35, %v2928_v61  ;;  %v7970_v45 = vmul.u32.u64.low %v2930_v5, %v2925_v29  ;;  %v7971_v25 = vmul.u32.u64.high %v2930_v5, %v2925_v29, %v7970_v45  ;;  %vm2768_vm1 = vweird.f32 %v7584_v40 }
 0x260   : > { %v5507_v57 = vadd.s32 4294967294, %v3053_v34  ;;  %v7976_v62 = vmul.u32.u64.low %v2930_v5, %v2929_v11  ;;  %v7977_v48 = vmul.u32.u64.high %v2930_v5, %v2929_v11, %v7976_v62  ;;  %vm2770_vm2 = vcmp.lt.s32.totalorder %v7954_v54, 2 }
 0x261   : > { %vm2987_vm3 = vcmp.lt.s32.totalorder %v7660_v10, 0  ;;  %v2921_v19 = vsel %vm2915_vm15, %v2918_v21, %v2920_v31  ;;  %vm2771_vm4 = vcmp.eq.s32.totalorder %v7954_v54, 0  ;;  %vm2774_vm5 = vcmp.eq.s32.totalorder %v7954_v54, 2 }
 0x262   : > { %vm5508_vm6 = vcmp.lt.s32.totalorder %v5507_v57, 0  ;;  %v5513_v50 = vadd.s32 4294967169, %v3195_v32  ;;  %v3041_v6 = vadd.s32 %v7903_v39, %v7898_v14  ;;  %v2940_v13 = vadd.s32 1, %v7971_v25 }
 0x263   : > { %v3056_v9 = vsel %vm5508_vm6, 0, %v5507_v57  ;;  %v3191_v33 = vand.u32 2147483647, %v7823_v2  ;;  %v3072_v37 = vsel %vm2987_vm3, %v3071_v12, %v7942_v20  ;;  %v2937_v43 = vmul.u32 %v2930_v5, %v2921_v19 }
 0x264   : > { %v6465_v38 = vpop.eup %6464  ;;  %v3057_v52 = vsub.s32 32, %v3056_v9  ;;  %v3061_v56 = vsub.s32 4294967266, %v3056_v9  ;;  %v3058_v7 = vshll.u32 %v7956_v49, %v3056_v9  ;;  %vm2939_vm7 = vc.u32 %v7977_v48, %v7970_v45 }
 0x265   : > { %v6467_v17 = vpop.eup %6466  ;;  %v2775_v60 = vxor.u32 2147483648, %v6465_v38  ;;  %v3201_v14 = vadd.s32 1, %v5513_v50  ;;  %v2941_v51 = vsel %vm2939_vm7, %v2940_v13, %v7971_v25  ;;  %v3198_v20 = vand.u32 8388607, %v3191_v33 }
 0x266   : > { %v2772_v39 = vxor.u32 2147483648, %v6467_v17  ;;  %v3059_v24 = vshrl.u32 %v3041_v6, %v3057_v52  ;;  %v3062_v59 = vadd.s32 127, %v3061_v56  ;;  %v2942_v1 = vadd.s32 %v2941_v51, %v2937_v43 }
 0x267   : > { %v2776_v18 = vsel %vm2774_vm5, %v2775_v60, %v6467_v17  ;;  %vm3202_vm8 = vcmp.gt.s32.totalorder %v3201_v14, 0  ;;  %v3091_v31 = vand.u32 2139095040, %v7828_v63  ;;  %vm8010_vm9 = vcmp.le.f32.partialorder %v2985_v4, 0.7853982 }
 0x268   : > { %v2773_v49 = vsel %vm2771_vm4, %v6465_v38, %v2772_v39  ;;  %v3060_v5 = vor.u32 %v3059_v24, %v3058_v7  ;;  %v3063_v21 = vshll.u32 %v3062_v59, 23  ;;  %v3203_v44 = vsel %vm3202_vm8, %v3201_v14, 0 }
 0x269   : > { %v2777_v35 = vsel %vm2770_vm2, %v2773_v49, %v2776_v18  ;;  %v2943_v36 = vadd.s32 536870912, %v2942_v1  ;;  %v3205_v34 = vand.u32 31, %v3203_v44  ;;  %v3074_v62 = vsel %vm8010_vm9, 0, %v3072_v37 }
 0x26a   : > { %v2778_v29 = vsel %vm2768_vm1, nan, %v2777_v35  ;;  %v3064_v61 = vor.u32 4788187, %v3063_v21  ;;  %v3067_v57 = vcvt.s32.f32 %v3060_v5  ;;  %v3199_v32 = vor.u32 8388608, %v3198_v20 }
 0x26b   : > { %5360 = vst [vmem:[%s7475_s30 + $0x30] sm:$0xff] %v2778_v29  ;;  %v8014_v11 = vshrl.u32 %v2943_v36, 30  ;;  %v3206_v25 = vsub.s32 32, %v3205_v34  ;;  %v3208_v19 = vshll.u32 %v6628_v3, %v3205_v34  ;;  %v3092_v6 = vshrl.u32 %v3091_v31, 23 }
 0x26c   : > { %v3065_v54 = vand.u32 2147483647, %v3064_v61  ;;  %v3211_v56 = vshll.u32 %v6629_v22, %v3205_v34  ;;  %v3214_v37 = vshll.u32 %v6630_v26, %v3205_v34  ;;  %v3204_v60 = vshrl.u32 %v3203_v44, 5 }
 0x26d   : > { %v2945_v40 = vshll.u32 %v8014_v11, 30  ;;  %v3209_v50 = vshrl.u32 %v6629_v22, %v3206_v25  ;;  %v3212_v9 = vshrl.u32 %v6630_v26, %v3206_v25  ;;  %v3215_v13 = vshrl.u32 %v6631_v28, %v3206_v25 }
 0x26e   : > { %v3068_v4 = vmul.f32 %v3067_v57, %v3065_v54  ;;  %v3218_v38 = vshrl.u32 %v6632_v30, %v3206_v25  ;;  %v3221_v43 = vshrl.u32 %v6633_v8, %v3206_v25  ;;  %v3217_v7 = vshll.u32 %v6631_v28, %v3205_v34  ;;  %v8045_v57 = vpop.f32.mrb[18].mxu0 }
 0x26f   : > { %v8024_v52 = vsub.s32 %v2942_v1, %v2945_v40  ;;  %v3220_v14 = vshll.u32 %v6632_v30, %v3205_v34  ;;  %v3210_v24 = vor.u32 %v3209_v50, %v3208_v19  ;;  %v3213_v59 = vor.u32 %v3212_v9, %v3211_v56  ;;  %v8047_v19 = vpop.f32.mrb[17].mxu1 }
 0x270   : > { %v3069_v17 = vxor.u32 2147483648, %v3068_v4  ;;  %v3216_v51 = vor.u32 %v3215_v13, %v3214_v37  ;;  %v8034_v1 = vand.u32 3, %v3074_v62  ;;  %v3219_v20 = vor.u32 %v3218_v38, %v3217_v7 }
 0x271   : > { %v2948_v39 = vsub.s32 0, %v8024_v52  ;;  %v3222_v49 = vor.u32 %v3221_v43, %v3220_v14  ;;  %v8040_v44 = vshll.u32 %v3199_v32, 8  ;;  %v5509_v35 = vadd.s32 4294967169, %v3092_v6 }
 0x272   : > { %v3070_v18 = vsel %vm2987_vm3, %v3069_v17, %v3068_v4  ;;  %v3207_v36 = vshrl.u32 %v6628_v3, %v3206_v25  ;;  %vm3223_vm10 = vcmp.lt.s32.totalorder %v3204_v60, 1  ;;  %vm3226_vm11 = vcmp.lt.s32.totalorder %v3204_v60, 4 }
 0x273   : > { %v3073_v5 = vsel %vm8010_vm9, %v7660_v10, %v3070_v18  ;;  %v5502_v21 = vmin.u32 %v2948_v39, %v8024_v52  ;;  %v3228_v31 = vsel %vm3226_vm11, %v3216_v51, 2102212464  ;;  %v3231_v29 = vsel %vm3223_vm10, %v3210_v24, %v3213_v59 }
 0x274   : > { %6468 = vcosq.f32 %v3073_v5  ;;  %vm3225_vm12 = vcmp.lt.s32.totalorder %v3204_v60, 3  ;;  %v3232_v61 = vsel %vm3226_vm11, %v3219_v20, 920167782  ;;  %v3235_v12 = vsel %vm3223_vm10, %v3213_v59, %v3216_v51 }
 0x275   : > { %6470 = vsinq.f32 %v3073_v5  ;;  %v2950_v34 = vclz %v5502_v21  ;;  %v3236_v54 = vsel %vm3226_vm11, %v3222_v49, 1326507024  ;;  %vm3224_vm13 = vcmp.lt.s32.totalorder %v3204_v60, 2 }
 0x276   : > { %v3233_v32 = vsel %vm3225_vm12, %v3216_v51, %v3232_v61  ;;  %v3237_v40 = vsel %vm3225_vm12, %v3219_v20, %v3236_v54  ;;  %v3227_v25 = vsel %vm3223_vm10, %v3207_v36, %v3210_v24  ;;  %v3229_v50 = vsel %vm3225_vm12, %v3213_v59, %v3228_v31 }
 0x277   : > { %v5503_v62 = vadd.s32 4294967294, %v2950_v34  ;;  %v3234_v6 = vsel %vm3224_vm13, %v3231_v29, %v3233_v32  ;;  %v3238_v4 = vsel %vm3224_vm13, %v3235_v12, %v3237_v40  ;;  %vm8054_vm14 = vcmp.le.f32.partialorder %v2882_v42, 0.7853982 }
 0x278   : > { %v8059_v13 = vmul.u32.u64.low %v8040_v44, %v3238_v4  ;;  %v8060_v38 = vmul.u32.u64.high %v8040_v44, %v3238_v4, %v8059_v13  ;;  %v3098_v56 = vadd.s32 1, %v5509_v35  ;;  %v2968_v43 = vsub.s32 4, %v8014_v11 }
 0x279   : > { %vm5504_vm15 = vcmp.lt.s32.totalorder %v5503_v62, 0  ;;  %v8064_v17 = vmul.u32.u64.low %v8040_v44, %v3234_v6  ;;  %v8065_v7 = vmul.u32.u64.high %v8040_v44, %v3234_v6, %v8064_v17  ;;  %vm3077_vm0 = vweird.f32 %v7660_v10 }
 0x27a   : > { %v2953_v37 = vsel %vm5504_vm15, 0, %v5503_v62  ;;  %v2938_v42 = vadd.s32 %v7970_v45, %v7977_v48  ;;  %vm3099_vm1 = vcmp.gt.s32.totalorder %v3098_v56, 0  ;;  %vm3079_vm2 = vcmp.lt.s32.totalorder %v8034_v1, 2 }
 0x27b   : > { %v2954_v14 = vsub.s32 32, %v2953_v37  ;;  %v2958_v39 = vsub.s32 4294967266, %v2953_v37  ;;  %vm2884_vm3 = vcmp.lt.s32.totalorder %v7819_v41, 0  ;;  %v3230_v24 = vsel %vm3224_vm13, %v3227_v25, %v3229_v50 }
 0x27c   : > { %v3100_v59 = vsel %vm3099_vm1, %v3098_v56, 0  ;;  %v2955_v51 = vshll.u32 %v8024_v52, %v2953_v37  ;;  %vm3248_vm4 = vc.u32 %v8060_v38, %v8064_v17  ;;  %v2969_v45 = vsel %vm2884_vm3, %v2968_v43, %v8014_v11 }
 0x27d   : > { %v2956_v18 = vshrl.u32 %v2938_v42, %v2954_v14  ;;  %v2959_v20 = vadd.s32 127, %v2958_v39  ;;  %v3249_v48 = vadd.s32 1, %v8065_v7  ;;  %v3088_v5 = vand.u32 2147483647, %v7828_v63 }
 0x27e   : > { %v6469_v49 = vpop.eup %6468  ;;  %v3102_v21 = vand.u32 31, %v3100_v59  ;;  %v3246_v52 = vmul.u32 %v8040_v44, %v3230_v24  ;;  %vm3083_vm5 = vcmp.eq.s32.totalorder %v8034_v1, 2  ;;  %vm3080_vm6 = vcmp.eq.s32.totalorder %v8034_v1, 0 }
 0x27f   : > { %v6471_v60 = vpop.eup %6470  ;;  %v3084_v35 = vxor.u32 2147483648, %v6469_v49  ;;  %v2957_v36 = vor.u32 %v2956_v18, %v2955_v51  ;;  %v2960_v34 = vshll.u32 %v2959_v20, 23  ;;  %v3250_v29 = vsel %vm3248_vm4, %v3249_v48, %v8065_v7 }
 0x280   : > { %v3081_v31 = vxor.u32 2147483648, %v6471_v60  ;;  %v3103_v61 = vsub.s32 32, %v3102_v21  ;;  %v3251_v54 = vadd.s32 %v3250_v29, %v3246_v52  ;;  %v2971_v32 = vsel %vm8054_vm14, 0, %v2969_v45 }
 0x281   : > { %v3085_v11 = vsel %vm3083_vm5, %v3084_v35, %v6471_v60  ;;  %v2961_v12 = vor.u32 4788187, %v2960_v34  ;;  %v3095_v40 = vand.u32 8388607, %v3088_v5  ;;  %v8090_v44 = vshrl.u32 %v3100_v59, 5 }
 0x282   : > { %v3082_v62 = vsel %vm3080_vm6, %v6469_v49, %v3081_v31  ;;  %v2964_v6 = vcvt.s32.f32 %v2957_v36  ;;  %v3252_v4 = vadd.s32 536870912, %v3251_v54  ;;  %v3106_v56 = vshrl.u32 %v6629_v22, %v3103_v61 }
 0x283   : > { %v3086_v25 = vsel %vm3079_vm2, %v3082_v62, %v3085_v11  ;;  %v2962_v50 = vand.u32 2147483647, %v2961_v12  ;;  %v3109_v37 = vshrl.u32 %v6630_v26, %v3103_v61  ;;  %v3112_v43 = vshrl.u32 %v6631_v28, %v3103_v61 }
 0x284   : > { %v3087_v13 = vsel %vm3077_vm0, nan, %v3086_v25  ;;  %v8100_v42 = vshrl.u32 %v3252_v4, 30  ;;  %v3105_v14 = vshll.u32 %v6628_v3, %v3102_v21  ;;  %v3111_v1 = vshll.u32 %v6630_v26, %v3102_v21 }
 0x285   : > { %5363 = vst [vmem:[%s7475_s30 + $0x48] sm:$0xff] %v3087_v13  ;;  %v2965_v7 = vmul.f32 %v2964_v6, %v2962_v50  ;;  %v3108_v39 = vshll.u32 %v6629_v22, %v3102_v21  ;;  %v3114_v24 = vshll.u32 %v6631_v28, %v3102_v21  ;;  %v3115_v10 = vshrl.u32 %v6632_v30, %v3103_v61  ;;  %v8133_v13 = vpop.f32.mrb[19].mxu0 }
 0x286   : > { %v3118_v59 = vshrl.u32 %v6633_v8, %v3103_v61  ;;  %v3254_v18 = vshll.u32 %v8100_v42, 30  ;;  %v3096_v20 = vor.u32 8388608, %v3095_v40  ;;  %v3113_v49 = vor.u32 %v3112_v43, %v3111_v1 }
 0x287   : > { %v2966_v51 = vxor.u32 2147483648, %v2965_v7  ;;  %v3107_v45 = vor.u32 %v3106_v56, %v3105_v14  ;;  %v3110_v48 = vor.u32 %v3109_v37, %v3108_v39  ;;  %v3116_v60 = vor.u32 %v3115_v10, %v3114_v24 }
 0x288   : > { %v3117_v35 = vshll.u32 %v6632_v30, %v3102_v21  ;;  %v8112_v34 = vand.u32 3, %v2971_v32  ;;  %v8114_v52 = vsub.s32 %v3251_v54, %v3254_v18  ;;  %v3400_v31 = vand.u32 2139095040, %v7832_v23  ;;  %v8148_v18 = vpop.f32.mrb[18].mxu1 }
 0x289   : > { %v2967_v36 = vsel %vm2884_vm3, %v2966_v51, %v2965_v7  ;;  %v3104_v11 = vshrl.u32 %v6628_v3, %v3103_v61  ;;  %vm3123_vm7 = vcmp.lt.s32.totalorder %v8090_v44, 4  ;;  %vm3120_vm8 = vcmp.lt.s32.totalorder %v8090_v44, 1 }
 0x28a   : > { %v2970_v29 = vsel %vm8054_vm14, %v7819_v41, %v2967_v36  ;;  %v3119_v12 = vor.u32 %v3118_v59, %v3117_v35  ;;  %v3257_v21 = vsub.s32 0, %v8114_v52  ;;  %v3125_v54 = vsel %vm3123_vm7, %v3113_v49, 2102212464 }
 0x28b   : > { %6472 = vcosq.f32 %v2970_v29  ;;  %v3128_v62 = vsel %vm3120_vm8, %v3107_v45, %v3110_v48  ;;  %v3129_v32 = vsel %vm3123_vm7, %v3116_v60, 920167782  ;;  %v3136_v9 = vshll.u32 %v3096_v20, 8 }
 0x28c   : > { %6474 = vsinq.f32 %v2970_v29  ;;  %v5514_v40 = vmin.u32 %v3257_v21, %v8114_v52  ;;  %vm3121_vm9 = vcmp.lt.s32.totalorder %v8090_v44, 2  ;;  %vm3122_vm10 = vcmp.lt.s32.totalorder %v8090_v44, 3 }
 0x28d   : > { %v3124_v61 = vsel %vm3120_vm8, %v3104_v11, %v3107_v45  ;;  %v3126_v25 = vsel %vm3122_vm10, %v3110_v48, %v3125_v54  ;;  %v3130_v50 = vsel %vm3122_vm10, %v3113_v49, %v3129_v32  ;;  %v3132_v6 = vsel %vm3120_vm8, %v3110_v48, %v3113_v49 }
 0x28e   : > { %v3133_v4 = vsel %vm3123_vm7, %v3119_v12, 1326507024  ;;  %v3259_v56 = vclz %v5514_v40  ;;  %v3131_v37 = vsel %vm3121_vm9, %v3128_v62, %v3130_v50  ;;  %v3401_v7 = vshrl.u32 %v3400_v31, 23 }
 0x28f   : > { %v3134_v43 = vsel %vm3122_vm10, %v3116_v60, %v3133_v4  ;;  %v8139_v1 = vmul.u32.u64.low %v3136_v9, %v3131_v37  ;;  %v8140_v39 = vmul.u32.u64.high %v3136_v9, %v3131_v37, %v8139_v1  ;;  %vm2976_vm11 = vcmp.lt.s32.totalorder %v8112_v34, 2 }
 0x290   : > { %v3135_v14 = vsel %vm3121_vm9, %v3132_v6, %v3134_v43  ;;  %vm3193_vm12 = vcmp.lt.s32.totalorder %v7823_v2, 0  ;;  %v5515_v24 = vadd.s32 4294967294, %v3259_v56  ;;  %v5521_v51 = vadd.s32 4294967169, %v3401_v7 }
 0x291   : > { %v8145_v10 = vmul.u32.u64.low %v3136_v9, %v3135_v14  ;;  %v8146_v59 = vmul.u32.u64.high %v3136_v9, %v3135_v14, %v8145_v10  ;;  %vm2974_vm13 = vweird.f32 %v7819_v41  ;;  %vm2980_vm14 = vcmp.eq.s32.totalorder %v8112_v34, 2 }
 0x292   : > { %v3127_v20 = vsel %vm3121_vm9, %v3124_v61, %v3126_v25  ;;  %v8156_v49 = vadd.f32 %v7637_v27, %v7719_v55  ;;  %v8160_v45 = vadd.f32 %v7717_v15, %v7813_v0  ;;  %vm5516_vm15 = vcmp.lt.s32.totalorder %v5515_v24, 0 }
 0x293   : > { %v3407_v48 = vadd.s32 1, %v5521_v51  ;;  %v8164_v60 = vadd.f32 %v7793_v58, %v7900_v16  ;;  %v8168_v35 = vadd.f32 %v7893_v46, %v7974_v47  ;;  %v3247_v44 = vadd.s32 %v8064_v17, %v8060_v38 }
 0x294   : > { %v3262_v36 = vsel %vm5516_vm15, 0, %v5515_v24  ;;  %v3146_v27 = vadd.s32 1, %v8140_v39  ;;  %v3397_v55 = vand.u32 2147483647, %v7832_v23  ;;  %v3277_v29 = vsub.s32 4, %v8100_v42 }
 0x295   : > { %v6473_v15 = vpop.eup %6472  ;;  %v3263_v0 = vsub.s32 32, %v3262_v36  ;;  %v3267_v31 = vsub.s32 4294967266, %v3262_v36  ;;  %v3143_v11 = vmul.u32 %v3136_v9, %v3127_v20  ;;  %v3264_v12 = vshll.u32 %v8114_v52, %v3262_v36 }
 0x296   : > { %v6475_v58 = vpop.eup %6474  ;;  %v2981_v16 = vxor.u32 2147483648, %v6473_v15  ;;  %vm3145_vm0 = vc.u32 %v8146_v59, %v8139_v1  ;;  %vm3408_vm1 = vcmp.gt.s32.totalorder %v3407_v48, 0  ;;  %vm2977_vm2 = vcmp.eq.s32.totalorder %v8112_v34, 0 }
 0x297   : > { %v2978_v46 = vxor.u32 2147483648, %v6475_v58  ;;  %v3265_v47 = vshrl.u32 %v3247_v44, %v3263_v0  ;;  %v3268_v38 = vadd.s32 127, %v3267_v31  ;;  %v3147_v17 = vsel %vm3145_vm0, %v3146_v27, %v8140_v39 }
 0x298   : > { %v2982_v21 = vsel %vm2980_vm14, %v2981_v16, %v6475_v58  ;;  %v3148_v54 = vadd.s32 %v3147_v17, %v3143_v11  ;;  %v3409_v62 = vsel %vm3408_vm1, %v3407_v48, 0  ;;  %v3404_v40 = vand.u32 8388607, %v3397_v55 }
 0x299   : > { %v2979_v32 = vsel %vm2977_vm2, %v6473_v15, %v2978_v46  ;;  %v3266_v9 = vor.u32 %v3265_v47, %v3264_v12  ;;  %v3269_v52 = vshll.u32 %v3268_v38, 23  ;;  %v3278_v25 = vsel %vm3193_vm12, %v3277_v29, %v8100_v42 }
 0x29a   : > { %v2983_v61 = vsel %vm2976_vm11, %v2979_v32, %v2982_v21  ;;  %v3149_v50 = vadd.s32 536870912, %v3148_v54  ;;  %v3411_v6 = vand.u32 31, %v3409_v62  ;;  %vm8194_vm3 = vcmp.le.f32.partialorder %v3191_v33, 0.7853982 }
 0x29b   : > { %v2984_v4 = vsel %vm2974_vm13, nan, %v2983_v61  ;;  %v3270_v56 = vor.u32 4788187, %v3269_v52  ;;  %v3273_v14 = vcvt.s32.f32 %v3266_v9  ;;  %v3280_v42 = vsel %vm8194_vm3, 0, %v3278_v25 }
 0x29c   : > { %5362 = vst [vmem:[%s7475_s30 + $0x40] sm:$0xff] %v2984_v4  ;;  %v8198_v43 = vshrl.u32 %v3149_v50, 30  ;;  %v3412_v34 = vsub.s32 32, %v3411_v6  ;;  %v3405_v39 = vor.u32 8388608, %v3404_v40  ;;  %v3410_v24 = vshrl.u32 %v3409_v62, 5 }
 0x29d   : > { %v3271_v7 = vand.u32 2147483647, %v3270_v56  ;;  %v3414_v10 = vshll.u32 %v6628_v3, %v3411_v6  ;;  %v3417_v27 = vshll.u32 %v6629_v22, %v3411_v6  ;;  %v3420_v15 = vshll.u32 %v6630_v26, %v3411_v6 }
 0x29e   : > { %v3151_v41 = vshll.u32 %v8198_v43, 30  ;;  %v3415_v51 = vshrl.u32 %v6629_v22, %v3412_v34  ;;  %v3418_v20 = vshrl.u32 %v6630_v26, %v3412_v34  ;;  %v3421_v48 = vshrl.u32 %v6631_v28, %v3412_v34 }
 0x29f   : > { %v3274_v33 = vmul.f32 %v3273_v14, %v3271_v7  ;;  %v3424_v44 = vshrl.u32 %v6632_v30, %v3412_v34  ;;  %v3427_v0 = vshrl.u32 %v6633_v8, %v3412_v34  ;;  %v8213_v29 = vand.u32 3, %v3280_v42 }
 0x2a0   : > { %v8208_v36 = vsub.s32 %v3148_v54, %v3151_v41  ;;  %v3423_v11 = vshll.u32 %v6631_v28, %v3411_v6  ;;  %v3426_v58 = vshll.u32 %v6632_v30, %v3411_v6  ;;  %v3416_v12 = vor.u32 %v3415_v51, %v3414_v10  ;;  %v8234_v10 = vpop.f32.mrb[20].mxu0 }
 0x2a1   : > { %v3275_v31 = vxor.u32 2147483648, %v3274_v33  ;;  %v3419_v46 = vor.u32 %v3418_v20, %v3417_v27  ;;  %v3422_v47 = vor.u32 %v3421_v48, %v3420_v15  ;;  %v8220_v54 = vshll.u32 %v3405_v39, 8  ;;  %v8241_v48 = vpop.f32.mrb[19].mxu1 }
 0x2a2   : > { %v3154_v16 = vsub.s32 0, %v8208_v36  ;;  %v3425_v17 = vor.u32 %v3424_v44, %v3423_v11  ;;  %v3428_v21 = vor.u32 %v3427_v0, %v3426_v58  ;;  %vm3429_vm4 = vcmp.lt.s32.totalorder %v3410_v24, 1 }
 0x2a3   : > { %v3276_v38 = vsel %vm3193_vm12, %v3275_v31, %v3274_v33  ;;  %v3297_v9 = vand.u32 2139095040, %v8156_v49  ;;  %v3413_v52 = vshrl.u32 %v6628_v3, %v3412_v34  ;;  %vm3430_vm5 = vcmp.lt.s32.totalorder %v3410_v24, 2 }
 0x2a4   : > { %v3279_v62 = vsel %vm8194_vm3, %v7823_v2, %v3276_v38  ;;  %v5510_v32 = vmin.u32 %v3154_v16, %v8208_v36  ;;  %vm3432_vm6 = vcmp.lt.s32.totalorder %v3410_v24, 4  ;;  %vm3090_vm7 = vcmp.lt.s32.totalorder %v7828_v63, 0 }
 0x2a5   : > { %6476 = vcosq.f32 %v3279_v62  ;;  %v3434_v61 = vsel %vm3432_vm6, %v3422_v47, 2102212464  ;;  %v3437_v25 = vsel %vm3429_vm4, %v3416_v12, %v3419_v46  ;;  %vm3431_vm8 = vcmp.lt.s32.totalorder %v3410_v24, 3 }
 0x2a6   : > { %6478 = vsinq.f32 %v3279_v62  ;;  %v3156_v40 = vclz %v5510_v32  ;;  %v3438_v50 = vsel %vm3432_vm6, %v3425_v17, 920167782  ;;  %v3441_v6 = vsel %vm3429_vm4, %v3419_v46, %v3422_v47 }
 0x2a7   : > { %v3442_v4 = vsel %vm3432_vm6, %v3428_v21, 1326507024  ;;  %v3433_v37 = vsel %vm3429_vm4, %v3413_v52, %v3416_v12  ;;  %v3439_v7 = vsel %vm3431_vm8, %v3422_v47, %v3438_v50  ;;  %v3435_v34 = vsel %vm3431_vm8, %v3419_v46, %v3434_v61 }
 0x2a8   : > { %v5511_v56 = vadd.s32 4294967294, %v3156_v40  ;;  %v3443_v14 = vsel %vm3431_vm8, %v3425_v17, %v3442_v4  ;;  %v3440_v42 = vsel %vm3430_vm5, %v3437_v25, %v3439_v7  ;;  %v3298_v41 = vshrl.u32 %v3297_v9, 23 }
 0x2a9   : > { %v3444_v39 = vsel %vm3430_vm5, %v3441_v6, %v3443_v14  ;;  %v3174_v51 = vsub.s32 4, %v8198_v43  ;;  %v8244_v27 = vmul.u32.u64.low %v8220_v54, %v3440_v42  ;;  %v8245_v15 = vmul.u32.u64.high %v8220_v54, %v3440_v42, %v8244_v27 }
 0x2aa   : > { %vm5512_vm9 = vcmp.lt.s32.totalorder %v5511_v56, 0  ;;  %v8238_v33 = vmul.u32.u64.low %v8220_v54, %v3444_v39  ;;  %v8239_v20 = vmul.u32.u64.high %v8220_v54, %v3444_v39, %v8238_v33  ;;  %v5517_v0 = vadd.s32 4294967169, %v3298_v41 }
 0x2ab   : > { %v3159_v44 = vsel %vm5512_vm9, 0, %v5511_v56  ;;  %vm3283_vm10 = vweird.f32 %v7823_v2  ;;  %v3144_v31 = vadd.s32 %v8139_v1, %v8146_v59  ;;  %v3436_v16 = vsel %vm3430_vm5, %v3433_v37, %v3435_v34 }
 0x2ac   : > { %v3160_v11 = vsub.s32 32, %v3159_v44  ;;  %v3164_v58 = vsub.s32 4294967266, %v3159_v44  ;;  %vm3285_vm11 = vcmp.lt.s32.totalorder %v8213_v29, 2  ;;  %vm8255_vm12 = vcmp.le.f32.partialorder %v3088_v5, 0.7853982 }
 0x2ad   : > { %v3294_v46 = vand.u32 2147483647, %v8156_v49  ;;  %v3304_v47 = vadd.s32 1, %v5517_v0  ;;  %v3161_v38 = vshll.u32 %v8208_v36, %v3159_v44  ;;  %vm3454_vm13 = vc.u32 %v8239_v20, %v8244_v27 }
 0x2ae   : > { %v3162_v17 = vshrl.u32 %v3144_v31, %v3160_v11  ;;  %v3165_v21 = vadd.s32 127, %v3164_v58  ;;  %v3175_v59 = vsel %vm3090_vm7, %v3174_v51, %v8198_v43  ;;  %v3452_v5 = vmul.u32 %v8220_v54, %v3436_v16 }
 0x2af   : > { %v6477_v1 = vpop.eup %6476  ;;  %v3455_v24 = vadd.s32 1, %v8245_v15  ;;  %vm3305_vm14 = vcmp.gt.s32.totalorder %v3304_v47, 0  ;;  %vm3289_vm15 = vcmp.eq.s32.totalorder %v8213_v29, 2  ;;  %vm3286_vm0 = vcmp.eq.s32.totalorder %v8213_v29, 0 }
 0x2b0   : > { %v6479_v62 = vpop.eup %6478  ;;  %v3290_v32 = vxor.u32 2147483648, %v6477_v1  ;;  %v3163_v9 = vor.u32 %v3162_v17, %v3161_v38  ;;  %v3166_v52 = vshll.u32 %v3165_v21, 23  ;;  %v3306_v36 = vsel %vm3305_vm14, %v3304_v47, 0 }
 0x2b1   : > { %v3287_v40 = vxor.u32 2147483648, %v6479_v62  ;;  %v3456_v61 = vsel %vm3454_vm13, %v3455_v24, %v8245_v15  ;;  %v3308_v25 = vand.u32 31, %v3306_v36  ;;  %v3177_v4 = vsel %vm8255_vm12, 0, %v3175_v59 }
 0x2b2   : > { %v3291_v43 = vsel %vm3289_vm15, %v3290_v32, %v6479_v62  ;;  %v3167_v50 = vor.u32 4788187, %v3166_v52  ;;  %v3457_v54 = vadd.s32 %v3456_v61, %v3452_v5  ;;  %v3301_v56 = vand.u32 8388607, %v3294_v46 }
 0x2b3   : > { %v3288_v6 = vsel %vm3286_vm0, %v6477_v1, %v3287_v40  ;;  %v3309_v37 = vsub.s32 32, %v3308_v25  ;;  %v3170_v34 = vcvt.s32.f32 %v3163_v9  ;;  %v3311_v41 = vshll.u32 %v6628_v3, %v3308_v25 }
 0x2b4   : > { %v3292_v7 = vsel %vm3285_vm11, %v3288_v6, %v3291_v43  ;;  %v3168_v14 = vand.u32 2147483647, %v3167_v50  ;;  %v3458_v42 = vadd.s32 536870912, %v3457_v54  ;;  %v3314_v0 = vshll.u32 %v6629_v22, %v3308_v25 }
 0x2b5   : > { %v3293_v39 = vsel %vm3283_vm10, nan, %v3292_v7  ;;  %v3312_v51 = vshrl.u32 %v6629_v22, %v3309_v37  ;;  %v3315_v33 = vshrl.u32 %v6630_v26, %v3309_v37  ;;  %v3318_v29 = vshrl.u32 %v6631_v28, %v3309_v37 }
 0x2b6   : > { %5365 = vst [vmem:[%s7475_s30 + $0x58] sm:$0xff] %v3293_v39  ;;  %v3171_v44 = vmul.f32 %v3170_v34, %v3168_v14  ;;  %v8283_v15 = vshrl.u32 %v3458_v42, 30  ;;  %v3307_v31 = vshrl.u32 %v3306_v36, 5  ;;  %v3317_v11 = vshll.u32 %v6630_v26, %v3308_v25 }
 0x2b7   : > { %v3320_v2 = vshll.u32 %v6631_v28, %v3308_v25  ;;  %v3321_v58 = vshrl.u32 %v6632_v30, %v3309_v37  ;;  %v3313_v38 = vor.u32 %v3312_v51, %v3311_v41  ;;  %v3316_v17 = vor.u32 %v3315_v33, %v3314_v0 }
 0x2b8   : > { %v3172_v16 = vxor.u32 2147483648, %v3171_v44  ;;  %v3460_v47 = vshll.u32 %v8283_v15, 30  ;;  %v3319_v21 = vor.u32 %v3318_v29, %v3317_v11  ;;  %v3323_v59 = vshll.u32 %v6632_v30, %v3308_v25  ;;  %v8315_v29 = vpop.f32.mrb[20].mxu1 }
 0x2b9   : > { %v3322_v1 = vor.u32 %v3321_v58, %v3320_v2  ;;  %v3324_v5 = vshrl.u32 %v6633_v8, %v3309_v37  ;;  %v8295_v62 = vand.u32 3, %v3177_v4  ;;  %v3302_v9 = vor.u32 8388608, %v3301_v56  ;;  %v8306_v4 = vpop.f32.mrb[21].mxu0 }
 0x2ba   : > { %v3173_v24 = vsel %vm3090_vm7, %v3172_v16, %v3171_v44  ;;  %v8297_v32 = vsub.s32 %v3457_v54, %v3460_v47  ;;  %v3310_v36 = vshrl.u32 %v6628_v3, %v3309_v37  ;;  %v3606_v61 = vand.u32 2139095040, %v8160_v45 }
 0x2bb   : > { %v3176_v52 = vsel %vm8255_vm12, %v7828_v63, %v3173_v24  ;;  %v3325_v40 = vor.u32 %v3324_v5, %v3323_v59  ;;  %vm3326_vm1 = vcmp.lt.s32.totalorder %v3307_v31, 1  ;;  %vm3329_vm2 = vcmp.lt.s32.totalorder %v3307_v31, 4 }
 0x2bc   : > { %6480 = vcosq.f32 %v3176_v52  ;;  %v3463_v25 = vsub.s32 0, %v8297_v32  ;;  %v3331_v43 = vsel %vm3329_vm2, %v3319_v21, 2102212464  ;;  %v3334_v50 = vsel %vm3326_vm1, %v3313_v38, %v3316_v17 }
 0x2bd   : > { %6482 = vsinq.f32 %v3176_v52  ;;  %v3335_v54 = vsel %vm3329_vm2, %v3322_v1, 920167782  ;;  %vm3327_vm3 = vcmp.lt.s32.totalorder %v3307_v31, 2  ;;  %vm3328_vm4 = vcmp.lt.s32.totalorder %v3307_v31, 3 }
 0x2be   : > { %v5522_v6 = vmin.u32 %v3463_v25, %v8297_v32  ;;  %v3342_v12 = vshll.u32 %v3302_v9, 8  ;;  %v3330_v56 = vsel %vm3326_vm1, %v3310_v36, %v3313_v38  ;;  %v3336_v37 = vsel %vm3328_vm4, %v3319_v21, %v3335_v54 }
 0x2bf   : > { %v3338_v7 = vsel %vm3326_vm1, %v3316_v17, %v3319_v21  ;;  %v3339_v14 = vsel %vm3329_vm2, %v3325_v40, 1326507024  ;;  %v3332_v42 = vsel %vm3328_vm4, %v3316_v17, %v3331_v43  ;;  %v3337_v39 = vsel %vm3327_vm3, %v3334_v50, %v3336_v37 }
 0x2c0   : > { %v3465_v34 = vclz %v5522_v6  ;;  %v3340_v41 = vsel %vm3328_vm4, %v3322_v1, %v3339_v14  ;;  %v3483_v51 = vsub.s32 4, %v8283_v15  ;;  %v3607_v16 = vshrl.u32 %v3606_v61, 23 }
 0x2c1   : > { %v3341_v33 = vsel %vm3327_vm3, %v3338_v7, %v3340_v41  ;;  %v8311_v44 = vmul.u32.u64.low %v3342_v12, %v3337_v39  ;;  %v8312_v0 = vmul.u32.u64.high %v3342_v12, %v3337_v39, %v8311_v44  ;;  %vm3180_vm5 = vweird.f32 %v7828_v63 }
 0x2c2   : > { %v5523_v11 = vadd.s32 4294967294, %v3465_v34  ;;  %v8317_v2 = vmul.u32.u64.low %v3342_v12, %v3341_v33  ;;  %v8318_v58 = vmul.u32.u64.high %v3342_v12, %v3341_v33, %v8317_v2  ;;  %vm3182_vm6 = vcmp.lt.s32.totalorder %v8295_v62, 2 }
 0x2c3   : > { %vm3399_vm7 = vcmp.lt.s32.totalorder %v7832_v23, 0  ;;  %v3333_v47 = vsel %vm3327_vm3, %v3330_v56, %v3332_v42  ;;  %vm3183_vm8 = vcmp.eq.s32.totalorder %v8295_v62, 0  ;;  %vm3186_vm9 = vcmp.eq.s32.totalorder %v8295_v62, 2 }
 0x2c4   : > { %vm5524_vm10 = vcmp.lt.s32.totalorder %v5523_v11, 0  ;;  %v5529_v38 = vadd.s32 4294967169, %v3607_v16  ;;  %v3453_v17 = vadd.s32 %v8244_v27, %v8239_v20  ;;  %v3352_v1 = vadd.s32 1, %v8312_v0 }
 0x2c5   : > { %v3468_v21 = vsel %vm5524_vm10, 0, %v5523_v11  ;;  %v3603_v59 = vand.u32 2147483647, %v8160_v45  ;;  %v3484_v31 = vsel %vm3399_vm7, %v3483_v51, %v8283_v15  ;;  %v3349_v52 = vmul.u32 %v3342_v12, %v3333_v47 }
 0x2c6   : > { %v6481_v5 = vpop.eup %6480  ;;  %v3469_v24 = vsub.s32 32, %v3468_v21  ;;  %v3473_v9 = vsub.s32 4294967266, %v3468_v21  ;;  %v3470_v61 = vshll.u32 %v8297_v32, %v3468_v21  ;;  %vm3351_vm11 = vc.u32 %v8318_v58, %v8311_v44 }
 0x2c7   : > { %v6483_v36 = vpop.eup %6482  ;;  %v3187_v40 = vxor.u32 2147483648, %v6481_v5  ;;  %v3613_v20 = vadd.s32 1, %v5529_v38  ;;  %v3353_v50 = vsel %vm3351_vm11, %v3352_v1, %v8312_v0  ;;  %v3610_v15 = vand.u32 8388607, %v3603_v59 }
 0x2c8   : > { %v3184_v27 = vxor.u32 2147483648, %v6483_v36  ;;  %v3471_v25 = vshrl.u32 %v3453_v17, %v3469_v24  ;;  %v3474_v43 = vadd.s32 127, %v3473_v9  ;;  %v3354_v6 = vadd.s32 %v3353_v50, %v3349_v52 }
 0x2c9   : > { %v3188_v54 = vsel %vm3186_vm9, %v3187_v40, %v6483_v36  ;;  %vm3614_vm12 = vcmp.gt.s32.totalorder %v3613_v20, 0  ;;  %v3503_v42 = vand.u32 2139095040, %v8164_v60  ;;  %vm8351_vm13 = vcmp.le.f32.partialorder %v3397_v55, 0.7853982 }
 0x2ca   : > { %v3185_v32 = vsel %vm3183_vm8, %v6481_v5, %v3184_v27  ;;  %v3472_v12 = vor.u32 %v3471_v25, %v3470_v61  ;;  %v3475_v56 = vshll.u32 %v3474_v43, 23  ;;  %v3615_v37 = vsel %vm3614_vm12, %v3613_v20, 0 }
 0x2cb   : > { %v3189_v7 = vsel %vm3182_vm6, %v3185_v32, %v3188_v54  ;;  %v3355_v14 = vadd.s32 536870912, %v3354_v6  ;;  %v3617_v34 = vand.u32 31, %v3615_v37  ;;  %v3486_v2 = vsel %vm8351_vm13, 0, %v3484_v31 }
 0x2cc   : > { %v3190_v39 = vsel %vm3180_vm5, nan, %v3189_v7  ;;  %v3476_v41 = vor.u32 4788187, %v3475_v56  ;;  %v3479_v11 = vcvt.s32.f32 %v3472_v12  ;;  %v3611_v16 = vor.u32 8388608, %v3610_v15 }
 0x2cd   : > { %5364 = vst [vmem:[%s7475_s30 + $0x50] sm:$0xff] %v3190_v39  ;;  %v8355_v33 = vshrl.u32 %v3355_v14, 30  ;;  %v3618_v0 = vsub.s32 32, %v3617_v34  ;;  %v3620_v47 = vshll.u32 %v6628_v3, %v3617_v34  ;;  %v3504_v17 = vshrl.u32 %v3503_v42, 23 }
 0x2ce   : > { %v3477_v62 = vand.u32 2147483647, %v3476_v41  ;;  %v3623_v9 = vshll.u32 %v6629_v22, %v3617_v34  ;;  %v3626_v31 = vshll.u32 %v6630_v26, %v3617_v34  ;;  %v3616_v40 = vshrl.u32 %v3615_v37, 5 }
 0x2cf   : > { %v3357_v63 = vshll.u32 %v8355_v33, 30  ;;  %v3621_v38 = vshrl.u32 %v6629_v22, %v3618_v0  ;;  %v3624_v21 = vshrl.u32 %v6630_v26, %v3618_v0  ;;  %v3627_v1 = vshrl.u32 %v6631_v28, %v3618_v0 }
 0x2d0   : > { %v3480_v55 = vmul.f32 %v3479_v11, %v3477_v62  ;;  %v3630_v5 = vshrl.u32 %v6632_v30, %v3618_v0  ;;  %v3633_v52 = vshrl.u32 %v6633_v8, %v3618_v0  ;;  %v3629_v61 = vshll.u32 %v6631_v28, %v3617_v34  ;;  %v8386_v11 = vpop.f32.mrb[22].mxu0 }
 0x2d1   : > { %v8365_v24 = vsub.s32 %v3354_v6, %v3357_v63  ;;  %v3632_v20 = vshll.u32 %v6632_v30, %v3617_v34  ;;  %v3622_v25 = vor.u32 %v3621_v38, %v3620_v47  ;;  %v3625_v43 = vor.u32 %v3624_v21, %v3623_v9  ;;  %v8388_v47 = vpop.f32.mrb[21].mxu1 }
 0x2d2   : > { %v3481_v36 = vxor.u32 2147483648, %v3480_v55  ;;  %v3628_v50 = vor.u32 %v3627_v1, %v3626_v31  ;;  %v8375_v6 = vand.u32 3, %v3486_v2  ;;  %v3631_v15 = vor.u32 %v3630_v5, %v3629_v61 }
 0x2d3   : > { %v3360_v27 = vsub.s32 0, %v8365_v24  ;;  %v3634_v32 = vor.u32 %v3633_v52, %v3632_v20  ;;  %v8381_v37 = vshll.u32 %v3611_v16, 8  ;;  %v5525_v7 = vadd.s32 4294967169, %v3504_v17 }
 0x2d4   : > { %v3482_v54 = vsel %vm3399_vm7, %v3481_v36, %v3480_v55  ;;  %v3619_v14 = vshrl.u32 %v6628_v3, %v3618_v0  ;;  %vm3635_vm14 = vcmp.lt.s32.totalorder %v3616_v40, 1  ;;  %vm3638_vm15 = vcmp.lt.s32.totalorder %v3616_v40, 4 }
 0x2d5   : > { %v3485_v12 = vsel %vm8351_vm13, %v7832_v23, %v3482_v54  ;;  %v5518_v56 = vmin.u32 %v3360_v27, %v8365_v24  ;;  %v3640_v42 = vsel %vm3638_vm15, %v3628_v50, 2102212464  ;;  %v3643_v39 = vsel %vm3635_vm14, %v3622_v25, %v3625_v43 }
 0x2d6   : > { %6484 = vcosq.f32 %v3485_v12  ;;  %vm3637_vm0 = vcmp.lt.s32.totalorder %v3616_v40, 3  ;;  %v3644_v41 = vsel %vm3638_vm15, %v3631_v15, 920167782  ;;  %v3647_v51 = vsel %vm3635_vm14, %v3625_v43, %v3628_v50 }
 0x2d7   : > { %6486 = vsinq.f32 %v3485_v12  ;;  %v3362_v34 = vclz %v5518_v56  ;;  %v3648_v62 = vsel %vm3638_vm15, %v3634_v32, 1326507024  ;;  %vm3636_vm1 = vcmp.lt.s32.totalorder %v3616_v40, 2 }
 0x2d8   : > { %v3645_v16 = vsel %vm3637_vm0, %v3628_v50, %v3644_v41  ;;  %v3649_v63 = vsel %vm3637_vm0, %v3631_v15, %v3648_v62  ;;  %v3639_v0 = vsel %vm3635_vm14, %v3619_v14, %v3622_v25  ;;  %v3641_v38 = vsel %vm3637_vm0, %v3625_v43, %v3640_v42 }
 0x2d9   : > { %v5519_v2 = vadd.s32 4294967294, %v3362_v34  ;;  %v3646_v17 = vsel %vm3636_vm1, %v3643_v39, %v3645_v16  ;;  %v3650_v55 = vsel %vm3636_vm1, %v3647_v51, %v3649_v63  ;;  %vm8395_vm2 = vcmp.le.f32.partialorder %v3294_v46, 0.7853982 }
 0x2da   : > { %v8400_v1 = vmul.u32.u64.low %v8381_v37, %v3650_v55  ;;  %v8401_v5 = vmul.u32.u64.high %v8381_v37, %v3650_v55, %v8400_v1  ;;  %v3510_v9 = vadd.s32 1, %v5525_v7  ;;  %v3380_v52 = vsub.s32 4, %v8355_v33 }
 0x2db   : > { %vm5520_vm3 = vcmp.lt.s32.totalorder %v5519_v2, 0  ;;  %v8405_v36 = vmul.u32.u64.low %v8381_v37, %v3646_v17  ;;  %v8406_v61 = vmul.u32.u64.high %v8381_v37, %v3646_v17, %v8405_v36  ;;  %vm3489_vm4 = vweird.f32 %v7832_v23 }
 0x2dc   : > { %v3365_v31 = vsel %vm5520_vm3, 0, %v5519_v2  ;;  %v3350_v46 = vadd.s32 %v8311_v44, %v8318_v58  ;;  %vm3511_vm5 = vcmp.gt.s32.totalorder %v3510_v9, 0  ;;  %vm3491_vm6 = vcmp.lt.s32.totalorder %v8375_v6, 2 }
 0x2dd   : > { %v3366_v20 = vsub.s32 32, %v3365_v31  ;;  %v3370_v27 = vsub.s32 4294967266, %v3365_v31  ;;  %vm3296_vm7 = vcmp.lt.s32.totalorder %v8156_v49, 0  ;;  %v3642_v25 = vsel %vm3636_vm1, %v3639_v0, %v3641_v38 }
 0x2de   : > { %v3512_v43 = vsel %vm3511_vm5, %v3510_v9, 0  ;;  %v3367_v50 = vshll.u32 %v8365_v24, %v3365_v31  ;;  %vm3660_vm8 = vc.u32 %v8401_v5, %v8405_v36  ;;  %v3381_v44 = vsel %vm3296_vm7, %v3380_v52, %v8355_v33 }
 0x2df   : > { %v3368_v54 = vshrl.u32 %v3350_v46, %v3366_v20  ;;  %v3371_v15 = vadd.s32 127, %v3370_v27  ;;  %v3661_v58 = vadd.s32 1, %v8406_v61  ;;  %v3500_v12 = vand.u32 2147483647, %v8164_v60 }
 0x2e0   : > { %v6485_v32 = vpop.eup %6484  ;;  %v3514_v56 = vand.u32 31, %v3512_v43  ;;  %v3658_v24 = vmul.u32 %v8381_v37, %v3642_v25  ;;  %vm3495_vm9 = vcmp.eq.s32.totalorder %v8375_v6, 2  ;;  %vm3492_vm10 = vcmp.eq.s32.totalorder %v8375_v6, 0 }
 0x2e1   : > { %v6487_v40 = vpop.eup %6486  ;;  %v3496_v7 = vxor.u32 2147483648, %v6485_v32  ;;  %v3369_v14 = vor.u32 %v3368_v54, %v3367_v50  ;;  %v3372_v34 = vshll.u32 %v3371_v15, 23  ;;  %v3662_v39 = vsel %vm3660_vm8, %v3661_v58, %v8406_v61 }
 0x2e2   : > { %v3493_v42 = vxor.u32 2147483648, %v6487_v40  ;;  %v3515_v41 = vsub.s32 32, %v3514_v56  ;;  %v3663_v62 = vadd.s32 %v3662_v39, %v3658_v24  ;;  %v3383_v16 = vsel %vm8395_vm2, 0, %v3381_v44 }
 0x2e3   : > { %v3497_v33 = vsel %vm3495_vm9, %v3496_v7, %v6487_v40  ;;  %v3373_v51 = vor.u32 4788187, %v3372_v34  ;;  %v3507_v63 = vand.u32 8388607, %v3500_v12  ;;  %v8431_v37 = vshrl.u32 %v3512_v43, 5 }
 0x2e4   : > { %v3494_v2 = vsel %vm3492_vm10, %v6485_v32, %v3493_v42  ;;  %v3376_v17 = vcvt.s32.f32 %v3369_v14  ;;  %v3664_v55 = vadd.s32 536870912, %v3663_v62  ;;  %v3518_v9 = vshrl.u32 %v6629_v22, %v3515_v41 }
 0x2e5   : > { %v3498_v0 = vsel %vm3491_vm6, %v3494_v2, %v3497_v33  ;;  %v3374_v38 = vand.u32 2147483647, %v3373_v51  ;;  %v3521_v31 = vshrl.u32 %v6630_v26, %v3515_v41  ;;  %v3524_v52 = vshrl.u32 %v6631_v28, %v3515_v41 }
 0x2e6   : > { %v3499_v1 = vsel %vm3489_vm4, nan, %v3498_v0  ;;  %v8441_v46 = vshrl.u32 %v3664_v55, 30  ;;  %v3517_v20 = vshll.u32 %v6628_v3, %v3514_v56  ;;  %v3523_v6 = vshll.u32 %v6630_v26, %v3514_v56 }
 0x2e7   : > { %5367 = vst [vmem:[%s7475_s30 + $0x68] sm:$0xff] %v3499_v1  ;;  %v3377_v61 = vmul.f32 %v3376_v17, %v3374_v38  ;;  %v3520_v27 = vshll.u32 %v6629_v22, %v3514_v56  ;;  %v3526_v25 = vshll.u32 %v6631_v28, %v3514_v56  ;;  %v3527_v23 = vshrl.u32 %v6632_v30, %v3515_v41  ;;  %v8474_v1 = vpop.f32.mrb[23].mxu0 }
 0x2e8   : > { %v3530_v43 = vshrl.u32 %v6633_v8, %v3515_v41  ;;  %v3666_v54 = vshll.u32 %v8441_v46, 30  ;;  %v3508_v15 = vor.u32 8388608, %v3507_v63  ;;  %v3525_v32 = vor.u32 %v3524_v52, %v3523_v6 }
 0x2e9   : > { %v3378_v50 = vxor.u32 2147483648, %v3377_v61  ;;  %v3519_v44 = vor.u32 %v3518_v9, %v3517_v20  ;;  %v3522_v58 = vor.u32 %v3521_v31, %v3520_v27  ;;  %v3528_v40 = vor.u32 %v3527_v23, %v3526_v25 }
 0x2ea   : > { %v3529_v7 = vshll.u32 %v6632_v30, %v3514_v56  ;;  %v8453_v34 = vand.u32 3, %v3383_v16  ;;  %v8455_v24 = vsub.s32 %v3663_v62, %v3666_v54  ;;  %v3812_v42 = vand.u32 2139095040, %v8168_v35  ;;  %v8489_v54 = vpop.f32.mrb[22].mxu1 }
 0x2eb   : > { %v3379_v14 = vsel %vm3296_vm7, %v3378_v50, %v3377_v61  ;;  %v3516_v33 = vshrl.u32 %v6628_v3, %v3515_v41  ;;  %vm3535_vm11 = vcmp.lt.s32.totalorder %v8431_v37, 4  ;;  %vm3532_vm12 = vcmp.lt.s32.totalorder %v8431_v37, 1 }
 0x2ec   : > { %v3382_v39 = vsel %vm8395_vm2, %v8156_v49, %v3379_v14  ;;  %v3531_v51 = vor.u32 %v3530_v43, %v3529_v7  ;;  %v3669_v56 = vsub.s32 0, %v8455_v24  ;;  %v3537_v62 = vsel %vm3535_vm11, %v3525_v32, 2102212464 }
 0x2ed   : > { %6488 = vcosq.f32 %v3382_v39  ;;  %v3540_v2 = vsel %vm3532_vm12, %v3519_v44, %v3522_v58  ;;  %v3541_v16 = vsel %vm3535_vm11, %v3528_v40, 920167782  ;;  %v3548_v21 = vshll.u32 %v3508_v15, 8 }
 0x2ee   : > { %6490 = vsinq.f32 %v3382_v39  ;;  %v5530_v63 = vmin.u32 %v3669_v56, %v8455_v24  ;;  %vm3533_vm13 = vcmp.lt.s32.totalorder %v8431_v37, 2  ;;  %vm3534_vm14 = vcmp.lt.s32.totalorder %v8431_v37, 3 }
 0x2ef   : > { %v3536_v41 = vsel %vm3532_vm12, %v3516_v33, %v3519_v44  ;;  %v3538_v0 = vsel %vm3534_vm14, %v3522_v58, %v3537_v62  ;;  %v3542_v38 = vsel %vm3534_vm14, %v3525_v32, %v3541_v16  ;;  %v3544_v17 = vsel %vm3532_vm12, %v3522_v58, %v3525_v32 }
 0x2f0   : > { %v3545_v55 = vsel %vm3535_vm11, %v3531_v51, 1326507024  ;;  %v3671_v9 = vclz %v5530_v63  ;;  %v3543_v31 = vsel %vm3533_vm13, %v3540_v2, %v3542_v38  ;;  %v3813_v61 = vshrl.u32 %v3812_v42, 23 }
 0x2f1   : > { %v3546_v52 = vsel %vm3534_vm14, %v3528_v40, %v3545_v55  ;;  %v8480_v6 = vmul.u32.u64.low %v3548_v21, %v3543_v31  ;;  %v8481_v27 = vmul.u32.u64.high %v3548_v21, %v3543_v31, %v8480_v6  ;;  %vm3388_vm15 = vcmp.lt.s32.totalorder %v8453_v34, 2 }
 0x2f2   : > { %v3547_v20 = vsel %vm3533_vm13, %v3544_v17, %v3546_v52  ;;  %vm3605_vm0 = vcmp.lt.s32.totalorder %v8160_v45, 0  ;;  %v5531_v25 = vadd.s32 4294967294, %v3671_v9  ;;  %v5537_v50 = vadd.s32 4294967169, %v3813_v61 }
 0x2f3   : > { %v8486_v23 = vmul.u32.u64.low %v3548_v21, %v3547_v20  ;;  %v8487_v43 = vmul.u32.u64.high %v3548_v21, %v3547_v20, %v8486_v23  ;;  %vm3386_vm1 = vweird.f32 %v8156_v49  ;;  %vm3392_vm2 = vcmp.eq.s32.totalorder %v8453_v34, 2 }
 0x2f4   : > { %v3539_v15 = vsel %vm3533_vm13, %v3536_v41, %v3538_v0  ;;  %v8497_v32 = vadd.f32 %v7965_v53, %v8047_v19  ;;  %v8501_v44 = vadd.f32 %v8045_v57, %v8148_v18  ;;  %vm5532_vm3 = vcmp.lt.s32.totalorder %v5531_v25, 0 }
 0x2f5   : > { %v3819_v58 = vadd.s32 1, %v5537_v50  ;;  %v8505_v40 = vadd.f32 %v8133_v13, %v8241_v48  ;;  %v8509_v7 = vadd.f32 %v8234_v10, %v8315_v29  ;;  %v3659_v37 = vadd.s32 %v8405_v36, %v8401_v5 }
 0x2f6   : > { %v3674_v14 = vsel %vm5532_vm3, 0, %v5531_v25  ;;  %v3558_v53 = vadd.s32 1, %v8481_v27  ;;  %v3809_v19 = vand.u32 2147483647, %v8168_v35  ;;  %v3689_v39 = vsub.s32 4, %v8441_v46 }
 0x2f7   : > { %v6489_v57 = vpop.eup %6488  ;;  %v3675_v18 = vsub.s32 32, %v3674_v14  ;;  %v3679_v42 = vsub.s32 4294967266, %v3674_v14  ;;  %v3555_v33 = vmul.u32 %v3548_v21, %v3539_v15  ;;  %v3676_v51 = vshll.u32 %v8455_v24, %v3674_v14 }
 0x2f8   : > { %v6491_v13 = vpop.eup %6490  ;;  %v3393_v48 = vxor.u32 2147483648, %v6489_v57  ;;  %vm3557_vm4 = vc.u32 %v8487_v43, %v8480_v6  ;;  %vm3820_vm5 = vcmp.gt.s32.totalorder %v3819_v58, 0  ;;  %vm3389_vm6 = vcmp.eq.s32.totalorder %v8453_v34, 0 }
 0x2f9   : > { %v3390_v10 = vxor.u32 2147483648, %v6491_v13  ;;  %v3677_v29 = vshrl.u32 %v3659_v37, %v3675_v18  ;;  %v3680_v5 = vadd.s32 127, %v3679_v42  ;;  %v3559_v36 = vsel %vm3557_vm4, %v3558_v53, %v8481_v27 }
 0x2fa   : > { %v3394_v56 = vsel %vm3392_vm2, %v3393_v48, %v6491_v13  ;;  %v3560_v62 = vadd.s32 %v3559_v36, %v3555_v33  ;;  %v3821_v2 = vsel %vm3820_vm5, %v3819_v58, 0  ;;  %v3816_v63 = vand.u32 8388607, %v3809_v19 }
 0x2fb   : > { %v3391_v16 = vsel %vm3389_vm6, %v6489_v57, %v3390_v10  ;;  %v3678_v21 = vor.u32 %v3677_v29, %v3676_v51  ;;  %v3681_v24 = vshll.u32 %v3680_v5, 23  ;;  %v3690_v0 = vsel %vm3605_vm0, %v3689_v39, %v8441_v46 }
 0x2fc   : > { %v3395_v41 = vsel %vm3388_vm15, %v3391_v16, %v3394_v56  ;;  %v3561_v38 = vadd.s32 536870912, %v3560_v62  ;;  %v3823_v17 = vand.u32 31, %v3821_v2  ;;  %vm8535_vm7 = vcmp.le.f32.partialorder %v3603_v59, 0.7853982 }
 0x2fd   : > { %v3396_v55 = vsel %vm3386_vm1, nan, %v3395_v41  ;;  %v3682_v9 = vor.u32 4788187, %v3681_v24  ;;  %v3685_v20 = vcvt.s32.f32 %v3678_v21  ;;  %v3692_v46 = vsel %vm8535_vm7, 0, %v3690_v0 }
 0x2fe   : > { %5366 = vst [vmem:[%s7475_s30 + $0x60] sm:$0xff] %v3396_v55  ;;  %v8539_v52 = vshrl.u32 %v3561_v38, 30  ;;  %v3824_v34 = vsub.s32 32, %v3823_v17  ;;  %v3817_v27 = vor.u32 8388608, %v3816_v63  ;;  %v3822_v25 = vshrl.u32 %v3821_v2, 5 }
 0x2ff   : > { %v3683_v61 = vand.u32 2147483647, %v3682_v9  ;;  %v3826_v23 = vshll.u32 %v6628_v3, %v3823_v17  ;;  %v3829_v53 = vshll.u32 %v6629_v22, %v3823_v17  ;;  %v3832_v57 = vshll.u32 %v6630_v26, %v3823_v17 }
 0x300   : > { %v3563_v49 = vshll.u32 %v8539_v52, 30  ;;  %v3827_v50 = vshrl.u32 %v6629_v22, %v3824_v34  ;;  %v3830_v15 = vshrl.u32 %v6630_v26, %v3824_v34  ;;  %v3833_v58 = vshrl.u32 %v6631_v28, %v3824_v34 }
 0x301   : > { %v3686_v59 = vmul.f32 %v3685_v20, %v3683_v61  ;;  %v3836_v37 = vshrl.u32 %v6632_v30, %v3824_v34  ;;  %v3839_v18 = vshrl.u32 %v6633_v8, %v3824_v34  ;;  %v8554_v39 = vand.u32 3, %v3692_v46 }
 0x302   : > { %v8549_v14 = vsub.s32 %v3560_v62, %v3563_v49  ;;  %v3835_v33 = vshll.u32 %v6631_v28, %v3823_v17  ;;  %v3838_v13 = vshll.u32 %v6632_v30, %v3823_v17  ;;  %v3828_v51 = vor.u32 %v3827_v50, %v3826_v23  ;;  %v8575_v23 = vpop.f32.mrb[24].mxu0 }
 0x303   : > { %v3687_v42 = vxor.u32 2147483648, %v3686_v59  ;;  %v3831_v10 = vor.u32 %v3830_v15, %v3829_v53  ;;  %v3834_v29 = vor.u32 %v3833_v58, %v3832_v57  ;;  %v8561_v62 = vshll.u32 %v3817_v27, 8  ;;  %v8582_v58 = vpop.f32.mrb[23].mxu1 }
 0x304   : > { %v3566_v48 = vsub.s32 0, %v8549_v14  ;;  %v3837_v36 = vor.u32 %v3836_v37, %v3835_v33  ;;  %v3840_v56 = vor.u32 %v3839_v18, %v3838_v13  ;;  %vm3841_vm8 = vcmp.lt.s32.totalorder %v3822_v25, 1 }
 0x305   : > { %v3688_v5 = vsel %vm3605_vm0, %v3687_v42, %v3686_v59  ;;  %v3709_v21 = vand.u32 2139095040, %v8497_v32  ;;  %v3825_v24 = vshrl.u32 %v6628_v3, %v3824_v34  ;;  %vm3842_vm9 = vcmp.lt.s32.totalorder %v3822_v25, 2 }
 0x306   : > { %v3691_v2 = vsel %vm8535_vm7, %v8160_v45, %v3688_v5  ;;  %v5526_v16 = vmin.u32 %v3566_v48, %v8549_v14  ;;  %vm3844_vm10 = vcmp.lt.s32.totalorder %v3822_v25, 4  ;;  %vm3502_vm11 = vcmp.lt.s32.totalorder %v8164_v60, 0 }
 0x307   : > { %6492 = vcosq.f32 %v3691_v2  ;;  %v3846_v41 = vsel %vm3844_vm10, %v3834_v29, 2102212464  ;;  %v3849_v0 = vsel %vm3841_vm8, %v3828_v51, %v3831_v10  ;;  %vm3843_vm12 = vcmp.lt.s32.totalorder %v3822_v25, 3 }
 0x308   : > { %6494 = vsinq.f32 %v3691_v2  ;;  %v3568_v63 = vclz %v5526_v16  ;;  %v3850_v38 = vsel %vm3844_vm10, %v3837_v36, 920167782  ;;  %v3853_v17 = vsel %vm3841_vm8, %v3831_v10, %v3834_v29 }
 0x309   : > { %v3854_v55 = vsel %vm3844_vm10, %v3840_v56, 1326507024  ;;  %v3845_v31 = vsel %vm3841_vm8, %v3825_v24, %v3828_v51  ;;  %v3851_v61 = vsel %vm3843_vm12, %v3834_v29, %v3850_v38  ;;  %v3847_v34 = vsel %vm3843_vm12, %v3831_v10, %v3846_v41 }
 0x30a   : > { %v5527_v9 = vadd.s32 4294967294, %v3568_v63  ;;  %v3855_v20 = vsel %vm3843_vm12, %v3837_v36, %v3854_v55  ;;  %v3852_v46 = vsel %vm3842_vm9, %v3849_v0, %v3851_v61  ;;  %v3710_v49 = vshrl.u32 %v3709_v21, 23 }
 0x30b   : > { %v3856_v27 = vsel %vm3842_vm9, %v3853_v17, %v3855_v20  ;;  %v3586_v50 = vsub.s32 4, %v8539_v52  ;;  %v8585_v53 = vmul.u32.u64.low %v8561_v62, %v3852_v46  ;;  %v8586_v57 = vmul.u32.u64.high %v8561_v62, %v3852_v46, %v8585_v53 }
 0x30c   : > { %vm5528_vm13 = vcmp.lt.s32.totalorder %v5527_v9, 0  ;;  %v8579_v59 = vmul.u32.u64.low %v8561_v62, %v3856_v27  ;;  %v8580_v15 = vmul.u32.u64.high %v8561_v62, %v3856_v27, %v8579_v59  ;;  %v5533_v18 = vadd.s32 4294967169, %v3710_v49 }
 0x30d   : > { %v3571_v37 = vsel %vm5528_vm13, 0, %v5527_v9  ;;  %vm3695_vm14 = vweird.f32 %v8160_v45  ;;  %v3556_v42 = vadd.s32 %v8480_v6, %v8487_v43  ;;  %v3848_v48 = vsel %vm3842_vm9, %v3845_v31, %v3847_v34 }
 0x30e   : > { %v3572_v33 = vsub.s32 32, %v3571_v37  ;;  %v3576_v13 = vsub.s32 4294967266, %v3571_v37  ;;  %vm3697_vm15 = vcmp.lt.s32.totalorder %v8554_v39, 2  ;;  %vm8596_vm0 = vcmp.le.f32.partialorder %v3500_v12, 0.7853982 }
 0x30f   : > { %v3706_v10 = vand.u32 2147483647, %v8497_v32  ;;  %v3716_v29 = vadd.s32 1, %v5533_v18  ;;  %v3573_v5 = vshll.u32 %v8549_v14, %v3571_v37  ;;  %vm3866_vm1 = vc.u32 %v8580_v15, %v8585_v53 }
 0x310   : > { %v3574_v36 = vshrl.u32 %v3556_v42, %v3572_v33  ;;  %v3577_v56 = vadd.s32 127, %v3576_v13  ;;  %v3587_v43 = vsel %vm3502_vm11, %v3586_v50, %v8539_v52  ;;  %v3864_v12 = vmul.u32 %v8561_v62, %v3848_v48 }
 0x311   : > { %v6493_v6 = vpop.eup %6492  ;;  %v3867_v25 = vadd.s32 1, %v8586_v57  ;;  %vm3717_vm2 = vcmp.gt.s32.totalorder %v3716_v29, 0  ;;  %vm3701_vm3 = vcmp.eq.s32.totalorder %v8554_v39, 2  ;;  %vm3698_vm4 = vcmp.eq.s32.totalorder %v8554_v39, 0 }
 0x312   : > { %v6495_v2 = vpop.eup %6494  ;;  %v3702_v16 = vxor.u32 2147483648, %v6493_v6  ;;  %v3575_v21 = vor.u32 %v3574_v36, %v3573_v5  ;;  %v3578_v24 = vshll.u32 %v3577_v56, 23  ;;  %v3718_v14 = vsel %vm3717_vm2, %v3716_v29, 0 }
 0x313   : > { %v3699_v63 = vxor.u32 2147483648, %v6495_v2  ;;  %v3868_v41 = vsel %vm3866_vm1, %v3867_v25, %v8586_v57  ;;  %v3720_v0 = vand.u32 31, %v3718_v14  ;;  %v3589_v55 = vsel %vm8596_vm0, 0, %v3587_v43 }
 0x314   : > { %v3703_v52 = vsel %vm3701_vm3, %v3702_v16, %v6495_v2  ;;  %v3579_v38 = vor.u32 4788187, %v3578_v24  ;;  %v3869_v62 = vadd.s32 %v3868_v41, %v3864_v12  ;;  %v3713_v9 = vand.u32 8388607, %v3706_v10 }
 0x315   : > { %v3700_v17 = vsel %vm3698_vm4, %v6493_v6, %v3699_v63  ;;  %v3721_v31 = vsub.s32 32, %v3720_v0  ;;  %v3582_v34 = vcvt.s32.f32 %v3575_v21  ;;  %v3723_v49 = vshll.u32 %v6628_v3, %v3720_v0 }
 0x316   : > { %v3704_v61 = vsel %vm3697_vm15, %v3700_v17, %v3703_v52  ;;  %v3580_v20 = vand.u32 2147483647, %v3579_v38  ;;  %v3870_v46 = vadd.s32 536870912, %v3869_v62  ;;  %v3726_v18 = vshll.u32 %v6629_v22, %v3720_v0 }
 0x317   : > { %v3705_v27 = vsel %vm3695_vm14, nan, %v3704_v61  ;;  %v3724_v50 = vshrl.u32 %v6629_v22, %v3721_v31  ;;  %v3727_v59 = vshrl.u32 %v6630_v26, %v3721_v31  ;;  %v3730_v39 = vshrl.u32 %v6631_v28, %v3721_v31 }
 0x318   : > { %5369 = vst [vmem:[%s7475_s30 + $0x78] sm:$0xff] %v3705_v27  ;;  %v3583_v37 = vmul.f32 %v3582_v34, %v3580_v20  ;;  %v8624_v57 = vshrl.u32 %v3870_v46, 30  ;;  %v3719_v42 = vshrl.u32 %v3718_v14, 5  ;;  %v3729_v33 = vshll.u32 %v6630_v26, %v3720_v0 }
 0x319   : > { %v3732_v45 = vshll.u32 %v6631_v28, %v3720_v0  ;;  %v3733_v13 = vshrl.u32 %v6632_v30, %v3721_v31  ;;  %v3725_v5 = vor.u32 %v3724_v50, %v3723_v49  ;;  %v3728_v36 = vor.u32 %v3727_v59, %v3726_v18 }
 0x31a   : > { %v3584_v48 = vxor.u32 2147483648, %v3583_v37  ;;  %v3872_v29 = vshll.u32 %v8624_v57, 30  ;;  %v3731_v56 = vor.u32 %v3730_v39, %v3729_v33  ;;  %v3735_v43 = vshll.u32 %v6632_v30, %v3720_v0  ;;  %v8656_v39 = vpop.f32.mrb[24].mxu1 }
 0x31b   : > { %v3734_v6 = vor.u32 %v3733_v13, %v3732_v45  ;;  %v3736_v12 = vshrl.u32 %v6633_v8, %v3721_v31  ;;  %v8636_v2 = vand.u32 3, %v3589_v55  ;;  %v3714_v21 = vor.u32 8388608, %v3713_v9  ;;  %v8647_v55 = vpop.f32.mrb[25].mxu0 }
 0x31c   : > { %v3585_v25 = vsel %vm3502_vm11, %v3584_v48, %v3583_v37  ;;  %v8638_v16 = vsub.s32 %v3869_v62, %v3872_v29  ;;  %v3722_v14 = vshrl.u32 %v6628_v3, %v3721_v31  ;;  %v4018_v41 = vand.u32 2139095040, %v8501_v44 }
 0x31d   : > { %v3588_v24 = vsel %vm8596_vm0, %v8164_v60, %v3585_v25  ;;  %v3737_v63 = vor.u32 %v3736_v12, %v3735_v43  ;;  %vm3738_vm5 = vcmp.lt.s32.totalorder %v3719_v42, 1  ;;  %vm3741_vm6 = vcmp.lt.s32.totalorder %v3719_v42, 4 }
 0x31e   : > { %6496 = vcosq.f32 %v3588_v24  ;;  %v3875_v0 = vsub.s32 0, %v8638_v16  ;;  %v3743_v52 = vsel %vm3741_vm6, %v3731_v56, 2102212464  ;;  %v3746_v38 = vsel %vm3738_vm5, %v3725_v5, %v3728_v36 }
 0x31f   : > { %6498 = vsinq.f32 %v3588_v24  ;;  %v3747_v62 = vsel %vm3741_vm6, %v3734_v6, 920167782  ;;  %vm3739_vm7 = vcmp.lt.s32.totalorder %v3719_v42, 2  ;;  %vm3740_vm8 = vcmp.lt.s32.totalorder %v3719_v42, 3 }
 0x320   : > { %v5538_v17 = vmin.u32 %v3875_v0, %v8638_v16  ;;  %v3754_v51 = vshll.u32 %v3714_v21, 8  ;;  %v3742_v9 = vsel %vm3738_vm5, %v3722_v14, %v3725_v5  ;;  %v3748_v31 = vsel %vm3740_vm8, %v3731_v56, %v3747_v62 }
 0x321   : > { %v3750_v61 = vsel %vm3738_vm5, %v3728_v36, %v3731_v56  ;;  %v3751_v20 = vsel %vm3741_vm6, %v3737_v63, 1326507024  ;;  %v3744_v46 = vsel %vm3740_vm8, %v3728_v36, %v3743_v52  ;;  %v3749_v27 = vsel %vm3739_vm7, %v3746_v38, %v3748_v31 }
 0x322   : > { %v3877_v34 = vclz %v5538_v17  ;;  %v3752_v49 = vsel %vm3740_vm8, %v3734_v6, %v3751_v20  ;;  %v3895_v50 = vsub.s32 4, %v8624_v57  ;;  %v4019_v48 = vshrl.u32 %v4018_v41, 23 }
 0x323   : > { %v3753_v59 = vsel %vm3739_vm7, %v3750_v61, %v3752_v49  ;;  %v8652_v37 = vmul.u32.u64.low %v3754_v51, %v3749_v27  ;;  %v8653_v18 = vmul.u32.u64.high %v3754_v51, %v3749_v27, %v8652_v37  ;;  %vm3592_vm9 = vweird.f32 %v8164_v60 }
 0x324   : > { %v5539_v33 = vadd.s32 4294967294, %v3877_v34  ;;  %v8658_v45 = vmul.u32.u64.low %v3754_v51, %v3753_v59  ;;  %v8659_v13 = vmul.u32.u64.high %v3754_v51, %v3753_v59, %v8658_v45  ;;  %vm3594_vm10 = vcmp.lt.s32.totalorder %v8636_v2, 2 }
 0x325   : > { %vm3811_vm11 = vcmp.lt.s32.totalorder %v8168_v35, 0  ;;  %v3745_v29 = vsel %vm3739_vm7, %v3742_v9, %v3744_v46  ;;  %vm3595_vm12 = vcmp.eq.s32.totalorder %v8636_v2, 0  ;;  %vm3598_vm13 = vcmp.eq.s32.totalorder %v8636_v2, 2 }
 0x326   : > { %vm5540_vm14 = vcmp.lt.s32.totalorder %v5539_v33, 0  ;;  %v5545_v5 = vadd.s32 4294967169, %v4019_v48  ;;  %v3865_v36 = vadd.s32 %v8585_v53, %v8580_v15  ;;  %v3764_v6 = vadd.s32 1, %v8653_v18 }
 0x327   : > { %v3880_v56 = vsel %vm5540_vm14, 0, %v5539_v33  ;;  %v4015_v43 = vand.u32 2147483647, %v8501_v44  ;;  %v3896_v42 = vsel %vm3811_vm11, %v3895_v50, %v8624_v57  ;;  %v3761_v24 = vmul.u32 %v3754_v51, %v3745_v29 }
 0x328   : > { %v6497_v12 = vpop.eup %6496  ;;  %v3881_v25 = vsub.s32 32, %v3880_v56  ;;  %v3885_v21 = vsub.s32 4294967266, %v3880_v56  ;;  %v3882_v41 = vshll.u32 %v8638_v16, %v3880_v56  ;;  %vm3763_vm15 = vc.u32 %v8659_v13, %v8652_v37 }
 0x329   : > { %v6499_v14 = vpop.eup %6498  ;;  %v3599_v63 = vxor.u32 2147483648, %v6497_v12  ;;  %v4025_v15 = vadd.s32 1, %v5545_v5  ;;  %v3765_v38 = vsel %vm3763_vm15, %v3764_v6, %v8653_v18  ;;  %v4022_v57 = vand.u32 8388607, %v4015_v43 }
 0x32a   : > { %v3596_v53 = vxor.u32 2147483648, %v6499_v14  ;;  %v3883_v0 = vshrl.u32 %v3865_v36, %v3881_v25  ;;  %v3886_v52 = vadd.s32 127, %v3885_v21  ;;  %v3766_v17 = vadd.s32 %v3765_v38, %v3761_v24 }
 0x32b   : > { %v3600_v62 = vsel %vm3598_vm13, %v3599_v63, %v6499_v14  ;;  %vm4026_vm0 = vcmp.gt.s32.totalorder %v4025_v15, 0  ;;  %v3915_v46 = vand.u32 2139095040, %v8505_v40  ;;  %vm8692_vm1 = vcmp.le.f32.partialorder %v3809_v19, 0.7853982 }
 0x32c   : > { %v3597_v16 = vsel %vm3595_vm12, %v6497_v12, %v3596_v53  ;;  %v3884_v51 = vor.u32 %v3883_v0, %v3882_v41  ;;  %v3887_v9 = vshll.u32 %v3886_v52, 23  ;;  %v4027_v31 = vsel %vm4026_vm0, %v4025_v15, 0 }
 0x32d   : > { %v3601_v61 = vsel %vm3594_vm10, %v3597_v16, %v3600_v62  ;;  %v3767_v20 = vadd.s32 536870912, %v3766_v17  ;;  %v4029_v34 = vand.u32 31, %v4027_v31  ;;  %v3898_v45 = vsel %vm8692_vm1, 0, %v3896_v42 }
 0x32e   : > { %v3602_v27 = vsel %vm3592_vm9, nan, %v3601_v61  ;;  %v3888_v49 = vor.u32 4788187, %v3887_v9  ;;  %v3891_v33 = vcvt.s32.f32 %v3884_v51  ;;  %v4023_v48 = vor.u32 8388608, %v4022_v57 }
 0x32f   : > { %5368 = vst [vmem:[%s7475_s30 + $0x70] sm:$0xff] %v3602_v27  ;;  %v8696_v59 = vshrl.u32 %v3767_v20, 30  ;;  %v4030_v18 = vsub.s32 32, %v4029_v34  ;;  %v4032_v29 = vshll.u32 %v6628_v3, %v4029_v34  ;;  %v3916_v36 = vshrl.u32 %v3915_v46, 23 }
 0x330   : > { %v3889_v2 = vand.u32 2147483647, %v3888_v49  ;;  %v4035_v21 = vshll.u32 %v6629_v22, %v4029_v34  ;;  %v4038_v42 = vshll.u32 %v6630_v26, %v4029_v34  ;;  %v4028_v63 = vshrl.u32 %v4027_v31, 5 }
 0x331   : > { %v3769_v60 = vshll.u32 %v8696_v59, 30  ;;  %v4033_v5 = vshrl.u32 %v6629_v22, %v4030_v18  ;;  %v4036_v56 = vshrl.u32 %v6630_v26, %v4030_v18  ;;  %v4039_v6 = vshrl.u32 %v6631_v28, %v4030_v18 }
 0x332   : > { %v3892_v19 = vmul.f32 %v3891_v33, %v3889_v2  ;;  %v4042_v12 = vshrl.u32 %v6632_v30, %v4030_v18  ;;  %v4045_v24 = vshrl.u32 %v6633_v8, %v4030_v18  ;;  %v4041_v41 = vshll.u32 %v6631_v28, %v4029_v34  ;;  %v8727_v33 = vpop.f32.mrb[26].mxu0 }
 0x333   : > { %v8706_v25 = vsub.s32 %v3766_v17, %v3769_v60  ;;  %v4044_v15 = vshll.u32 %v6632_v30, %v4029_v34  ;;  %v4034_v0 = vor.u32 %v4033_v5, %v4032_v29  ;;  %v4037_v52 = vor.u32 %v4036_v56, %v4035_v21  ;;  %v8729_v29 = vpop.f32.mrb[25].mxu1 }
 0x334   : > { %v3893_v14 = vxor.u32 2147483648, %v3892_v19  ;;  %v4040_v38 = vor.u32 %v4039_v6, %v4038_v42  ;;  %v8716_v17 = vand.u32 3, %v3898_v45  ;;  %v4043_v57 = vor.u32 %v4042_v12, %v4041_v41 }
 0x335   : > { %v3772_v53 = vsub.s32 0, %v8706_v25  ;;  %v4046_v16 = vor.u32 %v4045_v24, %v4044_v15  ;;  %v8722_v31 = vshll.u32 %v4023_v48, 8  ;;  %v5541_v61 = vadd.s32 4294967169, %v3916_v36 }
 0x336   : > { %v3894_v62 = vsel %vm3811_vm11, %v3893_v14, %v3892_v19  ;;  %v4031_v20 = vshrl.u32 %v6628_v3, %v4030_v18  ;;  %vm4047_vm2 = vcmp.lt.s32.totalorder %v4028_v63, 1  ;;  %vm4050_vm3 = vcmp.lt.s32.totalorder %v4028_v63, 4 }
 0x337   : > { %v3897_v51 = vsel %vm8692_vm1, %v8168_v35, %v3894_v62  ;;  %v5534_v9 = vmin.u32 %v3772_v53, %v8706_v25  ;;  %v4052_v46 = vsel %vm4050_vm3, %v4040_v38, 2102212464  ;;  %v4055_v27 = vsel %vm4047_vm2, %v4034_v0, %v4037_v52 }
 0x338   : > { %6500 = vcosq.f32 %v3897_v51  ;;  %vm4049_vm4 = vcmp.lt.s32.totalorder %v4028_v63, 3  ;;  %v4056_v49 = vsel %vm4050_vm3, %v4043_v57, 920167782  ;;  %v4059_v50 = vsel %vm4047_vm2, %v4037_v52, %v4040_v38 }
 0x339   : > { %6502 = vsinq.f32 %v3897_v51  ;;  %v3774_v34 = vclz %v5534_v9  ;;  %v4060_v2 = vsel %vm4050_vm3, %v4046_v16, 1326507024  ;;  %vm4048_vm5 = vcmp.lt.s32.totalorder %v4028_v63, 2 }
 0x33a   : > { %v4057_v48 = vsel %vm4049_vm4, %v4040_v38, %v4056_v49  ;;  %v4061_v60 = vsel %vm4049_vm4, %v4043_v57, %v4060_v2  ;;  %v4051_v18 = vsel %vm4047_vm2, %v4031_v20, %v4034_v0  ;;  %v4053_v5 = vsel %vm4049_vm4, %v4037_v52, %v4052_v46 }
 0x33b   : > { %v5535_v45 = vadd.s32 4294967294, %v3774_v34  ;;  %v4058_v36 = vsel %vm4048_vm5, %v4055_v27, %v4057_v48  ;;  %v4062_v19 = vsel %vm4048_vm5, %v4059_v50, %v4061_v60  ;;  %vm8736_vm6 = vcmp.le.f32.partialorder %v3706_v10, 0.7853982 }
 0x33c   : > { %v8741_v6 = vmul.u32.u64.low %v8722_v31, %v4062_v19  ;;  %v8742_v12 = vmul.u32.u64.high %v8722_v31, %v4062_v19, %v8741_v6  ;;  %v3922_v21 = vadd.s32 1, %v5541_v61  ;;  %v3792_v24 = vsub.s32 4, %v8696_v59 }
 0x33d   : > { %vm5536_vm7 = vcmp.lt.s32.totalorder %v5535_v45, 0  ;;  %v8746_v14 = vmul.u32.u64.low %v8722_v31, %v4058_v36  ;;  %v8747_v41 = vmul.u32.u64.high %v8722_v31, %v4058_v36, %v8746_v14  ;;  %vm3901_vm8 = vweird.f32 %v8168_v35 }
 0x33e   : > { %v3777_v42 = vsel %vm5536_vm7, 0, %v5535_v45  ;;  %v3762_v10 = vadd.s32 %v8652_v37, %v8659_v13  ;;  %vm3923_vm9 = vcmp.gt.s32.totalorder %v3922_v21, 0  ;;  %vm3903_vm10 = vcmp.lt.s32.totalorder %v8716_v17, 2 }
 0x33f   : > { %v3778_v15 = vsub.s32 32, %v3777_v42  ;;  %v3782_v53 = vsub.s32 4294967266, %v3777_v42  ;;  %vm3708_vm11 = vcmp.lt.s32.totalorder %v8497_v32, 0  ;;  %v4054_v0 = vsel %vm4048_vm5, %v4051_v18, %v4053_v5 }
 0x340   : > { %v3924_v52 = vsel %vm3923_vm9, %v3922_v21, 0  ;;  %v3779_v38 = vshll.u32 %v8706_v25, %v3777_v42  ;;  %vm4072_vm12 = vc.u32 %v8742_v12, %v8746_v14  ;;  %v3793_v37 = vsel %vm3708_vm11, %v3792_v24, %v8696_v59 }
 0x341   : > { %v3780_v62 = vshrl.u32 %v3762_v10, %v3778_v15  ;;  %v3783_v57 = vadd.s32 127, %v3782_v53  ;;  %v4073_v13 = vadd.s32 1, %v8747_v41  ;;  %v3912_v51 = vand.u32 2147483647, %v8505_v40 }
 0x342   : > { %v6501_v16 = vpop.eup %6500  ;;  %v3926_v9 = vand.u32 31, %v3924_v52  ;;  %v4070_v25 = vmul.u32 %v8722_v31, %v4054_v0  ;;  %vm3907_vm13 = vcmp.eq.s32.totalorder %v8716_v17, 2  ;;  %vm3904_vm14 = vcmp.eq.s32.totalorder %v8716_v17, 0 }
 0x343   : > { %v6503_v63 = vpop.eup %6502  ;;  %v3908_v61 = vxor.u32 2147483648, %v6501_v16  ;;  %v3781_v20 = vor.u32 %v3780_v62, %v3779_v38  ;;  %v3784_v34 = vshll.u32 %v3783_v57, 23  ;;  %v4074_v27 = vsel %vm4072_vm12, %v4073_v13, %v8747_v41 }
 0x344   : > { %v3905_v46 = vxor.u32 2147483648, %v6503_v63  ;;  %v3927_v49 = vsub.s32 32, %v3926_v9  ;;  %v4075_v2 = vadd.s32 %v4074_v27, %v4070_v25  ;;  %v3795_v48 = vsel %vm8736_vm6, 0, %v3793_v37 }
 0x345   : > { %v3909_v59 = vsel %vm3907_vm13, %v3908_v61, %v6503_v63  ;;  %v3785_v50 = vor.u32 4788187, %v3784_v34  ;;  %v3919_v60 = vand.u32 8388607, %v3912_v51  ;;  %v8772_v31 = vshrl.u32 %v3924_v52, 5 }
 0x346   : > { %v3906_v45 = vsel %vm3904_vm14, %v6501_v16, %v3905_v46  ;;  %v3788_v36 = vcvt.s32.f32 %v3781_v20  ;;  %v4076_v19 = vadd.s32 536870912, %v4075_v2  ;;  %v3930_v21 = vshrl.u32 %v6629_v22, %v3927_v49 }
 0x347   : > { %v3910_v18 = vsel %vm3903_vm10, %v3906_v45, %v3909_v59  ;;  %v3786_v5 = vand.u32 2147483647, %v3785_v50  ;;  %v3933_v42 = vshrl.u32 %v6630_v26, %v3927_v49  ;;  %v3936_v24 = vshrl.u32 %v6631_v28, %v3927_v49 }
 0x348   : > { %v3911_v6 = vsel %vm3901_vm8, nan, %v3910_v18  ;;  %v8782_v10 = vshrl.u32 %v4076_v19, 30  ;;  %v3929_v15 = vshll.u32 %v6628_v3, %v3926_v9  ;;  %v3935_v17 = vshll.u32 %v6630_v26, %v3926_v9 }
 0x349   : > { %5371 = vst [vmem:[%s7475_s30 + $0x88] sm:$0xff] %v3911_v6  ;;  %v3789_v41 = vmul.f32 %v3788_v36, %v3786_v5  ;;  %v3932_v53 = vshll.u32 %v6629_v22, %v3926_v9  ;;  %v3938_v0 = vshll.u32 %v6631_v28, %v3926_v9  ;;  %v3939_v35 = vshrl.u32 %v6632_v30, %v3927_v49  ;;  %v8815_v6 = vpop.f32.mrb[27].mxu0 }
 0x34a   : > { %v3942_v52 = vshrl.u32 %v6633_v8, %v3927_v49  ;;  %v4078_v62 = vshll.u32 %v8782_v10, 30  ;;  %v3920_v57 = vor.u32 8388608, %v3919_v60  ;;  %v3937_v16 = vor.u32 %v3936_v24, %v3935_v17 }
 0x34b   : > { %v3790_v38 = vxor.u32 2147483648, %v3789_v41  ;;  %v3931_v37 = vor.u32 %v3930_v21, %v3929_v15  ;;  %v3934_v13 = vor.u32 %v3933_v42, %v3932_v53  ;;  %v3940_v63 = vor.u32 %v3939_v35, %v3938_v0 }
 0x34c   : > { %v3941_v61 = vshll.u32 %v6632_v30, %v3926_v9  ;;  %v8794_v34 = vand.u32 3, %v3795_v48  ;;  %v8796_v25 = vsub.s32 %v4075_v2, %v4078_v62  ;;  %v4224_v46 = vand.u32 2139095040, %v8509_v7  ;;  %v8830_v62 = vpop.f32.mrb[26].mxu1 }
 0x34d   : > { %v3791_v20 = vsel %vm3708_vm11, %v3790_v38, %v3789_v41  ;;  %v3928_v59 = vshrl.u32 %v6628_v3, %v3927_v49  ;;  %vm3947_vm15 = vcmp.lt.s32.totalorder %v8772_v31, 4  ;;  %vm3944_vm0 = vcmp.lt.s32.totalorder %v8772_v31, 1 }
 0x34e   : > { %v3794_v27 = vsel %vm8736_vm6, %v8497_v32, %v3791_v20  ;;  %v3943_v50 = vor.u32 %v3942_v52, %v3941_v61  ;;  %v4081_v9 = vsub.s32 0, %v8796_v25  ;;  %v3949_v2 = vsel %vm3947_vm15, %v3937_v16, 2102212464 }
 0x34f   : > { %6504 = vcosq.f32 %v3794_v27  ;;  %v3952_v45 = vsel %vm3944_vm0, %v3931_v37, %v3934_v13  ;;  %v3953_v48 = vsel %vm3947_vm15, %v3940_v63, 920167782  ;;  %v3960_v56 = vshll.u32 %v3920_v57, 8 }
 0x350   : > { %6506 = vsinq.f32 %v3794_v27  ;;  %v5546_v60 = vmin.u32 %v4081_v9, %v8796_v25  ;;  %vm3945_vm1 = vcmp.lt.s32.totalorder %v8772_v31, 2  ;;  %vm3946_vm2 = vcmp.lt.s32.totalorder %v8772_v31, 3 }
 0x351   : > { %v3948_v49 = vsel %vm3944_vm0, %v3928_v59, %v3931_v37  ;;  %v3950_v18 = vsel %vm3946_vm2, %v3934_v13, %v3949_v2  ;;  %v3954_v5 = vsel %vm3946_vm2, %v3937_v16, %v3953_v48  ;;  %v3956_v36 = vsel %vm3944_vm0, %v3934_v13, %v3937_v16 }
 0x352   : > { %v3957_v19 = vsel %vm3947_vm15, %v3943_v50, 1326507024  ;;  %v4083_v21 = vclz %v5546_v60  ;;  %v3955_v42 = vsel %vm3945_vm1, %v3952_v45, %v3954_v5  ;;  %v4225_v41 = vshrl.u32 %v4224_v46, 23 }
 0x353   : > { %v3958_v24 = vsel %vm3946_vm2, %v3940_v63, %v3957_v19  ;;  %v8821_v17 = vmul.u32.u64.low %v3960_v56, %v3955_v42  ;;  %v8822_v53 = vmul.u32.u64.high %v3960_v56, %v3955_v42, %v8821_v17  ;;  %vm3800_vm3 = vcmp.lt.s32.totalorder %v8794_v34, 2 }
 0x354   : > { %v3959_v15 = vsel %vm3945_vm1, %v3956_v36, %v3958_v24  ;;  %vm4017_vm4 = vcmp.lt.s32.totalorder %v8501_v44, 0  ;;  %v5547_v0 = vadd.s32 4294967294, %v4083_v21  ;;  %v5553_v38 = vadd.s32 4294967169, %v4225_v41 }
 0x355   : > { %v8827_v35 = vmul.u32.u64.low %v3960_v56, %v3959_v15  ;;  %v8828_v52 = vmul.u32.u64.high %v3960_v56, %v3959_v15, %v8827_v35  ;;  %vm3798_vm5 = vweird.f32 %v8497_v32  ;;  %vm3804_vm6 = vcmp.eq.s32.totalorder %v8794_v34, 2 }
 0x356   : > { %v3951_v57 = vsel %vm3945_vm1, %v3948_v49, %v3950_v18  ;;  %v8838_v16 = vadd.f32 %v8306_v4, %v8388_v47  ;;  %v8842_v37 = vadd.f32 %v8386_v11, %v8489_v54  ;;  %vm5548_vm7 = vcmp.lt.s32.totalorder %v5547_v0, 0 }
 0x357   : > { %v4231_v13 = vadd.s32 1, %v5553_v38  ;;  %v8846_v63 = vadd.f32 %v8474_v1, %v8582_v58  ;;  %v8850_v61 = vadd.f32 %v8575_v23, %v8656_v39  ;;  %v4071_v31 = vadd.s32 %v8746_v14, %v8742_v12 }
 0x358   : > { %v4086_v20 = vsel %vm5548_vm7, 0, %v5547_v0  ;;  %v3970_v4 = vadd.s32 1, %v8822_v53  ;;  %v4221_v47 = vand.u32 2147483647, %v8509_v7  ;;  %v4101_v27 = vsub.s32 4, %v8782_v10 }
 0x359   : > { %v6505_v11 = vpop.eup %6504  ;;  %v4087_v54 = vsub.s32 32, %v4086_v20  ;;  %v4091_v46 = vsub.s32 4294967266, %v4086_v20  ;;  %v3967_v59 = vmul.u32 %v3960_v56, %v3951_v57  ;;  %v4088_v50 = vshll.u32 %v8796_v25, %v4086_v20 }
 0x35a   : > { %v6507_v1 = vpop.eup %6506  ;;  %v3805_v58 = vxor.u32 2147483648, %v6505_v11  ;;  %vm3969_vm8 = vc.u32 %v8828_v52, %v8821_v17  ;;  %vm4232_vm9 = vcmp.gt.s32.totalorder %v4231_v13, 0  ;;  %vm3801_vm10 = vcmp.eq.s32.totalorder %v8794_v34, 0 }
 0x35b   : > { %v3802_v23 = vxor.u32 2147483648, %v6507_v1  ;;  %v4089_v39 = vshrl.u32 %v4071_v31, %v4087_v54  ;;  %v4092_v12 = vadd.s32 127, %v4091_v46  ;;  %v3971_v14 = vsel %vm3969_vm8, %v3970_v4, %v8822_v53 }
 0x35c   : > { %v3806_v9 = vsel %vm3804_vm6, %v3805_v58, %v6507_v1  ;;  %v3972_v2 = vadd.s32 %v3971_v14, %v3967_v59  ;;  %v4233_v45 = vsel %vm4232_vm9, %v4231_v13, 0  ;;  %v4228_v60 = vand.u32 8388607, %v4221_v47 }
 0x35d   : > { %v3803_v48 = vsel %vm3801_vm10, %v6505_v11, %v3802_v23  ;;  %v4090_v56 = vor.u32 %v4089_v39, %v4088_v50  ;;  %v4093_v25 = vshll.u32 %v4092_v12, 23  ;;  %v4102_v18 = vsel %vm4017_vm4, %v4101_v27, %v8782_v10 }
 0x35e   : > { %v3807_v49 = vsel %vm3800_vm3, %v3803_v48, %v3806_v9  ;;  %v3973_v5 = vadd.s32 536870912, %v3972_v2  ;;  %v4235_v36 = vand.u32 31, %v4233_v45  ;;  %vm8876_vm11 = vcmp.le.f32.partialorder %v4015_v43, 0.7853982 }
 0x35f   : > { %v3808_v19 = vsel %vm3798_vm5, nan, %v3807_v49  ;;  %v4094_v21 = vor.u32 4788187, %v4093_v25  ;;  %v4097_v15 = vcvt.s32.f32 %v4090_v56  ;;  %v4104_v10 = vsel %vm8876_vm11, 0, %v4102_v18 }
 0x360   : > { %5370 = vst [vmem:[%s7475_s30 + $0x80] sm:$0xff] %v3808_v19  ;;  %v8880_v24 = vshrl.u32 %v3973_v5, 30  ;;  %v4236_v34 = vsub.s32 32, %v4235_v36  ;;  %v4229_v53 = vor.u32 8388608, %v4228_v60  ;;  %v4234_v0 = vshrl.u32 %v4233_v45, 5 }
 0x361   : > { %v4095_v41 = vand.u32 2147483647, %v4094_v21  ;;  %v4238_v35 = vshll.u32 %v6628_v3, %v4235_v36  ;;  %v4241_v4 = vshll.u32 %v6629_v22, %v4235_v36  ;;  %v4244_v11 = vshll.u32 %v6630_v26, %v4235_v36 }
 0x362   : > { %v3975_v32 = vshll.u32 %v8880_v24, 30  ;;  %v4239_v38 = vshrl.u32 %v6629_v22, %v4236_v34  ;;  %v4242_v57 = vshrl.u32 %v6630_v26, %v4236_v34  ;;  %v4245_v13 = vshrl.u32 %v6631_v28, %v4236_v34 }
 0x363   : > { %v4098_v43 = vmul.f32 %v4097_v15, %v4095_v41  ;;  %v4248_v31 = vshrl.u32 %v6632_v30, %v4236_v34  ;;  %v4251_v54 = vshrl.u32 %v6633_v8, %v4236_v34  ;;  %v8895_v27 = vand.u32 3, %v4104_v10 }
 0x364   : > { %v8890_v20 = vsub.s32 %v3972_v2, %v3975_v32  ;;  %v4247_v59 = vshll.u32 %v6631_v28, %v4235_v36  ;;  %v4250_v1 = vshll.u32 %v6632_v30, %v4235_v36  ;;  %v4240_v50 = vor.u32 %v4239_v38, %v4238_v35  ;;  %v8916_v35 = vpop.f32.mrb[28].mxu0 }
 0x365   : > { %v4099_v46 = vxor.u32 2147483648, %v4098_v43  ;;  %v4243_v23 = vor.u32 %v4242_v57, %v4241_v4  ;;  %v4246_v39 = vor.u32 %v4245_v13, %v4244_v11  ;;  %v8902_v2 = vshll.u32 %v4229_v53, 8  ;;  %v8923_v13 = vpop.f32.mrb[27].mxu1 }
 0x366   : > { %v3978_v58 = vsub.s32 0, %v8890_v20  ;;  %v4249_v14 = vor.u32 %v4248_v31, %v4247_v59  ;;  %v4252_v9 = vor.u32 %v4251_v54, %v4250_v1  ;;  %vm4253_vm12 = vcmp.lt.s32.totalorder %v4234_v0, 1 }
 0x367   : > { %v4100_v12 = vsel %vm4017_vm4, %v4099_v46, %v4098_v43  ;;  %v4121_v56 = vand.u32 2139095040, %v8838_v16  ;;  %v4237_v25 = vshrl.u32 %v6628_v3, %v4236_v34  ;;  %vm4254_vm13 = vcmp.lt.s32.totalorder %v4234_v0, 2 }
 0x368   : > { %v4103_v45 = vsel %vm8876_vm11, %v8501_v44, %v4100_v12  ;;  %v5542_v48 = vmin.u32 %v3978_v58, %v8890_v20  ;;  %vm4256_vm14 = vcmp.lt.s32.totalorder %v4234_v0, 4  ;;  %vm3914_vm15 = vcmp.lt.s32.totalorder %v8505_v40, 0 }
 0x369   : > { %6508 = vcosq.f32 %v4103_v45  ;;  %v4258_v49 = vsel %vm4256_vm14, %v4246_v39, 2102212464  ;;  %v4261_v18 = vsel %vm4253_vm12, %v4240_v50, %v4243_v23  ;;  %vm4255_vm0 = vcmp.lt.s32.totalorder %v4234_v0, 3 }
 0x36a   : > { %6510 = vsinq.f32 %v4103_v45  ;;  %v3980_v60 = vclz %v5542_v48  ;;  %v4262_v5 = vsel %vm4256_vm14, %v4249_v14, 920167782  ;;  %v4265_v36 = vsel %vm4253_vm12, %v4243_v23, %v4246_v39 }
 0x36b   : > { %v4266_v19 = vsel %vm4256_vm14, %v4252_v9, 1326507024  ;;  %v4257_v42 = vsel %vm4253_vm12, %v4237_v25, %v4240_v50  ;;  %v4263_v41 = vsel %vm4255_vm0, %v4246_v39, %v4262_v5  ;;  %v4259_v34 = vsel %vm4255_vm0, %v4243_v23, %v4258_v49 }
 0x36c   : > { %v5543_v21 = vadd.s32 4294967294, %v3980_v60  ;;  %v4267_v15 = vsel %vm4255_vm0, %v4249_v14, %v4266_v19  ;;  %v4264_v10 = vsel %vm4254_vm13, %v4261_v18, %v4263_v41  ;;  %v4122_v32 = vshrl.u32 %v4121_v56, 23 }
 0x36d   : > { %v4268_v53 = vsel %vm4254_vm13, %v4265_v36, %v4267_v15  ;;  %v3998_v38 = vsub.s32 4, %v8880_v24  ;;  %v8926_v4 = vmul.u32.u64.low %v8902_v2, %v4264_v10  ;;  %v8927_v11 = vmul.u32.u64.high %v8902_v2, %v4264_v10, %v8926_v4 }
 0x36e   : > { %vm5544_vm1 = vcmp.lt.s32.totalorder %v5543_v21, 0  ;;  %v8920_v43 = vmul.u32.u64.low %v8902_v2, %v4268_v53  ;;  %v8921_v57 = vmul.u32.u64.high %v8902_v2, %v4268_v53, %v8920_v43  ;;  %v5549_v54 = vadd.s32 4294967169, %v4122_v32 }
 0x36f   : > { %v3983_v31 = vsel %vm5544_vm1, 0, %v5543_v21  ;;  %vm4107_vm2 = vweird.f32 %v8501_v44  ;;  %v3968_v46 = vadd.s32 %v8821_v17, %v8828_v52  ;;  %v4260_v58 = vsel %vm4254_vm13, %v4257_v42, %v4259_v34 }
 0x370   : > { %v3984_v59 = vsub.s32 32, %v3983_v31  ;;  %v3988_v1 = vsub.s32 4294967266, %v3983_v31  ;;  %vm4109_vm3 = vcmp.lt.s32.totalorder %v8895_v27, 2  ;;  %vm8937_vm4 = vcmp.le.f32.partialorder %v3912_v51, 0.7853982 }
 0x371   : > { %v4118_v23 = vand.u32 2147483647, %v8838_v16  ;;  %v4128_v39 = vadd.s32 1, %v5549_v54  ;;  %v3985_v12 = vshll.u32 %v8890_v20, %v3983_v31  ;;  %vm4278_vm5 = vc.u32 %v8921_v57, %v8926_v4 }
 0x372   : > { %v3986_v14 = vshrl.u32 %v3968_v46, %v3984_v59  ;;  %v3989_v9 = vadd.s32 127, %v3988_v1  ;;  %v3999_v52 = vsel %vm3914_vm15, %v3998_v38, %v8880_v24  ;;  %v4276_v51 = vmul.u32 %v8902_v2, %v4260_v58 }
 0x373   : > { %v6509_v17 = vpop.eup %6508  ;;  %v4279_v0 = vadd.s32 1, %v8927_v11  ;;  %vm4129_vm6 = vcmp.gt.s32.totalorder %v4128_v39, 0  ;;  %vm4113_vm7 = vcmp.eq.s32.totalorder %v8895_v27, 2  ;;  %vm4110_vm8 = vcmp.eq.s32.totalorder %v8895_v27, 0 }
 0x374   : > { %v6511_v45 = vpop.eup %6510  ;;  %v4114_v48 = vxor.u32 2147483648, %v6509_v17  ;;  %v3987_v56 = vor.u32 %v3986_v14, %v3985_v12  ;;  %v3990_v25 = vshll.u32 %v3989_v9, 23  ;;  %v4130_v20 = vsel %vm4129_vm6, %v4128_v39, 0 }
 0x375   : > { %v4111_v60 = vxor.u32 2147483648, %v6511_v45  ;;  %v4280_v49 = vsel %vm4278_vm5, %v4279_v0, %v8927_v11  ;;  %v4132_v18 = vand.u32 31, %v4130_v20  ;;  %v4001_v19 = vsel %vm8937_vm4, 0, %v3999_v52 }
 0x376   : > { %v4115_v24 = vsel %vm4113_vm7, %v4114_v48, %v6511_v45  ;;  %v3991_v5 = vor.u32 4788187, %v3990_v25  ;;  %v4281_v2 = vadd.s32 %v4280_v49, %v4276_v51  ;;  %v4125_v21 = vand.u32 8388607, %v4118_v23 }
 0x377   : > { %v4112_v36 = vsel %vm4110_vm8, %v6509_v17, %v4111_v60  ;;  %v4133_v42 = vsub.s32 32, %v4132_v18  ;;  %v3994_v34 = vcvt.s32.f32 %v3987_v56  ;;  %v4135_v32 = vshll.u32 %v6628_v3, %v4132_v18 }
 0x378   : > { %v4116_v41 = vsel %vm4109_vm3, %v4112_v36, %v4115_v24  ;;  %v3992_v15 = vand.u32 2147483647, %v3991_v5  ;;  %v4282_v10 = vadd.s32 536870912, %v4281_v2  ;;  %v4138_v54 = vshll.u32 %v6629_v22, %v4132_v18 }
 0x379   : > { %v4117_v53 = vsel %vm4107_vm2, nan, %v4116_v41  ;;  %v4136_v38 = vshrl.u32 %v6629_v22, %v4133_v42  ;;  %v4139_v43 = vshrl.u32 %v6630_v26, %v4133_v42  ;;  %v4142_v27 = vshrl.u32 %v6631_v28, %v4133_v42 }
 0x37a   : > { %5373 = vst [vmem:[%s7475_s30 + $0x98] sm:$0xff] %v4117_v53  ;;  %v3995_v31 = vmul.f32 %v3994_v34, %v3992_v15  ;;  %v8965_v11 = vshrl.u32 %v4282_v10, 30  ;;  %v4131_v46 = vshrl.u32 %v4130_v20, 5  ;;  %v4141_v59 = vshll.u32 %v6630_v26, %v4132_v18 }
 0x37b   : > { %v4144_v44 = vshll.u32 %v6631_v28, %v4132_v18  ;;  %v4145_v1 = vshrl.u32 %v6632_v30, %v4133_v42  ;;  %v4137_v12 = vor.u32 %v4136_v38, %v4135_v32  ;;  %v4140_v14 = vor.u32 %v4139_v43, %v4138_v54 }
 0x37c   : > { %v3996_v58 = vxor.u32 2147483648, %v3995_v31  ;;  %v4284_v39 = vshll.u32 %v8965_v11, 30  ;;  %v4143_v9 = vor.u32 %v4142_v27, %v4141_v59  ;;  %v4147_v52 = vshll.u32 %v6632_v30, %v4132_v18  ;;  %v8997_v27 = vpop.f32.mrb[28].mxu1 }
 0x37d   : > { %v4146_v17 = vor.u32 %v4145_v1, %v4144_v44  ;;  %v4148_v51 = vshrl.u32 %v6633_v8, %v4133_v42  ;;  %v8977_v45 = vand.u32 3, %v4001_v19  ;;  %v4126_v56 = vor.u32 8388608, %v4125_v21  ;;  %v8988_v19 = vpop.f32.mrb[29].mxu0 }
 0x37e   : > { %v3997_v0 = vsel %vm3914_vm15, %v3996_v58, %v3995_v31  ;;  %v8979_v48 = vsub.s32 %v4281_v2, %v4284_v39  ;;  %v4134_v20 = vshrl.u32 %v6628_v3, %v4133_v42  ;;  %v4430_v49 = vand.u32 2139095040, %v8842_v37 }
 0x37f   : > { %v4000_v25 = vsel %vm8937_vm4, %v8505_v40, %v3997_v0  ;;  %v4149_v60 = vor.u32 %v4148_v51, %v4147_v52  ;;  %vm4150_vm9 = vcmp.lt.s32.totalorder %v4131_v46, 1  ;;  %vm4153_vm10 = vcmp.lt.s32.totalorder %v4131_v46, 4 }
 0x380   : > { %6512 = vcosq.f32 %v4000_v25  ;;  %v4287_v18 = vsub.s32 0, %v8979_v48  ;;  %v4155_v24 = vsel %vm4153_vm10, %v4143_v9, 2102212464  ;;  %v4158_v5 = vsel %vm4150_vm9, %v4137_v12, %v4140_v14 }
 0x381   : > { %6514 = vsinq.f32 %v4000_v25  ;;  %v4159_v2 = vsel %vm4153_vm10, %v4146_v17, 920167782  ;;  %vm4151_vm11 = vcmp.lt.s32.totalorder %v4131_v46, 2  ;;  %vm4152_vm12 = vcmp.lt.s32.totalorder %v4131_v46, 3 }
 0x382   : > { %v5554_v36 = vmin.u32 %v4287_v18, %v8979_v48  ;;  %v4166_v50 = vshll.u32 %v4126_v56, 8  ;;  %v4154_v21 = vsel %vm4150_vm9, %v4134_v20, %v4137_v12  ;;  %v4160_v42 = vsel %vm4152_vm12, %v4143_v9, %v4159_v2 }
 0x383   : > { %v4162_v41 = vsel %vm4150_vm9, %v4140_v14, %v4143_v9  ;;  %v4163_v15 = vsel %vm4153_vm10, %v4149_v60, 1326507024  ;;  %v4156_v10 = vsel %vm4152_vm12, %v4140_v14, %v4155_v24  ;;  %v4161_v53 = vsel %vm4151_vm11, %v4158_v5, %v4160_v42 }
 0x384   : > { %v4289_v34 = vclz %v5554_v36  ;;  %v4164_v32 = vsel %vm4152_vm12, %v4146_v17, %v4163_v15  ;;  %v4307_v38 = vsub.s32 4, %v8965_v11  ;;  %v4431_v58 = vshrl.u32 %v4430_v49, 23 }
 0x385   : > { %v4165_v43 = vsel %vm4151_vm11, %v4162_v41, %v4164_v32  ;;  %v8993_v31 = vmul.u32.u64.low %v4166_v50, %v4161_v53  ;;  %v8994_v54 = vmul.u32.u64.high %v4166_v50, %v4161_v53, %v8993_v31  ;;  %vm4004_vm13 = vweird.f32 %v8505_v40 }
 0x386   : > { %v5555_v59 = vadd.s32 4294967294, %v4289_v34  ;;  %v8999_v44 = vmul.u32.u64.low %v4166_v50, %v4165_v43  ;;  %v9000_v1 = vmul.u32.u64.high %v4166_v50, %v4165_v43, %v8999_v44  ;;  %vm4006_vm14 = vcmp.lt.s32.totalorder %v8977_v45, 2 }
 0x387   : > { %vm4223_vm15 = vcmp.lt.s32.totalorder %v8509_v7, 0  ;;  %v4157_v39 = vsel %vm4151_vm11, %v4154_v21, %v4156_v10  ;;  %vm4007_vm0 = vcmp.eq.s32.totalorder %v8977_v45, 0  ;;  %vm4010_vm1 = vcmp.eq.s32.totalorder %v8977_v45, 2 }
 0x388   : > { %vm5556_vm2 = vcmp.lt.s32.totalorder %v5555_v59, 0  ;;  %v5561_v12 = vadd.s32 4294967169, %v4431_v58  ;;  %v4277_v14 = vadd.s32 %v8926_v4, %v8921_v57  ;;  %v4176_v17 = vadd.s32 1, %v8994_v54 }
 0x389   : > { %v4292_v9 = vsel %vm5556_vm2, 0, %v5555_v59  ;;  %v4427_v52 = vand.u32 2147483647, %v8842_v37  ;;  %v4308_v46 = vsel %vm4223_vm15, %v4307_v38, %v8965_v11  ;;  %v4173_v25 = vmul.u32 %v4166_v50, %v4157_v39 }
 0x38a   : > { %v6513_v51 = vpop.eup %6512  ;;  %v4293_v0 = vsub.s32 32, %v4292_v9  ;;  %v4297_v56 = vsub.s32 4294967266, %v4292_v9  ;;  %v4294_v49 = vshll.u32 %v8979_v48, %v4292_v9  ;;  %vm4175_vm3 = vc.u32 %v9000_v1, %v8993_v31 }
 0x38b   : > { %v6515_v20 = vpop.eup %6514  ;;  %v4011_v60 = vxor.u32 2147483648, %v6513_v51  ;;  %v4437_v57 = vadd.s32 1, %v5561_v12  ;;  %v4177_v5 = vsel %vm4175_vm3, %v4176_v17, %v8994_v54  ;;  %v4434_v11 = vand.u32 8388607, %v4427_v52 }
 0x38c   : > { %v4008_v4 = vxor.u32 2147483648, %v6515_v20  ;;  %v4295_v18 = vshrl.u32 %v4277_v14, %v4293_v0  ;;  %v4298_v24 = vadd.s32 127, %v4297_v56  ;;  %v4178_v36 = vadd.s32 %v4177_v5, %v4173_v25 }
 0x38d   : > { %v4012_v2 = vsel %vm4010_vm1, %v4011_v60, %v6515_v20  ;;  %vm4438_vm4 = vcmp.gt.s32.totalorder %v4437_v57, 0  ;;  %v4327_v10 = vand.u32 2139095040, %v8846_v63  ;;  %vm9033_vm5 = vcmp.le.f32.partialorder %v4221_v47, 0.7853982 }
 0x38e   : > { %v4009_v48 = vsel %vm4007_vm0, %v6513_v51, %v4008_v4  ;;  %v4296_v50 = vor.u32 %v4295_v18, %v4294_v49  ;;  %v4299_v21 = vshll.u32 %v4298_v24, 23  ;;  %v4439_v42 = vsel %vm4438_vm4, %v4437_v57, 0 }
 0x38f   : > { %v4013_v41 = vsel %vm4006_vm14, %v4009_v48, %v4012_v2  ;;  %v4179_v15 = vadd.s32 536870912, %v4178_v36  ;;  %v4441_v34 = vand.u32 31, %v4439_v42  ;;  %v4310_v44 = vsel %vm9033_vm5, 0, %v4308_v46 }
 0x390   : > { %v4014_v53 = vsel %vm4004_vm13, nan, %v4013_v41  ;;  %v4300_v32 = vor.u32 4788187, %v4299_v21  ;;  %v4303_v59 = vcvt.s32.f32 %v4296_v50  ;;  %v4435_v58 = vor.u32 8388608, %v4434_v11 }
 0x391   : > { %5372 = vst [vmem:[%s7475_s30 + $0x90] sm:$0xff] %v4014_v53  ;;  %v9037_v43 = vshrl.u32 %v4179_v15, 30  ;;  %v4442_v54 = vsub.s32 32, %v4441_v34  ;;  %v4444_v39 = vshll.u32 %v6628_v3, %v4441_v34  ;;  %v4328_v14 = vshrl.u32 %v4327_v10, 23 }
 0x392   : > { %v4301_v45 = vand.u32 2147483647, %v4300_v32  ;;  %v4447_v56 = vshll.u32 %v6629_v22, %v4441_v34  ;;  %v4450_v46 = vshll.u32 %v6630_v26, %v4441_v34  ;;  %v4440_v60 = vshrl.u32 %v4439_v42, 5 }
 0x393   : > { %v4181_v40 = vshll.u32 %v9037_v43, 30  ;;  %v4445_v12 = vshrl.u32 %v6629_v22, %v4442_v54  ;;  %v4448_v9 = vshrl.u32 %v6630_v26, %v4442_v54  ;;  %v4451_v17 = vshrl.u32 %v6631_v28, %v4442_v54 }
 0x394   : > { %v4304_v47 = vmul.f32 %v4303_v59, %v4301_v45  ;;  %v4454_v51 = vshrl.u32 %v6632_v30, %v4442_v54  ;;  %v4457_v25 = vshrl.u32 %v6633_v8, %v4442_v54  ;;  %v4453_v49 = vshll.u32 %v6631_v28, %v4441_v34  ;;  %v9068_v59 = vpop.f32.mrb[30].mxu0 }
 0x395   : > { %v9047_v0 = vsub.s32 %v4178_v36, %v4181_v40  ;;  %v4456_v57 = vshll.u32 %v6632_v30, %v4441_v34  ;;  %v4446_v18 = vor.u32 %v4445_v12, %v4444_v39  ;;  %v4449_v24 = vor.u32 %v4448_v9, %v4447_v56  ;;  %v9070_v39 = vpop.f32.mrb[29].mxu1 }
 0x396   : > { %v4305_v20 = vxor.u32 2147483648, %v4304_v47  ;;  %v4452_v5 = vor.u32 %v4451_v17, %v4450_v46  ;;  %v9057_v36 = vand.u32 3, %v4310_v44  ;;  %v4455_v11 = vor.u32 %v4454_v51, %v4453_v49 }
 0x397   : > { %v4184_v4 = vsub.s32 0, %v9047_v0  ;;  %v4458_v48 = vor.u32 %v4457_v25, %v4456_v57  ;;  %v9063_v42 = vshll.u32 %v4435_v58, 8  ;;  %v5557_v41 = vadd.s32 4294967169, %v4328_v14 }
 0x398   : > { %v4306_v2 = vsel %vm4223_vm15, %v4305_v20, %v4304_v47  ;;  %v4443_v15 = vshrl.u32 %v6628_v3, %v4442_v54  ;;  %vm4459_vm6 = vcmp.lt.s32.totalorder %v4440_v60, 1  ;;  %vm4462_vm7 = vcmp.lt.s32.totalorder %v4440_v60, 4 }
 0x399   : > { %v4309_v50 = vsel %vm9033_vm5, %v8509_v7, %v4306_v2  ;;  %v5550_v21 = vmin.u32 %v4184_v4, %v9047_v0  ;;  %v4464_v10 = vsel %vm4462_vm7, %v4452_v5, 2102212464  ;;  %v4467_v53 = vsel %vm4459_vm6, %v4446_v18, %v4449_v24 }
 0x39a   : > { %6516 = vcosq.f32 %v4309_v50  ;;  %vm4461_vm8 = vcmp.lt.s32.totalorder %v4440_v60, 3  ;;  %v4468_v32 = vsel %vm4462_vm7, %v4455_v11, 920167782  ;;  %v4471_v38 = vsel %vm4459_vm6, %v4449_v24, %v4452_v5 }
 0x39b   : > { %6518 = vsinq.f32 %v4309_v50  ;;  %v4186_v34 = vclz %v5550_v21  ;;  %v4472_v45 = vsel %vm4462_vm7, %v4458_v48, 1326507024  ;;  %vm4460_vm9 = vcmp.lt.s32.totalorder %v4440_v60, 2 }
 0x39c   : > { %v4469_v58 = vsel %vm4461_vm8, %v4452_v5, %v4468_v32  ;;  %v4473_v40 = vsel %vm4461_vm8, %v4455_v11, %v4472_v45  ;;  %v4463_v54 = vsel %vm4459_vm6, %v4443_v15, %v4446_v18  ;;  %v4465_v12 = vsel %vm4461_vm8, %v4449_v24, %v4464_v10 }
 0x39d   : > { %v5551_v44 = vadd.s32 4294967294, %v4186_v34  ;;  %v4470_v14 = vsel %vm4460_vm9, %v4467_v53, %v4469_v58  ;;  %v4474_v47 = vsel %vm4460_vm9, %v4471_v38, %v4473_v40  ;;  %vm9077_vm10 = vcmp.le.f32.partialorder %v4118_v23, 0.7853982 }
 0x39e   : > { %v9082_v17 = vmul.u32.u64.low %v9063_v42, %v4474_v47  ;;  %v9083_v51 = vmul.u32.u64.high %v9063_v42, %v4474_v47, %v9082_v17  ;;  %v4334_v56 = vadd.s32 1, %v5557_v41  ;;  %v4204_v25 = vsub.s32 4, %v9037_v43 }
 0x39f   : > { %vm5552_vm11 = vcmp.lt.s32.totalorder %v5551_v44, 0  ;;  %v9087_v20 = vmul.u32.u64.low %v9063_v42, %v4470_v14  ;;  %v9088_v49 = vmul.u32.u64.high %v9063_v42, %v4470_v14, %v9087_v20  ;;  %vm4313_vm12 = vweird.f32 %v8509_v7 }
 0x3a0   : > { %v4189_v46 = vsel %vm5552_vm11, 0, %v5551_v44  ;;  %v4174_v23 = vadd.s32 %v8993_v31, %v9000_v1  ;;  %vm4335_vm13 = vcmp.gt.s32.totalorder %v4334_v56, 0  ;;  %vm4315_vm14 = vcmp.lt.s32.totalorder %v9057_v36, 2 }
 0x3a1   : > { %v4190_v57 = vsub.s32 32, %v4189_v46  ;;  %v4194_v4 = vsub.s32 4294967266, %v4189_v46  ;;  %vm4120_vm15 = vcmp.lt.s32.totalorder %v8838_v16, 0  ;;  %v4466_v18 = vsel %vm4460_vm9, %v4463_v54, %v4465_v12 }
 0x3a2   : > { %v4336_v24 = vsel %vm4335_vm13, %v4334_v56, 0  ;;  %v4191_v5 = vshll.u32 %v9047_v0, %v4189_v46  ;;  %vm4484_vm0 = vc.u32 %v9083_v51, %v9087_v20  ;;  %v4205_v31 = vsel %vm4120_vm15, %v4204_v25, %v9037_v43 }
 0x3a3   : > { %v4192_v2 = vshrl.u32 %v4174_v23, %v4190_v57  ;;  %v4195_v11 = vadd.s32 127, %v4194_v4  ;;  %v4485_v1 = vadd.s32 1, %v9088_v49  ;;  %v4324_v50 = vand.u32 2147483647, %v8846_v63 }
 0x3a4   : > { %v6517_v48 = vpop.eup %6516  ;;  %v4338_v21 = vand.u32 31, %v4336_v24  ;;  %v4482_v0 = vmul.u32 %v9063_v42, %v4466_v18  ;;  %vm4319_vm1 = vcmp.eq.s32.totalorder %v9057_v36, 2  ;;  %vm4316_vm2 = vcmp.eq.s32.totalorder %v9057_v36, 0 }
 0x3a5   : > { %v6519_v60 = vpop.eup %6518  ;;  %v4320_v41 = vxor.u32 2147483648, %v6517_v48  ;;  %v4193_v15 = vor.u32 %v4192_v2, %v4191_v5  ;;  %v4196_v34 = vshll.u32 %v4195_v11, 23  ;;  %v4486_v53 = vsel %vm4484_vm0, %v4485_v1, %v9088_v49 }
 0x3a6   : > { %v4317_v10 = vxor.u32 2147483648, %v6519_v60  ;;  %v4339_v32 = vsub.s32 32, %v4338_v21  ;;  %v4487_v45 = vadd.s32 %v4486_v53, %v4482_v0  ;;  %v4207_v58 = vsel %vm9077_vm10, 0, %v4205_v31 }
 0x3a7   : > { %v4321_v43 = vsel %vm4319_vm1, %v4320_v41, %v6519_v60  ;;  %v4197_v38 = vor.u32 4788187, %v4196_v34  ;;  %v4331_v40 = vand.u32 8388607, %v4324_v50  ;;  %v9113_v42 = vshrl.u32 %v4336_v24, 5 }
 0x3a8   : > { %v4318_v44 = vsel %vm4316_vm2, %v6517_v48, %v4317_v10  ;;  %v4200_v14 = vcvt.s32.f32 %v4193_v15  ;;  %v4488_v47 = vadd.s32 536870912, %v4487_v45  ;;  %v4342_v56 = vshrl.u32 %v6629_v22, %v4339_v32 }
 0x3a9   : > { %v4322_v54 = vsel %vm4315_vm14, %v4318_v44, %v4321_v43  ;;  %v4198_v12 = vand.u32 2147483647, %v4197_v38  ;;  %v4345_v46 = vshrl.u32 %v6630_v26, %v4339_v32  ;;  %v4348_v25 = vshrl.u32 %v6631_v28, %v4339_v32 }
 0x3aa   : > { %v4323_v17 = vsel %vm4313_vm12, nan, %v4322_v54  ;;  %v9123_v23 = vshrl.u32 %v4488_v47, 30  ;;  %v4341_v57 = vshll.u32 %v6628_v3, %v4338_v21  ;;  %v4347_v36 = vshll.u32 %v6630_v26, %v4338_v21 }
 0x3ab   : > { %5375 = vst [vmem:[%s7475_s30 + $0xa8] sm:$0xff] %v4323_v17  ;;  %v4201_v49 = vmul.f32 %v4200_v14, %v4198_v12  ;;  %v4344_v4 = vshll.u32 %v6629_v22, %v4338_v21  ;;  %v4350_v18 = vshll.u32 %v6631_v28, %v4338_v21  ;;  %v4351_v7 = vshrl.u32 %v6632_v30, %v4339_v32  ;;  %v9156_v17 = vpop.f32.mrb[31].mxu0 }
 0x3ac   : > { %v4354_v24 = vshrl.u32 %v6633_v8, %v4339_v32  ;;  %v4490_v2 = vshll.u32 %v9123_v23, 30  ;;  %v4332_v11 = vor.u32 8388608, %v4331_v40  ;;  %v4349_v48 = vor.u32 %v4348_v25, %v4347_v36 }
 0x3ad   : > { %v4202_v5 = vxor.u32 2147483648, %v4201_v49  ;;  %v4343_v31 = vor.u32 %v4342_v56, %v4341_v57  ;;  %v4346_v1 = vor.u32 %v4345_v46, %v4344_v4  ;;  %v4352_v60 = vor.u32 %v4351_v7, %v4350_v18 }
 0x3ae   : > { %v4353_v41 = vshll.u32 %v6632_v30, %v4338_v21  ;;  %v9135_v34 = vand.u32 3, %v4207_v58  ;;  %v9137_v0 = vsub.s32 %v4487_v45, %v4490_v2  ;;  %v4636_v10 = vand.u32 2139095040, %v8850_v61  ;;  %v9171_v2 = vpop.f32.mrb[30].mxu1 }
 0x3af   : > { %v4203_v15 = vsel %vm4120_vm15, %v4202_v5, %v4201_v49  ;;  %v4340_v43 = vshrl.u32 %v6628_v3, %v4339_v32  ;;  %vm4359_vm3 = vcmp.lt.s32.totalorder %v9113_v42, 4  ;;  %vm4356_vm4 = vcmp.lt.s32.totalorder %v9113_v42, 1 }
 0x3b0   : > { %v4206_v53 = vsel %vm9077_vm10, %v8838_v16, %v4203_v15  ;;  %v4355_v38 = vor.u32 %v4354_v24, %v4353_v41  ;;  %v4493_v21 = vsub.s32 0, %v9137_v0  ;;  %v4361_v45 = vsel %vm4359_vm3, %v4349_v48, 2102212464 }
 0x3b1   : > { %6520 = vcosq.f32 %v4206_v53  ;;  %v4364_v44 = vsel %vm4356_vm4, %v4343_v31, %v4346_v1  ;;  %v4365_v58 = vsel %vm4359_vm3, %v4352_v60, 920167782  ;;  %v4372_v9 = vshll.u32 %v4332_v11, 8 }
 0x3b2   : > { %6522 = vsinq.f32 %v4206_v53  ;;  %v5562_v40 = vmin.u32 %v4493_v21, %v9137_v0  ;;  %vm4357_vm5 = vcmp.lt.s32.totalorder %v9113_v42, 2  ;;  %vm4358_vm6 = vcmp.lt.s32.totalorder %v9113_v42, 3 }
 0x3b3   : > { %v4360_v32 = vsel %vm4356_vm4, %v4340_v43, %v4343_v31  ;;  %v4362_v54 = vsel %vm4358_vm6, %v4346_v1, %v4361_v45  ;;  %v4366_v12 = vsel %vm4358_vm6, %v4349_v48, %v4365_v58  ;;  %v4368_v14 = vsel %vm4356_vm4, %v4346_v1, %v4349_v48 }
 0x3b4   : > { %v4369_v47 = vsel %vm4359_vm3, %v4355_v38, 1326507024  ;;  %v4495_v56 = vclz %v5562_v40  ;;  %v4367_v46 = vsel %vm4357_vm5, %v4364_v44, %v4366_v12  ;;  %v4637_v49 = vshrl.u32 %v4636_v10, 23 }
 0x3b5   : > { %v4370_v25 = vsel %vm4358_vm6, %v4352_v60, %v4369_v47  ;;  %v9162_v36 = vmul.u32.u64.low %v4372_v9, %v4367_v46  ;;  %v9163_v4 = vmul.u32.u64.high %v4372_v9, %v4367_v46, %v9162_v36  ;;  %vm4212_vm7 = vcmp.lt.s32.totalorder %v9135_v34, 2 }
 0x3b6   : > { %v4371_v57 = vsel %vm4357_vm5, %v4368_v14, %v4370_v25  ;;  %vm4429_vm8 = vcmp.lt.s32.totalorder %v8842_v37, 0  ;;  %v5563_v18 = vadd.s32 4294967294, %v4495_v56  ;;  %v5569_v5 = vadd.s32 4294967169, %v4637_v49 }
 0x3b7   : > { %v9168_v7 = vmul.u32.u64.low %v4372_v9, %v4371_v57  ;;  %v9169_v24 = vmul.u32.u64.high %v4372_v9, %v4371_v57, %v9168_v7  ;;  %vm4210_vm9 = vweird.f32 %v8838_v16  ;;  %vm4216_vm10 = vcmp.eq.s32.totalorder %v9135_v34, 2 }
 0x3b8   : > { %v4363_v11 = vsel %vm4357_vm5, %v4360_v32, %v4362_v54  ;;  %v9179_v48 = vadd.f32 %v8647_v55, %v8729_v29  ;;  %v9183_v31 = vadd.f32 %v8727_v33, %v8830_v62  ;;  %vm5564_vm11 = vcmp.lt.s32.totalorder %v5563_v18, 0 }
 0x3b9   : > { %v4643_v1 = vadd.s32 1, %v5569_v5  ;;  %v9187_v60 = vadd.f32 %v8815_v6, %v8923_v13  ;;  %v9191_v41 = vadd.f32 %v8916_v35, %v8997_v27  ;;  %v4483_v42 = vadd.s32 %v9087_v20, %v9083_v51 }
 0x3ba   : > { %v4498_v15 = vsel %vm5564_vm11, 0, %v5563_v18  ;;  %v4382_v55 = vadd.s32 1, %v9163_v4  ;;  %v4633_v29 = vand.u32 2147483647, %v8850_v61  ;;  %v4513_v53 = vsub.s32 4, %v9123_v23 }
 0x3bb   : > { %v6521_v33 = vpop.eup %6520  ;;  %v4499_v62 = vsub.s32 32, %v4498_v15  ;;  %v4503_v10 = vsub.s32 4294967266, %v4498_v15  ;;  %v4379_v43 = vmul.u32 %v4372_v9, %v4363_v11  ;;  %v4500_v38 = vshll.u32 %v9137_v0, %v4498_v15 }
 0x3bc   : > { %v6523_v6 = vpop.eup %6522  ;;  %v4217_v13 = vxor.u32 2147483648, %v6521_v33  ;;  %vm4381_vm12 = vc.u32 %v9169_v24, %v9162_v36  ;;  %vm4644_vm13 = vcmp.gt.s32.totalorder %v4643_v1, 0  ;;  %vm4213_vm14 = vcmp.eq.s32.totalorder %v9135_v34, 0 }
 0x3bd   : > { %v4214_v35 = vxor.u32 2147483648, %v6523_v6  ;;  %v4501_v27 = vshrl.u32 %v4483_v42, %v4499_v62  ;;  %v4504_v51 = vadd.s32 127, %v4503_v10  ;;  %v4383_v20 = vsel %vm4381_vm12, %v4382_v55, %v9163_v4 }
 0x3be   : > { %v4218_v21 = vsel %vm4216_vm10, %v4217_v13, %v6523_v6  ;;  %v4384_v45 = vadd.s32 %v4383_v20, %v4379_v43  ;;  %v4645_v44 = vsel %vm4644_vm13, %v4643_v1, 0  ;;  %v4640_v40 = vand.u32 8388607, %v4633_v29 }
 0x3bf   : > { %v4215_v58 = vsel %vm4213_vm14, %v6521_v33, %v4214_v35  ;;  %v4502_v9 = vor.u32 %v4501_v27, %v4500_v38  ;;  %v4505_v0 = vshll.u32 %v4504_v51, 23  ;;  %v4514_v54 = vsel %vm4429_vm8, %v4513_v53, %v9123_v23 }
 0x3c0   : > { %v4219_v32 = vsel %vm4212_vm7, %v4215_v58, %v4218_v21  ;;  %v4385_v12 = vadd.s32 536870912, %v4384_v45  ;;  %v4647_v14 = vand.u32 31, %v4645_v44  ;;  %vm9217_vm15 = vcmp.le.f32.partialorder %v4427_v52, 0.7853982 }
 0x3c1   : > { %v4220_v47 = vsel %vm4210_vm9, nan, %v4219_v32  ;;  %v4506_v56 = vor.u32 4788187, %v4505_v0  ;;  %v4509_v57 = vcvt.s32.f32 %v4502_v9  ;;  %v4516_v23 = vsel %vm9217_vm15, 0, %v4514_v54 }
 0x3c2   : > { %5374 = vst [vmem:[%s7475_s30 + $0xa0] sm:$0xff] %v4220_v47  ;;  %v9221_v25 = vshrl.u32 %v4385_v12, 30  ;;  %v4648_v34 = vsub.s32 32, %v4647_v14  ;;  %v4641_v4 = vor.u32 8388608, %v4640_v40  ;;  %v4646_v18 = vshrl.u32 %v4645_v44, 5 }
 0x3c3   : > { %v4507_v49 = vand.u32 2147483647, %v4506_v56  ;;  %v4650_v7 = vshll.u32 %v6628_v3, %v4647_v14  ;;  %v4653_v55 = vshll.u32 %v6629_v22, %v4647_v14  ;;  %v4656_v33 = vshll.u32 %v6630_v26, %v4647_v14 }
 0x3c4   : > { %v4387_v16 = vshll.u32 %v9221_v25, 30  ;;  %v4651_v5 = vshrl.u32 %v6629_v22, %v4648_v34  ;;  %v4654_v11 = vshrl.u32 %v6630_v26, %v4648_v34  ;;  %v4657_v1 = vshrl.u32 %v6631_v28, %v4648_v34 }
 0x3c5   : > { %v4510_v52 = vmul.f32 %v4509_v57, %v4507_v49  ;;  %v4660_v42 = vshrl.u32 %v6632_v30, %v4648_v34  ;;  %v4663_v62 = vshrl.u32 %v6633_v8, %v4648_v34  ;;  %v9236_v53 = vand.u32 3, %v4516_v23 }
 0x3c6   : > { %v9231_v15 = vsub.s32 %v4384_v45, %v4387_v16  ;;  %v4659_v43 = vshll.u32 %v6631_v28, %v4647_v14  ;;  %v4662_v6 = vshll.u32 %v6632_v30, %v4647_v14  ;;  %v4652_v38 = vor.u32 %v4651_v5, %v4650_v7 }
 0x3c7   : > { %v4511_v10 = vxor.u32 2147483648, %v4510_v52  ;;  %v4655_v35 = vor.u32 %v4654_v11, %v4653_v55  ;;  %v4658_v27 = vor.u32 %v4657_v1, %v4656_v33  ;;  %v9243_v45 = vshll.u32 %v4641_v4, 8  ;;  %v9262_v11 = vpop.f32.mrb[31].mxu1 }
 0x3c8   : > { %v4390_v13 = vsub.s32 0, %v9231_v15  ;;  %v4661_v20 = vor.u32 %v4660_v42, %v4659_v43  ;;  %v4664_v21 = vor.u32 %v4663_v62, %v4662_v6  ;;  %vm4665_vm0 = vcmp.lt.s32.totalorder %v4646_v18, 1 }
 0x3c9   : > { %v4512_v51 = vsel %vm4429_vm8, %v4511_v10, %v4510_v52  ;;  %v4533_v9 = vand.u32 2139095040, %v9179_v48  ;;  %v4649_v0 = vshrl.u32 %v6628_v3, %v4648_v34  ;;  %vm4666_vm1 = vcmp.lt.s32.totalorder %v4646_v18, 2 }
 0x3ca   : > { %v4515_v44 = vsel %vm9217_vm15, %v8842_v37, %v4512_v51  ;;  %v5558_v58 = vmin.u32 %v4390_v13, %v9231_v15  ;;  %vm4668_vm2 = vcmp.lt.s32.totalorder %v4646_v18, 4  ;;  %vm4326_vm3 = vcmp.lt.s32.totalorder %v8846_v63, 0 }
 0x3cb   : > { %6524 = vcosq.f32 %v4515_v44  ;;  %v4670_v32 = vsel %vm4668_vm2, %v4658_v27, 2102212464  ;;  %v4673_v54 = vsel %vm4665_vm0, %v4652_v38, %v4655_v35  ;;  %vm4667_vm4 = vcmp.lt.s32.totalorder %v4646_v18, 3 }
 0x3cc   : > { %6526 = vsinq.f32 %v4515_v44  ;;  %v4392_v40 = vclz %v5558_v58  ;;  %v4674_v12 = vsel %vm4668_vm2, %v4661_v20, 920167782  ;;  %v4677_v14 = vsel %vm4665_vm0, %v4655_v35, %v4658_v27 }
 0x3cd   : > { %v4678_v47 = vsel %vm4668_vm2, %v4664_v21, 1326507024  ;;  %v4669_v46 = vsel %vm4665_vm0, %v4649_v0, %v4652_v38  ;;  %v4675_v49 = vsel %vm4667_vm4, %v4658_v27, %v4674_v12  ;;  %v4671_v34 = vsel %vm4667_vm4, %v4655_v35, %v4670_v32 }
 0x3ce   : > { %v5559_v56 = vadd.s32 4294967294, %v4392_v40  ;;  %v4679_v57 = vsel %vm4667_vm4, %v4661_v20, %v4678_v47  ;;  %v4676_v23 = vsel %vm4666_vm1, %v4673_v54, %v4675_v49  ;;  %v4534_v16 = vshrl.u32 %v4533_v9, 23 }
 0x3cf   : > { %v4680_v4 = vsel %vm4666_vm1, %v4677_v14, %v4679_v57  ;;  %v4410_v7 = vsub.s32 4, %v9221_v25  ;;  %v9265_v42 = vmul.u32.u64.low %v9243_v45, %v4676_v23  ;;  %v9266_v55 = vmul.u32.u64.high %v9243_v45, %v4676_v23, %v9265_v42 }
 0x3d0   : > { %vm5560_vm5 = vcmp.lt.s32.totalorder %v5559_v56, 0  ;;  %v9259_v5 = vmul.u32.u64.low %v9243_v45, %v4680_v4  ;;  %v9260_v52 = vmul.u32.u64.high %v9243_v45, %v4680_v4, %v9259_v5  ;;  %v5565_v33 = vadd.s32 4294967169, %v4534_v16 }
 0x3d1   : > { %v4395_v1 = vsel %vm5560_vm5, 0, %v5559_v56  ;;  %vm4519_vm6 = vweird.f32 %v8842_v37  ;;  %v4380_v62 = vadd.s32 %v9162_v36, %v9169_v24  ;;  %v4672_v6 = vsel %vm4666_vm1, %v4669_v46, %v4671_v34 }
 0x3d2   : > { %v4396_v10 = vsub.s32 32, %v4395_v1  ;;  %v4400_v43 = vsub.s32 4294967266, %v4395_v1  ;;  %vm4521_vm7 = vcmp.lt.s32.totalorder %v9236_v53, 2  ;;  %vm9276_vm8 = vcmp.le.f32.partialorder %v4324_v50, 0.7853982 }
 0x3d3   : > { %v4530_v38 = vand.u32 2147483647, %v9179_v48  ;;  %v4540_v35 = vadd.s32 1, %v5565_v33  ;;  %v4397_v27 = vshll.u32 %v9231_v15, %v4395_v1  ;;  %vm4690_vm9 = vc.u32 %v9260_v52, %v9265_v42 }
 0x3d4   : > { %v4398_v51 = vshrl.u32 %v4380_v62, %v4396_v10  ;;  %v4401_v20 = vadd.s32 127, %v4400_v43  ;;  %v4411_v24 = vsel %vm4326_vm3, %v4410_v7, %v9221_v25  ;;  %v4688_v50 = vmul.u32 %v9243_v45, %v4672_v6 }
 0x3d5   : > { %v6525_v36 = vpop.eup %6524  ;;  %v4691_v18 = vadd.s32 1, %v9266_v55  ;;  %vm4541_vm10 = vcmp.gt.s32.totalorder %v4540_v35, 0  ;;  %vm4525_vm11 = vcmp.eq.s32.totalorder %v9236_v53, 2  ;;  %vm4522_vm12 = vcmp.eq.s32.totalorder %v9236_v53, 0 }
 0x3d6   : > { %v6527_v21 = vpop.eup %6526  ;;  %v4526_v44 = vxor.u32 2147483648, %v6525_v36  ;;  %v4399_v58 = vor.u32 %v4398_v51, %v4397_v27  ;;  %v4402_v9 = vshll.u32 %v4401_v20, 23  ;;  %v4542_v15 = vsel %vm4541_vm10, %v4540_v35, 0 }
 0x3d7   : > { %v4523_v0 = vxor.u32 2147483648, %v6527_v21  ;;  %v4692_v40 = vsel %vm4690_vm9, %v4691_v18, %v9266_v55  ;;  %v4544_v32 = vand.u32 31, %v4542_v15  ;;  %v4413_v14 = vsel %vm9276_vm8, 0, %v4411_v24 }
 0x3d8   : > { %v4527_v25 = vsel %vm4525_vm11, %v4526_v44, %v6527_v21  ;;  %v4403_v54 = vor.u32 4788187, %v4402_v9  ;;  %v4693_v45 = vadd.s32 %v4692_v40, %v4688_v50  ;;  %v4537_v47 = vand.u32 8388607, %v4530_v38 }
 0x3d9   : > { %v4524_v12 = vsel %vm4522_vm12, %v6525_v36, %v4523_v0  ;;  %v4545_v56 = vsub.s32 32, %v4544_v32  ;;  %v4406_v57 = vcvt.s32.f32 %v4399_v58  ;;  %v4547_v4 = vshll.u32 %v6628_v3, %v4544_v32 }
 0x3da   : > { %v4528_v46 = vsel %vm4521_vm7, %v4524_v12, %v4527_v25  ;;  %v4404_v49 = vand.u32 2147483647, %v4403_v54  ;;  %v4694_v34 = vadd.s32 536870912, %v4693_v45  ;;  %v4550_v55 = vshll.u32 %v6629_v22, %v4544_v32 }
 0x3db   : > { %v4529_v23 = vsel %vm4519_vm6, nan, %v4528_v46  ;;  %v4548_v16 = vshrl.u32 %v6629_v22, %v4545_v56  ;;  %v4551_v7 = vshrl.u32 %v6630_v26, %v4545_v56  ;;  %v4554_v53 = vshrl.u32 %v6631_v28, %v4545_v56 }
 0x3dc   : > { %5377 = vst [vmem:[%s7475_s30 + $0xb8] sm:$0xff] %v4529_v23  ;;  %v4407_v5 = vmul.f32 %v4406_v57, %v4404_v49  ;;  %v9304_v1 = vshrl.u32 %v4694_v34, 30  ;;  %v4543_v33 = vshrl.u32 %v4542_v15, 5  ;;  %v4553_v62 = vshll.u32 %v6630_v26, %v4544_v32 }
 0x3dd   : > { %v4556_v37 = vshll.u32 %v6631_v28, %v4544_v32  ;;  %v4557_v10 = vshrl.u32 %v6632_v30, %v4545_v56  ;;  %v4549_v35 = vor.u32 %v4548_v16, %v4547_v4  ;;  %v4552_v27 = vor.u32 %v4551_v7, %v4550_v55 }
 0x3de   : > { %v4408_v43 = vxor.u32 2147483648, %v4407_v5  ;;  %v4696_v6 = vshll.u32 %v9304_v1, 30  ;;  %v4555_v51 = vor.u32 %v4554_v53, %v4553_v62  ;;  %v4559_v36 = vshll.u32 %v6632_v30, %v4544_v32 }
 0x3df   : > { %v4558_v20 = vor.u32 %v4557_v10, %v4556_v37  ;;  %v4560_v24 = vshrl.u32 %v6633_v8, %v4545_v56  ;;  %v9316_v18 = vand.u32 3, %v4413_v14  ;;  %v4538_v44 = vor.u32 8388608, %v4537_v47 }
 0x3e0   : > { %v4409_v50 = vsel %vm4326_vm3, %v4408_v43, %v4407_v5  ;;  %v9318_v21 = vsub.s32 %v4693_v45, %v4696_v6  ;;  %v4546_v9 = vshrl.u32 %v6628_v3, %v4545_v56  ;;  %v4842_v0 = vand.u32 2139095040, %v9183_v31 }
 0x3e1   : > { %v4412_v58 = vsel %vm9276_vm8, %v8846_v63, %v4409_v50  ;;  %v4561_v15 = vor.u32 %v4560_v24, %v4559_v36  ;;  %vm4562_vm13 = vcmp.lt.s32.totalorder %v4543_v33, 1  ;;  %vm4565_vm14 = vcmp.lt.s32.totalorder %v4543_v33, 4 }
 0x3e2   : > { %6528 = vcosq.f32 %v4412_v58  ;;  %v4699_v40 = vsub.s32 0, %v9318_v21  ;;  %v4567_v32 = vsel %vm4565_vm14, %v4555_v51, 2102212464  ;;  %v4570_v25 = vsel %vm4562_vm13, %v4549_v35, %v4552_v27 }
 0x3e3   : > { %6530 = vsinq.f32 %v4412_v58  ;;  %v4571_v54 = vsel %vm4565_vm14, %v4558_v20, 920167782  ;;  %vm4563_vm15 = vcmp.lt.s32.totalorder %v4543_v33, 2  ;;  %vm4564_vm0 = vcmp.lt.s32.totalorder %v4543_v33, 3 }
 0x3e4   : > { %v5570_v45 = vmin.u32 %v4699_v40, %v9318_v21  ;;  %v4578_v13 = vshll.u32 %v4538_v44, 8  ;;  %v4566_v12 = vsel %vm4562_vm13, %v4546_v9, %v4549_v35  ;;  %v4572_v14 = vsel %vm4564_vm0, %v4555_v51, %v4571_v54 }
 0x3e5   : > { %v4574_v47 = vsel %vm4562_vm13, %v4552_v27, %v4555_v51  ;;  %v4575_v56 = vsel %vm4565_vm14, %v4561_v15, 1326507024  ;;  %v4568_v49 = vsel %vm4564_vm0, %v4552_v27, %v4567_v32  ;;  %v4573_v57 = vsel %vm4563_vm15, %v4570_v25, %v4572_v14 }
 0x3e6   : > { %v4701_v46 = vclz %v5570_v45  ;;  %v4576_v34 = vsel %vm4564_vm0, %v4558_v20, %v4575_v56  ;;  %v4719_v23 = vsub.s32 4, %v9304_v1  ;;  %v4843_v62 = vshrl.u32 %v4842_v0, 23 }
 0x3e7   : > { %v4577_v4 = vsel %vm4563_vm15, %v4574_v47, %v4576_v34  ;;  %v9330_v16 = vmul.u32.u64.low %v4578_v13, %v4573_v57  ;;  %v9331_v7 = vmul.u32.u64.high %v4578_v13, %v4573_v57, %v9330_v16  ;;  %vm4416_vm1 = vweird.f32 %v8846_v63 }
 0x3e8   : > { %v5571_v5 = vadd.s32 4294967294, %v4701_v46  ;;  %v9334_v55 = vmul.u32.u64.low %v4578_v13, %v4577_v4  ;;  %v9335_v53 = vmul.u32.u64.high %v4578_v13, %v4577_v4, %v9334_v55  ;;  %vm4418_vm2 = vcmp.lt.s32.totalorder %v9316_v18, 2 }
 0x3e9   : > { %vm4635_vm3 = vcmp.lt.s32.totalorder %v8850_v61, 0  ;;  %v4569_v37 = vsel %vm4563_vm15, %v4566_v12, %v4568_v49  ;;  %vm4419_vm4 = vcmp.eq.s32.totalorder %v9316_v18, 0  ;;  %vm4422_vm5 = vcmp.eq.s32.totalorder %v9316_v18, 2 }
 0x3ea   : > { %vm5572_vm6 = vcmp.lt.s32.totalorder %v5571_v5, 0  ;;  %v5577_v10 = vadd.s32 4294967169, %v4843_v62  ;;  %v4689_v43 = vadd.s32 %v9265_v42, %v9260_v52  ;;  %v4588_v35 = vadd.s32 1, %v9331_v7 }
 0x3eb   : > { %v4704_v6 = vsel %vm5572_vm6, 0, %v5571_v5  ;;  %v4839_v27 = vand.u32 2147483647, %v9183_v31  ;;  %v4720_v33 = vsel %vm4635_vm3, %v4719_v23, %v9304_v1  ;;  %v4585_v24 = vmul.u32 %v4578_v13, %v4569_v37 }
 0x3ec   : > { %v6529_v51 = vpop.eup %6528  ;;  %v4705_v20 = vsub.s32 32, %v4704_v6  ;;  %v4709_v36 = vsub.s32 4294967266, %v4704_v6  ;;  %v4706_v58 = vshll.u32 %v9318_v21, %v4704_v6  ;;  %vm4587_vm7 = vc.u32 %v9335_v53, %v9330_v16 }
 0x3ed   : > { %v6531_v50 = vpop.eup %6530  ;;  %v4423_v44 = vxor.u32 2147483648, %v6529_v51  ;;  %v4849_v52 = vadd.s32 1, %v5577_v10  ;;  %v4589_v0 = vsel %vm4587_vm7, %v4588_v35, %v9331_v7  ;;  %v4846_v1 = vand.u32 8388607, %v4839_v27 }
 0x3ee   : > { %v4420_v42 = vxor.u32 2147483648, %v6531_v50  ;;  %v4707_v9 = vshrl.u32 %v4689_v43, %v4705_v20  ;;  %v4710_v15 = vadd.s32 127, %v4709_v36  ;;  %v4590_v32 = vadd.s32 %v4589_v0, %v4585_v24 }
 0x3ef   : > { %v4424_v40 = vsel %vm4422_vm5, %v4423_v44, %v6531_v50  ;;  %vm4850_vm8 = vcmp.gt.s32.totalorder %v4849_v52, 0  ;;  %v4739_v47 = vand.u32 2139095040, %v9187_v60  ;;  %vm9368_vm9 = vcmp.le.f32.partialorder %v4633_v29, 0.7853982 }
 0x3f0   : > { %v4421_v21 = vsel %vm4419_vm4, %v6529_v51, %v4420_v42  ;;  %v4708_v25 = vor.u32 %v4707_v9, %v4706_v58  ;;  %v4711_v54 = vshll.u32 %v4710_v15, 23  ;;  %v4851_v45 = vsel %vm4850_vm8, %v4849_v52, 0 }
 0x3f1   : > { %v4425_v13 = vsel %vm4418_vm2, %v4421_v21, %v4424_v40  ;;  %v4591_v12 = vadd.s32 536870912, %v4590_v32  ;;  %v4853_v14 = vand.u32 31, %v4851_v45  ;;  %v4722_v4 = vsel %vm9368_vm9, 0, %v4720_v33 }
 0x3f2   : > { %v4426_v56 = vsel %vm4416_vm1, nan, %v4425_v13  ;;  %v4712_v46 = vor.u32 4788187, %v4711_v54  ;;  %v4715_v23 = vcvt.s32.f32 %v4708_v25  ;;  %v4847_v7 = vor.u32 8388608, %v4846_v1 }
 0x3f3   : > { %5376 = vst [vmem:[%s7475_s30 + $0xb0] sm:$0xff] %v4426_v56  ;;  %v9372_v57 = vshrl.u32 %v4591_v12, 30  ;;  %v4854_v34 = vsub.s32 32, %v4853_v14  ;;  %v4856_v5 = vshll.u32 %v6628_v3, %v4853_v14  ;;  %v4740_v62 = vshrl.u32 %v4739_v47, 23 }
 0x3f4   : > { %v4713_v18 = vand.u32 2147483647, %v4712_v46  ;;  %v4859_v35 = vshll.u32 %v6629_v22, %v4853_v14  ;;  %v4862_v51 = vshll.u32 %v6630_v26, %v4853_v14  ;;  %v4852_v33 = vshrl.u32 %v4851_v45, 5 }
 0x3f5   : > { %v4593_v63 = vshll.u32 %v9372_v57, 30  ;;  %v4857_v55 = vshrl.u32 %v6629_v22, %v4854_v34  ;;  %v4860_v37 = vshrl.u32 %v6630_v26, %v4854_v34  ;;  %v4863_v10 = vshrl.u32 %v6631_v28, %v4854_v34 }
 0x3f6   : > { %v4716_v29 = vmul.f32 %v4715_v23, %v4713_v18  ;;  %v4866_v43 = vshrl.u32 %v6632_v30, %v4854_v34  ;;  %v4869_v20 = vshrl.u32 %v6633_v8, %v4854_v34  ;;  %v4865_v24 = vshll.u32 %v6631_v28, %v4853_v14 }
 0x3f7   : > { %v9382_v6 = vsub.s32 %v4590_v32, %v4593_v63  ;;  %v4868_v50 = vshll.u32 %v6632_v30, %v4853_v14  ;;  %v4858_v58 = vor.u32 %v4857_v55, %v4856_v5  ;;  %v4861_v52 = vor.u32 %v4860_v37, %v4859_v35 }
 0x3f8   : > { %v4717_v36 = vxor.u32 2147483648, %v4716_v29  ;;  %v4864_v42 = vor.u32 %v4863_v10, %v4862_v51  ;;  %v9392_v15 = vand.u32 3, %v4722_v4  ;;  %v4867_v0 = vor.u32 %v4866_v43, %v4865_v24 }
 0x3f9   : > { %v4596_v44 = vsub.s32 0, %v9382_v6  ;;  %v4870_v40 = vor.u32 %v4869_v20, %v4868_v50  ;;  %v4887_v21 = vshll.u32 %v4847_v7, 8  ;;  %v5573_v25 = vadd.s32 4294967169, %v4740_v62 }
 0x3fa   : > { %v4718_v9 = vsel %vm4635_vm3, %v4717_v36, %v4716_v29  ;;  %v4855_v54 = vshrl.u32 %v6628_v3, %v4854_v34  ;;  %vm4871_vm10 = vcmp.lt.s32.totalorder %v4852_v33, 1  ;;  %vm4874_vm11 = vcmp.lt.s32.totalorder %v4852_v33, 4 }
 0x3fb   : > { %v4721_v32 = vsel %vm9368_vm9, %v8850_v61, %v4718_v9  ;;  %v5566_v1 = vmin.u32 %v4596_v44, %v9382_v6  ;;  %v4876_v13 = vsel %vm4874_vm11, %v4864_v42, 2102212464  ;;  %v4879_v12 = vsel %vm4871_vm10, %v4858_v58, %v4861_v52 }
 0x3fc   : > { %6532 = vcosq.f32 %v4721_v32  ;;  %vm4873_vm12 = vcmp.lt.s32.totalorder %v4852_v33, 3  ;;  %v4880_v14 = vsel %vm4874_vm11, %v4867_v0, 920167782  ;;  %v4883_v47 = vsel %vm4871_vm10, %v4861_v52, %v4864_v42 }
 0x3fd   : > { %6534 = vsinq.f32 %v4721_v32  ;;  %v4598_v45 = vclz %v5566_v1  ;;  %v4884_v56 = vsel %vm4874_vm11, %v4870_v40, 1326507024  ;;  %vm4872_vm13 = vcmp.lt.s32.totalorder %v4852_v33, 2 }
 0x3fe   : > { %v4881_v49 = vsel %vm4873_vm12, %v4864_v42, %v4880_v14  ;;  %v4885_v18 = vsel %vm4873_vm12, %v4867_v0, %v4884_v56  ;;  %v4875_v23 = vsel %vm4871_vm10, %v4855_v54, %v4858_v58  ;;  %v4877_v4 = vsel %vm4873_vm12, %v4861_v52, %v4876_v13 }
 0x3ff   : > { %v5567_v46 = vadd.s32 4294967294, %v4598_v45  ;;  %v4882_v7 = vsel %vm4872_vm13, %v4879_v12, %v4881_v49  ;;  %v4886_v34 = vsel %vm4872_vm13, %v4883_v47, %v4885_v18  ;;  %vm9403_vm14 = vcmp.le.f32.partialorder %v4530_v38, 0.7853982 }
 0x400   : > { %v9407_v5 = vmul.u32.u64.low %v4887_v21, %v4886_v34  ;;  %v9408_v55 = vmul.u32.u64.high %v4887_v21, %v4886_v34, %v9407_v5  ;;  %v4746_v62 = vadd.s32 1, %v5573_v25  ;;  %v4616_v37 = vsub.s32 4, %v9372_v57 }
 0x401   : > { %vm5568_vm15 = vcmp.lt.s32.totalorder %v5567_v46, 0  ;;  %v9411_v10 = vmul.u32.u64.low %v4887_v21, %v4882_v7  ;;  %v9412_v43 = vmul.u32.u64.high %v4887_v21, %v4882_v7, %v9411_v10  ;;  %vm4725_vm0 = vweird.f32 %v8850_v61 }
 0x402   : > { %v4601_v29 = vsel %vm5568_vm15, 0, %v5567_v46  ;;  %v4586_v38 = vadd.s32 %v9330_v16, %v9335_v53  ;;  %vm4747_vm1 = vcmp.gt.s32.totalorder %v4746_v62, 0  ;;  %vm4727_vm2 = vcmp.lt.s32.totalorder %v9392_v15, 2 }
 0x403   : > { %v4602_v35 = vsub.s32 32, %v4601_v29  ;;  %v4606_v51 = vsub.s32 4294967266, %v4601_v29  ;;  %vm4532_vm3 = vcmp.lt.s32.totalorder %v9179_v48, 0  ;;  %v4878_v20 = vsel %vm4872_vm13, %v4875_v23, %v4877_v4 }
 0x404   : > { %v4748_v36 = vsel %vm4747_vm1, %v4746_v62, 0  ;;  %v4603_v24 = vshll.u32 %v9382_v6, %v4601_v29  ;;  %vm4896_vm4 = vc.u32 %v9408_v55, %v9411_v10  ;;  %v4617_v16 = vsel %vm4532_vm3, %v4616_v37, %v9372_v57 }
 0x405   : > { %v4604_v50 = vshrl.u32 %v4586_v38, %v4602_v35  ;;  %v4607_v44 = vadd.s32 127, %v4606_v51  ;;  %v4897_v53 = vadd.s32 1, %v9412_v43  ;;  %v4736_v52 = vand.u32 2147483647, %v9187_v60 }
 0x406   : > { %v6533_v58 = vpop.eup %6532  ;;  %v4750_v42 = vand.u32 31, %v4748_v36  ;;  %v4894_v6 = vmul.u32 %v4887_v21, %v4878_v20  ;;  %vm4731_vm5 = vcmp.eq.s32.totalorder %v9392_v15, 2  ;;  %vm4728_vm6 = vcmp.eq.s32.totalorder %v9392_v15, 0 }
 0x407   : > { %v6535_v33 = vpop.eup %6534  ;;  %v4732_v9 = vxor.u32 2147483648, %v6533_v58  ;;  %v4605_v0 = vor.u32 %v4604_v50, %v4603_v24  ;;  %v4608_v40 = vshll.u32 %v4607_v44, 23  ;;  %v4898_v1 = vsel %vm4896_vm4, %v4897_v53, %v9412_v43 }
 0x408   : > { %v4729_v32 = vxor.u32 2147483648, %v6535_v33  ;;  %v4751_v25 = vsub.s32 32, %v4750_v42  ;;  %v4899_v45 = vadd.s32 %v4898_v1, %v4894_v6  ;;  %v4619_v12 = vsel %vm9403_vm14, 0, %v4617_v16 }
 0x409   : > { %v4733_v57 = vsel %vm4731_vm5, %v4732_v9, %v6535_v33  ;;  %v4609_v54 = vor.u32 4788187, %v4608_v40  ;;  %v4743_v14 = vand.u32 8388607, %v4736_v52  ;;  %v9436_v21 = vshrl.u32 %v4748_v36, 5 }
 0x40a   : > { %v4730_v13 = vsel %vm4728_vm6, %v6533_v58, %v4729_v32  ;;  %v4612_v46 = vcvt.s32.f32 %v4605_v0  ;;  %v4900_v49 = vadd.s32 536870912, %v4899_v45  ;;  %v4754_v23 = vshrl.u32 %v6629_v22, %v4751_v25 }
 0x40b   : > { %v4734_v47 = vsel %vm4727_vm2, %v4730_v13, %v4733_v57  ;;  %v4610_v56 = vand.u32 2147483647, %v4609_v54  ;;  %v4757_v4 = vshrl.u32 %v6630_v26, %v4751_v25  ;;  %v4760_v7 = vshrl.u32 %v6631_v28, %v4751_v25 }
 0x40c   : > { %v4735_v18 = vsel %vm4725_vm0, nan, %v4734_v47  ;;  %v9446_v5 = vshrl.u32 %v4900_v49, 30  ;;  %v4753_v62 = vshll.u32 %v6628_v3, %v4750_v42  ;;  %v4759_v15 = vshll.u32 %v6630_v26, %v4750_v42 }
 0x40d   : > { %5379 = vst [vmem:[%s7475_s30 + $0xc8] sm:$0xff] %v4735_v18  ;;  %v4613_v34 = vmul.f32 %v4612_v46, %v4610_v56  ;;  %v4756_v29 = vshll.u32 %v6629_v22, %v4750_v42  ;;  %v4762_v37 = vshll.u32 %v6631_v28, %v4750_v42  ;;  %v4763_v61 = vshrl.u32 %v6632_v30, %v4751_v25 }
 0x40e   : > { %v4766_v43 = vshrl.u32 %v6633_v8, %v4751_v25  ;;  %v4902_v35 = vshll.u32 %v9446_v5, 30  ;;  %v4744_v51 = vor.u32 8388608, %v4743_v14  ;;  %v4761_v20 = vor.u32 %v4760_v7, %v4759_v15 }
 0x40f   : > { %v4614_v38 = vxor.u32 2147483648, %v4613_v34  ;;  %v4755_v36 = vor.u32 %v4754_v23, %v4753_v62  ;;  %v4758_v24 = vor.u32 %v4757_v4, %v4756_v29  ;;  %v4764_v50 = vor.u32 %v4763_v61, %v4762_v37 }
 0x410   : > { %v4765_v44 = vshll.u32 %v6632_v30, %v4750_v42  ;;  %v9458_v16 = vand.u32 3, %v4619_v12  ;;  %v9460_v53 = vsub.s32 %v4899_v45, %v4902_v35  ;;  %v5048_v33 = vand.u32 2139095040, %v9191_v41 }
 0x411   : > { %v4615_v58 = vsel %vm4532_vm3, %v4614_v38, %v4613_v34  ;;  %v4752_v0 = vshrl.u32 %v6628_v3, %v4751_v25  ;;  %vm4771_vm7 = vcmp.lt.s32.totalorder %v9436_v21, 4  ;;  %vm4768_vm8 = vcmp.lt.s32.totalorder %v9436_v21, 1 }
 0x412   : > { %v4618_v9 = vsel %vm9403_vm14, %v9179_v48, %v4615_v58  ;;  %v4767_v40 = vor.u32 %v4766_v43, %v4765_v44  ;;  %v4905_v42 = vsub.s32 0, %v9460_v53  ;;  %v4773_v6 = vsel %vm4771_vm7, %v4761_v20, 2102212464 }
 0x413   : > { %6536 = vcosq.f32 %v4618_v9  ;;  %v4776_v32 = vsel %vm4768_vm8, %v4755_v36, %v4758_v24  ;;  %v4777_v1 = vsel %vm4771_vm7, %v4764_v50, 920167782  ;;  %v4784_v63 = vshll.u32 %v4744_v51, 8 }
 0x414   : > { %6538 = vsinq.f32 %v4618_v9  ;;  %v5578_v57 = vmin.u32 %v4905_v42, %v9460_v53  ;;  %vm4769_vm9 = vcmp.lt.s32.totalorder %v9436_v21, 2  ;;  %vm4770_vm10 = vcmp.lt.s32.totalorder %v9436_v21, 3 }
 0x415   : > { %v4772_v25 = vsel %vm4768_vm8, %v4752_v0, %v4755_v36  ;;  %v4774_v54 = vsel %vm4770_vm10, %v4758_v24, %v4773_v6  ;;  %v4778_v45 = vsel %vm4770_vm10, %v4761_v20, %v4777_v1  ;;  %v4780_v13 = vsel %vm4768_vm8, %v4758_v24, %v4761_v20 }
 0x416   : > { %v4781_v12 = vsel %vm4771_vm7, %v4767_v40, 1326507024  ;;  %v4907_v14 = vclz %v5578_v57  ;;  %v4779_v47 = vsel %vm4769_vm9, %v4776_v32, %v4778_v45  ;;  %v5049_v46 = vshrl.u32 %v5048_v33, 23 }
 0x417   : > { %v4782_v56 = vsel %vm4770_vm10, %v4764_v50, %v4781_v12  ;;  %v9483_v18 = vmul.u32.u64.low %v4784_v63, %v4779_v47  ;;  %v9484_v23 = vmul.u32.u64.high %v4784_v63, %v4779_v47, %v9483_v18  ;;  %vm4841_vm11 = vcmp.lt.s32.totalorder %v9183_v31, 0 }
 0x418   : > { %v4783_v49 = vsel %vm4769_vm9, %v4780_v13, %v4782_v56  ;;  %v5579_v4 = vadd.s32 4294967294, %v4907_v14  ;;  %v5585_v62 = vadd.s32 4294967169, %v5049_v46  ;;  %vm4622_vm12 = vweird.f32 %v9179_v48 }
 0x419   : > { %v9488_v7 = vmul.u32.u64.low %v4784_v63, %v4783_v49  ;;  %v9489_v34 = vmul.u32.u64.high %v4784_v63, %v4783_v49, %v9488_v7  ;;  %vm4624_vm13 = vcmp.lt.s32.totalorder %v9458_v16, 2  ;;  %v4775_v15 = vsel %vm4769_vm9, %v4772_v25, %v4774_v54 }
 0x41a   : > { %v9497_v29 = vadd.f32 %v8988_v19, %v9070_v39  ;;  %v9501_v37 = vadd.f32 %v9068_v59, %v9171_v2  ;;  %vm4628_vm14 = vcmp.eq.s32.totalorder %v9458_v16, 2  ;;  %vm5580_vm15 = vcmp.lt.s32.totalorder %v5579_v4, 0 }
 0x41b   : > { %v5055_v61 = vadd.s32 1, %v5585_v62  ;;  %v9506_v43 = vadd.f32 %v9156_v17, %v9262_v11  ;;  %v4895_v21 = vadd.s32 %v9411_v10, %v9408_v55  ;;  %v4910_v38 = vsel %vm5580_vm15, 0, %v5579_v4 }
 0x41c   : > { %v4794_v35 = vadd.s32 1, %v9484_v23  ;;  %v5045_v19 = vand.u32 2147483647, %v9191_v41  ;;  %v4911_v51 = vsub.s32 32, %v4910_v38  ;;  %v4915_v59 = vsub.s32 4294967266, %v4910_v38 }
 0x41d   : > { %v6537_v39 = vpop.eup %6536  ;;  %v4925_v2 = vsub.s32 4, %v9446_v5  ;;  %v4791_v20 = vmul.u32 %v4784_v63, %v4775_v15  ;;  %v4912_v50 = vshll.u32 %v9460_v53, %v4910_v38  ;;  %vm4793_vm0 = vc.u32 %v9489_v34, %v9483_v18 }
 0x41e   : > { %v6539_v36 = vpop.eup %6538  ;;  %v4629_v24 = vxor.u32 2147483648, %v6537_v39  ;;  %vm5056_vm1 = vcmp.gt.s32.totalorder %v5055_v61, 0  ;;  %v4913_v11 = vshrl.u32 %v4895_v21, %v4911_v51  ;;  %v4916_v55 = vadd.s32 127, %v4915_v59 }
 0x41f   : > { %v4626_v17 = vxor.u32 2147483648, %v6539_v36  ;;  %v4795_v10 = vsel %vm4793_vm0, %v4794_v35, %v9484_v23  ;;  %vm4625_vm2 = vcmp.eq.s32.totalorder %v9458_v16, 0  ;;  %v5057_v33 = vsel %vm5056_vm1, %v5055_v61, 0 }
 0x420   : > { %v4630_v44 = vsel %vm4628_vm14, %v4629_v24, %v6539_v36  ;;  %v4796_v58 = vadd.s32 %v4795_v10, %v4791_v20  ;;  %v4914_v0 = vor.u32 %v4913_v11, %v4912_v50  ;;  %v4917_v53 = vshll.u32 %v4916_v55, 23 }
 0x421   : > { %v4627_v9 = vsel %vm4625_vm2, %v6537_v39, %v4626_v17  ;;  %v5052_v40 = vand.u32 8388607, %v5045_v19  ;;  %v4926_v6 = vsel %vm4841_vm11, %v4925_v2, %v9446_v5  ;;  %v5059_v1 = vand.u32 31, %v5057_v33 }
 0x422   : > { %v4631_v42 = vsel %vm4624_vm13, %v4627_v9, %v4630_v44  ;;  %v4797_v32 = vadd.s32 536870912, %v4796_v58  ;;  %v4918_v57 = vor.u32 4788187, %v4917_v53  ;;  %vm9532_vm3 = vcmp.le.f32.partialorder %v4839_v27, 0.7853982 }
 0x423   : > { %v4632_v63 = vsel %vm4622_vm12, nan, %v4631_v42  ;;  %v5060_v16 = vsub.s32 32, %v5059_v1  ;;  %v4921_v13 = vcvt.s32.f32 %v4914_v0  ;;  %v4928_v5 = vsel %vm9532_vm3, 0, %v4926_v6 }
 0x424   : > { %5378 = vst [vmem:[%s7475_s30 + $0xc0] sm:$0xff] %v4632_v63  ;;  %v9536_v54 = vshrl.u32 %v4797_v32, 30  ;;  %v4919_v45 = vand.u32 2147483647, %v4918_v57  ;;  %v5053_v12 = vor.u32 8388608, %v5052_v40  ;;  %v5058_v14 = vshrl.u32 %v5057_v33, 5 }
 0x425   : > { %v5062_v47 = vshll.u32 %v6628_v3, %v5059_v1  ;;  %v5063_v56 = vshrl.u32 %v6629_v22, %v5060_v16  ;;  %v5066_v46 = vshrl.u32 %v6630_v26, %v5060_v16  ;;  %v5069_v49 = vshrl.u32 %v6631_v28, %v5060_v16 }
 0x426   : > { %v4799_v48 = vshll.u32 %v9536_v54, 30  ;;  %v4922_v27 = vmul.f32 %v4921_v13, %v4919_v45  ;;  %v5072_v23 = vshrl.u32 %v6632_v30, %v5060_v16  ;;  %v5065_v7 = vshll.u32 %v6629_v22, %v5059_v1 }
 0x427   : > { %v5068_v62 = vshll.u32 %v6630_v26, %v5059_v1  ;;  %v5075_v15 = vshrl.u32 %v6633_v8, %v5060_v16  ;;  %v9551_v21 = vand.u32 3, %v4928_v5  ;;  %v5071_v38 = vshll.u32 %v6631_v28, %v5059_v1 }
 0x428   : > { %v9546_v4 = vsub.s32 %v4796_v58, %v4799_v48  ;;  %v4923_v61 = vxor.u32 2147483648, %v4922_v27  ;;  %v5074_v35 = vshll.u32 %v6632_v30, %v5059_v1  ;;  %v5064_v51 = vor.u32 %v5063_v56, %v5062_v47 }
 0x429   : > { %v5067_v59 = vor.u32 %v5066_v46, %v5065_v7  ;;  %v5070_v2 = vor.u32 %v5069_v49, %v5068_v62  ;;  %v5073_v36 = vor.u32 %v5072_v23, %v5071_v38  ;;  %v9558_v50 = vshll.u32 %v5053_v12, 8 }
 0x42a   : > { %v4802_v39 = vsub.s32 0, %v9546_v4  ;;  %v4924_v20 = vsel %vm4841_vm11, %v4923_v61, %v4922_v27  ;;  %v5076_v24 = vor.u32 %v5075_v15, %v5074_v35  ;;  %vm5077_vm4 = vcmp.lt.s32.totalorder %v5058_v14, 1 }
 0x42b   : > { %v4927_v17 = vsel %vm9532_vm3, %v9183_v31, %v4924_v20  ;;  %v4945_v55 = vand.u32 2139095040, %v9497_v29  ;;  %v5061_v10 = vshrl.u32 %v6628_v3, %v5060_v16  ;;  %vm5078_vm5 = vcmp.lt.s32.totalorder %v5058_v14, 2 }
 0x42c   : > { %v5574_v11 = vmin.u32 %v4802_v39, %v9546_v4  ;;  %6540 = vcosq.f32 %v4927_v17  ;;  %vm5080_vm6 = vcmp.lt.s32.totalorder %v5058_v14, 4  ;;  %vm4738_vm7 = vcmp.lt.s32.totalorder %v9187_v60, 0 }
 0x42d   : > { %6542 = vsinq.f32 %v4927_v17  ;;  %v5082_v58 = vsel %vm5080_vm6, %v5070_v2, 2102212464  ;;  %v5085_v33 = vsel %vm5077_vm4, %v5064_v51, %v5067_v59  ;;  %vm5079_vm8 = vcmp.lt.s32.totalorder %v5058_v14, 3 }
 0x42e   : > { %v4804_v44 = vclz %v5574_v11  ;;  %v5086_v9 = vsel %vm5080_vm6, %v5073_v36, 920167782  ;;  %v5089_v0 = vsel %vm5077_vm4, %v5067_v59, %v5070_v2  ;;  %v5090_v53 = vsel %vm5080_vm6, %v5076_v24, 1326507024 }
 0x42f   : > { %v5081_v42 = vsel %vm5077_vm4, %v5061_v10, %v5064_v51  ;;  %v5087_v6 = vsel %vm5079_vm8, %v5070_v2, %v5086_v9  ;;  %v5091_v32 = vsel %vm5079_vm8, %v5073_v36, %v5090_v53  ;;  %v5083_v1 = vsel %vm5079_vm8, %v5067_v59, %v5082_v58 }
 0x430   : > { %v5575_v40 = vadd.s32 4294967294, %v4804_v44  ;;  %v5088_v63 = vsel %vm5078_vm5, %v5085_v33, %v5087_v6  ;;  %v5092_v57 = vsel %vm5078_vm5, %v5089_v0, %v5091_v32  ;;  %v4946_v25 = vshrl.u32 %v4945_v55, 23 }
 0x431   : > { %v4822_v16 = vsub.s32 4, %v9536_v54  ;;  %v9574_v45 = vmul.u32.u64.low %v9558_v50, %v5092_v57  ;;  %v9575_v13 = vmul.u32.u64.high %v9558_v50, %v5092_v57, %v9574_v45  ;;  %vm4931_vm10 = vweird.f32 %v9183_v31 }
 0x432   : > { %vm5576_vm9 = vcmp.lt.s32.totalorder %v5575_v40, 0  ;;  %v9578_v12 = vmul.u32.u64.low %v9558_v50, %v5088_v63  ;;  %v9579_v48 = vmul.u32.u64.high %v9558_v50, %v5088_v63, %v9578_v12  ;;  %v5581_v47 = vadd.s32 4294967169, %v4946_v25 }
 0x433   : > { %v4807_v5 = vsel %vm5576_vm9, 0, %v5575_v40  ;;  %v4792_v56 = vadd.s32 %v9483_v18, %v9489_v34  ;;  %v5084_v49 = vsel %vm5078_vm5, %v5081_v42, %v5083_v1  ;;  %vm4933_vm11 = vcmp.lt.s32.totalorder %v9551_v21, 2 }
 0x434   : > { %v4808_v27 = vsub.s32 32, %v4807_v5  ;;  %v4812_v46 = vsub.s32 4294967266, %v4807_v5  ;;  %vm9589_vm12 = vcmp.le.f32.partialorder %v4736_v52, 0.7853982  ;;  %v4942_v7 = vand.u32 2147483647, %v9497_v29 }
 0x435   : > { %v4952_v62 = vadd.s32 1, %v5581_v47  ;;  %v4809_v15 = vshll.u32 %v9546_v4, %v4807_v5  ;;  %vm5102_vm13 = vc.u32 %v9575_v13, %v9578_v12  ;;  %v4823_v34 = vsel %vm4738_vm7, %v4822_v16, %v9536_v54 }
 0x436   : > { %v4810_v61 = vshrl.u32 %v4792_v56, %v4808_v27  ;;  %v4813_v38 = vadd.s32 127, %v4812_v46  ;;  %v6541_v18 = vpop.eup %6540  ;;  %v5100_v52 = vmul.u32 %v9558_v50, %v5084_v49  ;;  %v5103_v14 = vadd.s32 1, %v9579_v48 }
 0x437   : > { %vm4953_vm14 = vcmp.gt.s32.totalorder %v4952_v62, 0  ;;  %v6543_v35 = vpop.eup %6542  ;;  %v4938_v39 = vxor.u32 2147483648, %v6541_v18  ;;  %vm4937_vm15 = vcmp.eq.s32.totalorder %v9551_v21, 2  ;;  %vm4934_vm0 = vcmp.eq.s32.totalorder %v9551_v21, 0 }
 0x438   : > { %v4811_v51 = vor.u32 %v4810_v61, %v4809_v15  ;;  %v4814_v59 = vshll.u32 %v4813_v38, 23  ;;  %v4954_v4 = vsel %vm4953_vm14, %v4952_v62, 0  ;;  %v4935_v2 = vxor.u32 2147483648, %v6543_v35 }
 0x439   : > { %v5104_v20 = vsel %vm5102_vm13, %v5103_v14, %v9579_v48  ;;  %v4956_v36 = vand.u32 31, %v4954_v4  ;;  %v4939_v54 = vsel %vm4937_vm15, %v4938_v39, %v6543_v35  ;;  %v4825_v11 = vsel %vm9589_vm12, 0, %v4823_v34 }
 0x43a   : > { %v4815_v24 = vor.u32 4788187, %v4814_v59  ;;  %v5105_v50 = vadd.s32 %v5104_v20, %v5100_v52  ;;  %v4936_v17 = vsel %vm4934_vm0, %v6541_v18, %v4935_v2  ;;  %v4949_v55 = vand.u32 8388607, %v4942_v7 }
 0x43b   : > { %v4957_v10 = vsub.s32 32, %v4956_v36  ;;  %v4940_v44 = vsel %vm4933_vm11, %v4936_v17, %v4939_v54  ;;  %v4818_v33 = vcvt.s32.f32 %v4811_v51  ;;  %v4959_v53 = vshll.u32 %v6628_v3, %v4956_v36 }
 0x43c   : > { %v4816_v58 = vand.u32 2147483647, %v4815_v24  ;;  %v5106_v9 = vadd.s32 536870912, %v5105_v50  ;;  %v4941_v0 = vsel %vm4931_vm10, nan, %v4940_v44  ;;  %v4962_v1 = vshll.u32 %v6629_v22, %v4956_v36 }
 0x43d   : > { %v4960_v40 = vshrl.u32 %v6629_v22, %v4957_v10  ;;  %v4963_v42 = vshrl.u32 %v6630_v26, %v4957_v10  ;;  %5381 = vst [vmem:[%s7475_s30 + $0xd8] sm:$0xff] %v4941_v0  ;;  %v4966_v21 = vshrl.u32 %v6631_v28, %v4957_v10  ;;  %v4955_v63 = vshrl.u32 %v4954_v4, 5 }
 0x43e   : > { %v4819_v6 = vmul.f32 %v4818_v33, %v4816_v58  ;;  %v9617_v32 = vshrl.u32 %v5106_v9, 30  ;;  %v4965_v57 = vshll.u32 %v6630_v26, %v4956_v36  ;;  %v4968_v31 = vshll.u32 %v6631_v28, %v4956_v36 }
 0x43f   : > { %v4969_v25 = vshrl.u32 %v6632_v30, %v4957_v10  ;;  %v4961_v5 = vor.u32 %v4960_v40, %v4959_v53  ;;  %v4964_v48 = vor.u32 %v4963_v42, %v4962_v1  ;;  %v4971_v27 = vshll.u32 %v6632_v30, %v4956_v36 }
 0x440   : > { %v4820_v16 = vxor.u32 2147483648, %v4819_v6  ;;  %v5108_v45 = vshll.u32 %v9617_v32, 30  ;;  %v4967_v47 = vor.u32 %v4966_v21, %v4965_v57  ;;  %v4972_v46 = vshrl.u32 %v6633_v8, %v4957_v10 }
 0x441   : > { %v4970_v56 = vor.u32 %v4969_v25, %v4968_v31  ;;  %v9629_v62 = vand.u32 3, %v4825_v11  ;;  %v4950_v61 = vor.u32 8388608, %v4949_v55  ;;  %v4958_v18 = vshrl.u32 %v6628_v3, %v4957_v10 }
 0x442   : > { %v4821_v49 = vsel %vm4738_vm7, %v4820_v16, %v4819_v6  ;;  %v9631_v15 = vsub.s32 %v5105_v50, %v5108_v45  ;;  %v4973_v34 = vor.u32 %v4972_v46, %v4971_v27  ;;  %v5254_v52 = vand.u32 2139095040, %v9501_v37 }
 0x443   : > { %v4824_v38 = vsel %vm9589_vm12, %v9187_v60, %v4821_v49  ;;  %vm4974_vm1 = vcmp.lt.s32.totalorder %v4955_v63, 1  ;;  %vm4977_vm2 = vcmp.lt.s32.totalorder %v4955_v63, 4  ;;  %vm4975_vm3 = vcmp.lt.s32.totalorder %v4955_v63, 2 }
 0x444   : > { %6544 = vcosq.f32 %v4824_v38  ;;  %v5111_v14 = vsub.s32 0, %v9631_v15  ;;  %v4979_v35 = vsel %vm4977_vm2, %v4967_v47, 2102212464  ;;  %v4982_v39 = vsel %vm4974_vm1, %v4961_v5, %v4964_v48 }
 0x445   : > { %6546 = vsinq.f32 %v4824_v38  ;;  %v4983_v51 = vsel %vm4977_vm2, %v4970_v56, 920167782  ;;  %vm4976_vm4 = vcmp.lt.s32.totalorder %v4955_v63, 3  ;;  %v4990_v23 = vshll.u32 %v4950_v61, 8 }
 0x446   : > { %v5586_v59 = vmin.u32 %v5111_v14, %v9631_v15  ;;  %v4978_v4 = vsel %vm4974_vm1, %v4958_v18, %v4961_v5  ;;  %v4984_v2 = vsel %vm4976_vm4, %v4967_v47, %v4983_v51  ;;  %v4986_v20 = vsel %vm4974_vm1, %v4964_v48, %v4967_v47 }
 0x447   : > { %v4987_v36 = vsel %vm4977_vm2, %v4973_v34, 1326507024  ;;  %v4980_v24 = vsel %vm4976_vm4, %v4964_v48, %v4979_v35  ;;  %v4985_v50 = vsel %vm4975_vm3, %v4982_v39, %v4984_v2  ;;  %v5255_v9 = vshrl.u32 %v5254_v52, 23 }
 0x448   : > { %v5113_v54 = vclz %v5586_v59  ;;  %v4988_v17 = vsel %vm4976_vm4, %v4970_v56, %v4987_v36  ;;  %v9642_v55 = vmul.u32.u64.low %v4990_v23, %v4985_v50  ;;  %v9643_v10 = vmul.u32.u64.high %v4990_v23, %v4985_v50, %v9642_v55 }
 0x449   : > { %v4989_v11 = vsel %vm4975_vm3, %v4986_v20, %v4988_v17  ;;  %vm4828_vm5 = vweird.f32 %v9187_v60  ;;  %vm4830_vm6 = vcmp.lt.s32.totalorder %v9629_v62, 2  ;;  %v4981_v0 = vsel %vm4975_vm3, %v4978_v4, %v4980_v24 }
 0x44a   : > { %v5587_v44 = vadd.s32 4294967294, %v5113_v54  ;;  %v9646_v58 = vmul.u32.u64.low %v4990_v23, %v4989_v11  ;;  %v9647_v33 = vmul.u32.u64.high %v4990_v23, %v4989_v11, %v9646_v58  ;;  %vm4831_vm7 = vcmp.eq.s32.totalorder %v9629_v62, 0 }
 0x44b   : > { %vm4834_vm8 = vcmp.eq.s32.totalorder %v9629_v62, 2  ;;  %v5593_v53 = vadd.s32 4294967169, %v5255_v9  ;;  %v5101_v40 = vadd.s32 %v9578_v12, %v9575_v13  ;;  %v5000_v6 = vadd.s32 1, %v9643_v10 }
 0x44c   : > { %vm5588_vm9 = vcmp.lt.s32.totalorder %v5587_v44, 0  ;;  %v5251_v1 = vand.u32 2147483647, %v9501_v37  ;;  %v5131_v63 = vsub.s32 4, %v9617_v32  ;;  %v4997_v25 = vmul.u32 %v4990_v23, %v4981_v0 }
 0x44d   : > { %v5116_v42 = vsel %vm5588_vm9, 0, %v5587_v44  ;;  %vm4999_vm10 = vc.u32 %v9647_v33, %v9642_v55  ;;  %v5261_v48 = vadd.s32 1, %v5593_v53  ;;  %v5151_v35 = vand.u32 2139095040, %v9506_v43 }
 0x44e   : > { %v6545_v21 = vpop.eup %6544  ;;  %v5117_v57 = vsub.s32 32, %v5116_v42  ;;  %v5121_v31 = vsub.s32 4294967266, %v5116_v42  ;;  %v5118_v5 = vshll.u32 %v9631_v15, %v5116_v42  ;;  %v5001_v56 = vsel %vm4999_vm10, %v5000_v6, %v9643_v10 }
 0x44f   : > { %v6547_v16 = vpop.eup %6546  ;;  %v4835_v45 = vxor.u32 2147483648, %v6545_v21  ;;  %v5002_v46 = vadd.s32 %v5001_v56, %v4997_v25  ;;  %v5258_v49 = vand.u32 8388607, %v5251_v1  ;;  %vm5262_vm11 = vcmp.gt.s32.totalorder %v5261_v48, 0 }
 0x450   : > { %v4832_v13 = vxor.u32 2147483648, %v6547_v16  ;;  %v5119_v12 = vshrl.u32 %v5101_v40, %v5117_v57  ;;  %v5122_v47 = vadd.s32 127, %v5121_v31  ;;  %v5263_v18 = vsel %vm5262_vm11, %v5261_v48, 0 }
 0x451   : > { %v4836_v27 = vsel %vm4834_vm8, %v4835_v45, %v6547_v16  ;;  %v5003_v52 = vadd.s32 536870912, %v5002_v46  ;;  %v5265_v14 = vand.u32 31, %v5263_v18  ;;  %vm9677_vm12 = vcmp.le.f32.partialorder %v5045_v19, 0.7853982 }
 0x452   : > { %v4833_v15 = vsel %vm4831_vm7, %v6545_v21, %v4832_v13  ;;  %v5120_v61 = vor.u32 %v5119_v12, %v5118_v5  ;;  %v5123_v38 = vshll.u32 %v5122_v47, 23  ;;  %vm5047_vm13 = vcmp.lt.s32.totalorder %v9191_v41, 0 }
 0x453   : > { %v4837_v34 = vsel %vm4830_vm6, %v4833_v15, %v4836_v27  ;;  %v9682_v23 = vshrl.u32 %v5003_v52, 30  ;;  %v5266_v62 = vsub.s32 32, %v5265_v14  ;;  %v5132_v60 = vsel %vm5047_vm13, %v5131_v63, %v9617_v32 }
 0x454   : > { %v4838_v39 = vsel %vm4828_vm5, nan, %v4837_v34  ;;  %v5124_v51 = vor.u32 4788187, %v5123_v38  ;;  %v5127_v2 = vcvt.s32.f32 %v5120_v61  ;;  %v5259_v20 = vor.u32 8388608, %v5258_v49 }
 0x455   : > { %5380 = vst [vmem:[%s7475_s30 + $0xd0] sm:$0xff] %v4838_v39  ;;  %v5005_v36 = vshll.u32 %v9682_v23, 30  ;;  %v5268_v54 = vshll.u32 %v6628_v3, %v5265_v14  ;;  %v5269_v19 = vshrl.u32 %v6629_v22, %v5266_v62  ;;  %v5152_v24 = vshrl.u32 %v5151_v35, 23 }
 0x456   : > { %v5125_v4 = vand.u32 2147483647, %v5124_v51  ;;  %v5272_v17 = vshrl.u32 %v6630_v26, %v5266_v62  ;;  %v5275_v11 = vshrl.u32 %v6631_v28, %v5266_v62  ;;  %v5278_v10 = vshrl.u32 %v6632_v30, %v5266_v62 }
 0x457   : > { %v9693_v44 = vsub.s32 %v5002_v46, %v5005_v36  ;;  %v5271_v58 = vshll.u32 %v6629_v22, %v5265_v14  ;;  %v5274_v32 = vshll.u32 %v6630_v26, %v5265_v14  ;;  %v5281_v9 = vshrl.u32 %v6633_v8, %v5266_v62 }
 0x458   : > { %v5128_v50 = vmul.f32 %v5127_v2, %v5125_v4  ;;  %v5264_v53 = vshrl.u32 %v5263_v18, 5  ;;  %v5277_v40 = vshll.u32 %v6631_v28, %v5265_v14  ;;  %v5280_v42 = vshll.u32 %v6632_v30, %v5265_v14 }
 0x459   : > { %v5008_v6 = vsub.s32 0, %v9693_v44  ;;  %v5270_v21 = vor.u32 %v5269_v19, %v5268_v54  ;;  %v5273_v57 = vor.u32 %v5272_v17, %v5271_v58  ;;  %v5276_v31 = vor.u32 %v5275_v11, %v5274_v32 }
 0x45a   : > { %v5129_v0 = vxor.u32 2147483648, %v5128_v50  ;;  %v5134_v25 = vsel %vm9677_vm12, 0, %v5132_v60  ;;  %v5279_v16 = vor.u32 %v5278_v10, %v5277_v40  ;;  %v5282_v45 = vor.u32 %v5281_v9, %v5280_v42 }
 0x45b   : > { %v5582_v48 = vmin.u32 %v5008_v6, %v9693_v44  ;;  %v5299_v13 = vshll.u32 %v5259_v20, 8  ;;  %v5589_v12 = vadd.s32 4294967169, %v5152_v24  ;;  %v5267_v47 = vshrl.u32 %v6628_v3, %v5266_v62 }
 0x45c   : > { %v5130_v63 = vsel %vm5047_vm13, %v5129_v0, %v5128_v50  ;;  %vm5283_vm14 = vcmp.lt.s32.totalorder %v5264_v53, 1  ;;  %vm5286_vm15 = vcmp.lt.s32.totalorder %v5264_v53, 4  ;;  %vm5285_vm0 = vcmp.lt.s32.totalorder %v5264_v53, 3 }
 0x45d   : > { %v5133_v5 = vsel %vm9677_vm12, %v9191_v41, %v5130_v63  ;;  %v5010_v56 = vclz %v5582_v48  ;;  %v5288_v27 = vsel %vm5286_vm15, %v5276_v31, 2102212464  ;;  %v5291_v46 = vsel %vm5283_vm14, %v5270_v21, %v5273_v57 }
 0x45e   : > { %6548 = vcosq.f32 %v5133_v5  ;;  %v5292_v49 = vsel %vm5286_vm15, %v5279_v16, 920167782  ;;  %v5295_v15 = vsel %vm5283_vm14, %v5273_v57, %v5276_v31  ;;  %v5296_v61 = vsel %vm5286_vm15, %v5282_v45, 1326507024 }
 0x45f   : > { %6550 = vsinq.f32 %v5133_v5  ;;  %v5583_v38 = vadd.s32 4294967294, %v5010_v56  ;;  %vm5284_vm1 = vcmp.lt.s32.totalorder %v5264_v53, 2  ;;  %v5293_v18 = vsel %vm5285_vm0, %v5276_v31, %v5292_v49 }
 0x460   : > { %v5297_v34 = vsel %vm5285_vm0, %v5279_v16, %v5296_v61  ;;  %v5287_v52 = vsel %vm5283_vm14, %v5267_v47, %v5270_v21  ;;  %v5289_v14 = vsel %vm5285_vm0, %v5273_v57, %v5288_v27  ;;  %v5294_v35 = vsel %vm5284_vm1, %v5291_v46, %v5293_v18 }
 0x461   : > { %v5298_v39 = vsel %vm5284_vm1, %v5295_v15, %v5297_v34  ;;  %vm5584_vm2 = vcmp.lt.s32.totalorder %v5583_v38, 0  ;;  %v5158_v62 = vadd.s32 1, %v5589_v12  ;;  %v5138_v4 = vand.u32 3, %v5134_v25 }
 0x462   : > { %v9712_v51 = vmul.u32.u64.low %v5299_v13, %v5298_v39  ;;  %v9713_v59 = vmul.u32.u64.high %v5299_v13, %v5298_v39, %v9712_v51  ;;  %v5013_v2 = vsel %vm5584_vm2, 0, %v5583_v38  ;;  %v4998_v36 = vadd.s32 %v9642_v55, %v9647_v33 }
 0x463   : > { %v9715_v60 = vmul.u32.u64.low %v5299_v13, %v5294_v35  ;;  %v9716_v20 = vmul.u32.u64.high %v5299_v13, %v5294_v35, %v9715_v60  ;;  %v5014_v54 = vsub.s32 32, %v5013_v2  ;;  %v5018_v19 = vsub.s32 4294967266, %v5013_v2 }
 0x464   : > { %vm5159_vm3 = vcmp.gt.s32.totalorder %v5158_v62, 0  ;;  %vm4944_vm4 = vcmp.lt.s32.totalorder %v9497_v29, 0  ;;  %v5290_v24 = vsel %vm5284_vm1, %v5287_v52, %v5289_v14  ;;  %v5148_v50 = vand.u32 2147483647, %v9506_v43 }
 0x465   : > { %v5160_v17 = vsel %vm5159_vm3, %v5158_v62, 0  ;;  %v5015_v11 = vshll.u32 %v9693_v44, %v5013_v2  ;;  %v5016_v10 = vshrl.u32 %v4998_v36, %v5014_v54  ;;  %v5019_v58 = vadd.s32 127, %v5018_v19 }
 0x466   : > { %vm5308_vm5 = vc.u32 %v9713_v59, %v9715_v60  ;;  %vm5143_vm6 = vcmp.eq.s32.totalorder %v5138_v4, 2  ;;  %v5028_v55 = vsub.s32 4, %v9682_v23  ;;  %v5309_v33 = vadd.s32 1, %v9716_v20 }
 0x467   : > { %v5162_v9 = vand.u32 31, %v5160_v17  ;;  %v5017_v40 = vor.u32 %v5016_v10, %v5015_v11  ;;  %v5020_v42 = vshll.u32 %v5019_v58, 23  ;;  %v5306_v6 = vmul.u32 %v5299_v13, %v5290_v24 }
 0x468   : > { %v6549_v32 = vpop.eup %6548  ;;  %v5310_v44 = vsel %vm5308_vm5, %v5309_v33, %v9716_v20  ;;  %v5155_v57 = vand.u32 8388607, %v5148_v50  ;;  %vm5140_vm7 = vcmp.eq.s32.totalorder %v5138_v4, 0  ;;  %vm5137_vm8 = vweird.f32 %v9191_v41 }
 0x469   : > { %v6551_v0 = vpop.eup %6550  ;;  %v5144_v53 = vxor.u32 2147483648, %v6549_v32  ;;  %v5163_v31 = vsub.s32 32, %v5162_v9  ;;  %v5021_v25 = vor.u32 4788187, %v5020_v42  ;;  %v5311_v16 = vadd.s32 %v5310_v44, %v5306_v6 }
 0x46a   : > { %v5141_v21 = vxor.u32 2147483648, %v6551_v0  ;;  %vm5139_vm9 = vcmp.lt.s32.totalorder %v5138_v4, 2  ;;  %v5029_v5 = vsel %vm4944_vm4, %v5028_v55, %v9682_v23  ;;  %v5024_v12 = vcvt.s32.f32 %v5017_v40 }
 0x46b   : > { %v5145_v63 = vsel %vm5143_vm6, %v5144_v53, %v6551_v0  ;;  %v5022_v13 = vand.u32 2147483647, %v5021_v25  ;;  %v5312_v47 = vadd.s32 536870912, %v5311_v16  ;;  %v5156_v27 = vor.u32 8388608, %v5155_v57 }
 0x46c   : > { %v5142_v45 = vsel %vm5140_vm7, %v6549_v32, %v5141_v21  ;;  %v5166_v46 = vshrl.u32 %v6629_v22, %v5163_v31  ;;  %v5169_v49 = vshrl.u32 %v6630_v26, %v5163_v31  ;;  %v5165_v41 = vshll.u32 %v6628_v3, %v5162_v9 }
 0x46d   : > { %v5146_v48 = vsel %vm5139_vm9, %v5142_v45, %v5145_v63  ;;  %v5025_v15 = vmul.f32 %v5024_v12, %v5022_v13  ;;  %v9739_v61 = vshrl.u32 %v5312_v47, 30  ;;  %v5172_v38 = vshrl.u32 %v6631_v28, %v5163_v31 }
 0x46e   : > { %v5147_v56 = vsel %vm5137_vm8, nan, %v5146_v48  ;;  %v5168_v23 = vshll.u32 %v6629_v22, %v5162_v9  ;;  %v5174_v18 = vshll.u32 %v6631_v28, %v5162_v9  ;;  %v5175_v34 = vshrl.u32 %v6632_v30, %v5163_v31 }
 0x46f   : > { %5383 = vst [vmem:[%s7475_s30 + $0xe8] sm:$0xff] %v5147_v56  ;;  %v5178_v52 = vshrl.u32 %v6633_v8, %v5163_v31  ;;  %v5026_v14 = vxor.u32 2147483648, %v5025_v15  ;;  %v5314_v35 = vshll.u32 %v9739_v61, 30  ;;  %v5161_v39 = vshrl.u32 %v5160_v17, 5 }
 0x470   : > { %v5171_v51 = vshll.u32 %v6630_v26, %v5162_v9  ;;  %v5167_v62 = vor.u32 %v5166_v46, %v5165_v41  ;;  %v5170_v4 = vor.u32 %v5169_v49, %v5168_v23  ;;  %v5176_v2 = vor.u32 %v5175_v34, %v5174_v18 }
 0x471   : > { %v5177_v20 = vshll.u32 %v6632_v30, %v5162_v9  ;;  %vm9752_vm10 = vcmp.le.f32.partialorder %v4942_v7, 0.7853982  ;;  %v5027_v28 = vsel %vm4944_vm4, %v5026_v14, %v5025_v15  ;;  %v5315_v8 = vsub.s32 %v5311_v16, %v5314_v35 }
 0x472   : > { %v5173_v36 = vor.u32 %v5172_v38, %v5171_v51  ;;  %v5030_v26 = vsel %vm9752_vm10, %v9497_v29, %v5027_v28  ;;  %v5031_v54 = vsel %vm9752_vm10, 0, %v5029_v5  ;;  %vm5180_vm11 = vcmp.lt.s32.totalorder %v5161_v39, 1 }
 0x473   : > { %v5179_v19 = vor.u32 %v5178_v52, %v5177_v20  ;;  %6552 = vcosq.f32 %v5030_v26  ;;  %v5317_v30 = vsub.s32 0, %v5315_v8  ;;  %vm5183_vm12 = vcmp.lt.s32.totalorder %v5161_v39, 4 }
 0x474   : > { %6554 = vsinq.f32 %v5030_v26  ;;  %v5188_v7 = vsel %vm5180_vm11, %v5167_v62, %v5170_v4  ;;  %v5189_v24 = vsel %vm5183_vm12, %v5176_v2, 920167782  ;;  %v5196_v17 = vshll.u32 %v5156_v27, 8 }
 0x475   : > { %v5594_v11 = vmin.u32 %v5317_v30, %v5315_v8  ;;  %v5164_v10 = vshrl.u32 %v6628_v3, %v5163_v31  ;;  %vm5182_vm13 = vcmp.lt.s32.totalorder %v5161_v39, 3  ;;  %v5185_v58 = vsel %vm5183_vm12, %v5173_v36, 2102212464 }
 0x476   : > { %vm5181_vm14 = vcmp.lt.s32.totalorder %v5161_v39, 2  ;;  %v5190_v32 = vsel %vm5182_vm13, %v5173_v36, %v5189_v24  ;;  %v5192_v55 = vsel %vm5180_vm11, %v5170_v4, %v5173_v36  ;;  %v5193_v33 = vsel %vm5183_vm12, %v5179_v19, 1326507024 }
 0x477   : > { %v5319_v9 = vclz %v5594_v11  ;;  %v5184_v0 = vsel %vm5180_vm11, %v5164_v10, %v5167_v62  ;;  %v5191_v53 = vsel %vm5181_vm14, %v5188_v7, %v5190_v32  ;;  %v5194_v40 = vsel %vm5182_vm13, %v5176_v2, %v5193_v33 }
 0x478   : > { %v5186_v42 = vsel %vm5182_vm13, %v5170_v4, %v5185_v58  ;;  %v5195_v6 = vsel %vm5181_vm14, %v5192_v55, %v5194_v40  ;;  %v9766_v21 = vmul.u32.u64.low %v5196_v17, %v5191_v53  ;;  %v9767_v44 = vmul.u32.u64.high %v5196_v17, %v5191_v53, %v9766_v21 }
 0x479   : > { %v5035_v57 = vand.u32 3, %v5031_v54  ;;  %v5595_v63 = vadd.s32 4294967294, %v5319_v9  ;;  %v9769_v3 = vmul.u32.u64.low %v5196_v17, %v5195_v6  ;;  %v9770_v31 = vmul.u32.u64.high %v5196_v17, %v5195_v6, %v9769_v3 }
 0x47a   : > { %v5187_v25 = vsel %vm5181_vm14, %v5184_v0, %v5186_v42  ;;  %v5206_v45 = vadd.s32 1, %v9767_v44  ;;  %v5307_v48 = vadd.s32 %v9715_v60, %v9713_v59  ;;  %vm5034_vm4 = vweird.f32 %v9497_v29 }
 0x47b   : > { %vm5596_vm15 = vcmp.lt.s32.totalorder %v5595_v63, 0  ;;  %vm5040_vm0 = vcmp.eq.s32.totalorder %v5035_v57, 2  ;;  %v5203_v46 = vmul.u32 %v5196_v17, %v5187_v25  ;;  %vm5205_vm1 = vc.u32 %v9770_v31, %v9766_v21 }
 0x47c   : > { %v5322_v16 = vsel %vm5596_vm15, 0, %v5595_v63  ;;  %v5207_v38 = vsel %vm5205_vm1, %v5206_v45, %v9767_v44  ;;  %vm5037_vm2 = vcmp.eq.s32.totalorder %v5035_v57, 0  ;;  %vm5036_vm3 = vcmp.lt.s32.totalorder %v5035_v57, 2 }
 0x47d   : > { %v6553_v5 = vpop.eup %6552  ;;  %v5323_v13 = vsub.s32 32, %v5322_v16  ;;  %v5327_v12 = vsub.s32 4294967266, %v5322_v16  ;;  %v5324_v27 = vshll.u32 %v5315_v8, %v5322_v16  ;;  %v5208_v18 = vadd.s32 %v5207_v38, %v5203_v46 }
 0x47e   : > { %v6555_v47 = vpop.eup %6554  ;;  %v5041_v56 = vxor.u32 2147483648, %v6553_v5  ;;  %vm5253_vm5 = vcmp.lt.s32.totalorder %v9501_v37, 0  ;;  %vm9783_vm6 = vcmp.le.f32.partialorder %v5251_v1, 0.7853982  ;;  %v5337_v26 = vsub.s32 4, %v9739_v61 }
 0x47f   : > { %v5038_v49 = vxor.u32 2147483648, %v6555_v47  ;;  %v5325_v15 = vshrl.u32 %v5307_v48, %v5323_v13  ;;  %v5328_v41 = vadd.s32 127, %v5327_v12  ;;  %v5209_v14 = vadd.s32 536870912, %v5208_v18 }
 0x480   : > { %v5042_v23 = vsel %vm5040_vm0, %v5041_v56, %v6555_v47  ;;  %v5338_v7 = vsel %vm5253_vm5, %v5337_v26, %v9739_v61  ;;  %v5204_v11 = vadd.s32 %v9766_v21, %v9770_v31  ;;  %vm5343_vm11 = vweird.f32 %v9501_v37 }
 0x481   : > { %v5039_v34 = vsel %vm5037_vm2, %v6553_v5, %v5038_v49  ;;  %v5326_v59 = vor.u32 %v5325_v15, %v5324_v27  ;;  %v5329_v60 = vshll.u32 %v5328_v41, 23  ;;  %v5210_v51 = vshrl.u32 %v5209_v14, 30 }
 0x482   : > { %v5043_v52 = vsel %vm5036_vm3, %v5039_v34, %v5042_v23  ;;  %v5340_v1 = vsel %vm9783_vm6, 0, %v5338_v7  ;;  %vm5150_vm12 = vcmp.lt.s32.totalorder %v9506_v43, 0  ;;  %vm5149_vm13 = vcmp.le.f32.partialorder %v5148_v50, 0.7853982 }
 0x483   : > { %v5044_v35 = vsel %vm5034_vm4, nan, %v5043_v52  ;;  %v5330_v39 = vor.u32 4788187, %v5329_v60  ;;  %v5333_v4 = vcvt.s32.f32 %v5326_v59  ;;  %v5211_v2 = vshll.u32 %v5210_v51, 30 }
 0x484   : > { %5382 = vst [vmem:[%s7475_s30 + $0xe0] sm:$0xff] %v5044_v35  ;;  %v5344_v32 = vand.u32 3, %v5340_v1  ;;  %v5234_v48 = vsub.s32 4, %v5210_v51  ;;  %vm5240_vm1 = vweird.f32 %v9506_v43 }
 0x485   : > { %v5331_v62 = vand.u32 2147483647, %v5330_v39  ;;  %v5212_v22 = vsub.s32 %v5208_v18, %v5211_v2 }
 0x486   : > { %vm5349_vm8 = vcmp.eq.s32.totalorder %v5344_v32, 2  ;;  %vm5346_vm9 = vcmp.eq.s32.totalorder %v5344_v32, 0  ;;  %vm5345_vm10 = vcmp.lt.s32.totalorder %v5344_v32, 2 }
 0x487   : > { %v5334_v20 = vmul.f32 %v5333_v4, %v5331_v62  ;;  %v5214_v8 = vsub.s32 0, %v5212_v22 }
 0x489   : > { %v5335_v28 = vxor.u32 2147483648, %v5334_v20  ;;  %v5590_v19 = vmin.u32 %v5214_v8, %v5212_v22 }
 0x48b   : > { %v5336_v29 = vsel %vm5253_vm5, %v5335_v28, %v5334_v20  ;;  %v5216_v30 = vclz %v5590_v19 }
 0x48c   : > { %v5339_v54 = vsel %vm9783_vm6, %v9501_v37, %v5336_v29  ;;  %v5235_v37 = vsel %vm5150_vm12, %v5234_v48, %v5210_v51 }
 0x48d   : > { %6556 = vcosq.f32 %v5339_v54  ;;  %v5591_v24 = vadd.s32 4294967294, %v5216_v30  ;;  %v5237_v12 = vsel %vm5149_vm13, 0, %v5235_v37 }
 0x48e   : > { %6558 = vsinq.f32 %v5339_v54  ;;  %v5241_v47 = vand.u32 3, %v5237_v12 }
 0x48f   : > { %vm5592_vm7 = vcmp.lt.s32.totalorder %v5591_v24, 0 }
 0x490   : > { %v5219_v17 = vsel %vm5592_vm7, 0, %v5591_v24  ;;  %vm5246_vm14 = vcmp.eq.s32.totalorder %v5241_v47, 2  ;;  %vm5243_vm15 = vcmp.eq.s32.totalorder %v5241_v47, 0  ;;  %vm5242_vm0 = vcmp.lt.s32.totalorder %v5241_v47, 2 }
 0x491   : > { %v5220_v10 = vsub.s32 32, %v5219_v17  ;;  %v5224_v58 = vsub.s32 4294967266, %v5219_v17  ;;  %v5221_v55 = vshll.u32 %v5212_v22, %v5219_v17 }
 0x493   : > { %v5222_v33 = vshrl.u32 %v5204_v11, %v5220_v10  ;;  %v5225_v9 = vadd.s32 127, %v5224_v58 }
 0x495   : > { %v5223_v42 = vor.u32 %v5222_v33, %v5221_v55  ;;  %v5226_v61 = vshll.u32 %v5225_v9, 23 }
 0x497   : > { %v6557_v0 = vpop.eup %6556  ;;  %v5227_v57 = vor.u32 4788187, %v5226_v61  ;;  %v5230_v31 = vcvt.s32.f32 %v5223_v42 }
 0x498   : > { %v6559_v53 = vpop.eup %6558  ;;  %v5350_v40 = vxor.u32 2147483648, %v6557_v0 }
 0x499   : > { %v5347_v6 = vxor.u32 2147483648, %v6559_v53  ;;  %v5228_v3 = vand.u32 2147483647, %v5227_v57 }
 0x49a   : > { %v5351_v44 = vsel %vm5349_vm8, %v5350_v40, %v6559_v53 }
 0x49b   : > { %v5348_v63 = vsel %vm5346_vm9, %v6557_v0, %v5347_v6  ;;  %v5231_v16 = vmul.f32 %v5230_v31, %v5228_v3 }
 0x49c   : > { %v5352_v21 = vsel %vm5345_vm10, %v5348_v63, %v5351_v44 }
 0x49d   : > { %v5353_v25 = vsel %vm5343_vm11, nan, %v5352_v21  ;;  %v5232_v45 = vxor.u32 2147483648, %v5231_v16 }
 0x49e   : > { %5385 = vst [vmem:[%s7475_s30 + $0xf8] sm:$0xff] %v5353_v25 }
 0x49f   : > { %v5233_v5 = vsel %vm5150_vm12, %v5232_v45, %v5231_v16 }
 0x4a0   : > { %v5236_v13 = vsel %vm5149_vm13, %v9506_v43, %v5233_v5 }
 0x4a1   : > { %6560 = vcosq.f32 %v5236_v13 }
 0x4a2   : > { %6562 = vsinq.f32 %v5236_v13 }
 0x4ab   : > { %v6561_v56 = vpop.eup %6560 }
 0x4ac   : > { %v6563_v27 = vpop.eup %6562  ;;  %v5247_v46 = vxor.u32 2147483648, %v6561_v56 }
 0x4ad   : > { %v5244_v49 = vxor.u32 2147483648, %v6563_v27 }
 0x4ae   : > { %v5248_v50 = vsel %vm5246_vm14, %v5247_v46, %v6563_v27 }
 0x4af   : > { %v5245_v15 = vsel %vm5243_vm15, %v6561_v56, %v5244_v49 }
 0x4b0   : > { %v5249_v41 = vsel %vm5242_vm0, %v5245_v15, %v5248_v50 }
 0x4b1   : > { %v5250_v38 = vsel %vm5240_vm1, nan, %v5249_v41 }
 0x4b2   : > { %5384 = vst [vmem:[%s7475_s30 + $0xf0] sm:$0xff] %v5250_v38 }
 0x4b3   : > { %6577 = shalt.err (!%p6574_p3)
}
 0x4b4   : > { %s6578_s21 = scalar_lea.hbm %s9806_s7, 4096  ;;  %s6582_s24 = scalar_lea.hbm %s9857_s2, 8192 }
 0x4b5   : > { %p6579_p4 = scmp.ne.s32.totalorder %s9806_s7, %s6578_s21  ;;  %p6583_p9 = scmp.lt.u32.totalorder %s9806_s7, %s9857_s2 }
 0x4b6   : > { %p6584_p10 = scmp.lt.u32.totalorder %s6582_s24, %s6578_s21  ;;  %p6586_p12 = scmp.lt.u32.totalorder %s6578_s21, %s9806_s7 }
 0x4b7   : > { %p6580_p7 = pnand %p6579_p4, %p6690_p5 }
 0x4b8   : > { %p6585_p11 = por %p6584_p10, %p6583_p9 }
 0x4b9   : > { %p6581_p8 = pneg %p6580_p7 }
 0x4ba   : > { %p6587_p13 = por %p6586_p12, %p6585_p11 }
 0x4bc   : > { %p6588_p0 = pnand %p6587_p13, %p6581_p8 }
 0x4be   : > { %6591 = shalt.err (!%p6588_p0)
}
 0x4bf   : > { %s6635_s27 = smov 128   ;;  %s6636_s28 = smov 8  }
 0x4c0   : > { %6389 = dma.vmem_to_hbm [thread:$0]  (%p6690_p5), %s9808_s4, 4096, %s9806_s7, %s9814_s8, %s6635_s27, %s6635_s27, %s6636_s28  }
 0x4c1 PF: > { %p6395_p1 = scmp.ge.s32.totalorder %s6626_s12, 2  ;;  %s5415_s29 = sand.u32 1, %s6614_s9  }
 0x4c2   : > { %s5416_s30 = scalar_lea.sflag [#allocation3], %s5415_s29 }
 0x4c3   : > { %p6392_p2 = pnand %p6395_p1, %p6694_p6 }
 0x4c5   : > { %6609 = dma.done.wait (!%p6392_p2), %s5416_s30, 4096  }
 0x4c6   : > { %6611 = vsyncadd (!%p6392_p2), %s5416_s30, 4294963200  ;;  %p12_p3 = scmp.ge.s32.totalorder %s6677_s15, 4   ;;  %s9976_s9 = smov %s6618_s10 }
 0x4c7   : > { %s9977_s10 = smov %s6622_s11  ;;  %s9978_s11 = smov %s6688_s18 }
 0x4c8   : > { %s9979_s12 = smov %s6677_s15  ;;  %14 = sbr.rel (!%p12_p3) target bundleno = 3 (0x3), region = 63 }
 0x4cf   :  { %5421 = vsyncpa [#allocation3], 1 }
 0x4d0   :  { %5423 = vsyncpa [#allocation3 + $0x1], 1 }

</bundles_post_ra>
